<compile_context>
chip_gen: v6e
topology: v6e:2x2x1
jax: 0.10.0
libtpu: 0.0.40
codegen_flags: <defaults>
</compile_context>

<pallas_src>
import jax
import jax.numpy as jnp
import numpy as np
from jax import lax
from jax.experimental import pallas as pl
from jax.experimental.pallas import tpu as pltpu

_EPS = 1e-5
_LANES = 128          # channel / K padding target (TPU lane width)


# ------------------------------ kernel helpers --------------------------------

def _fill_xpad(xpad_ref, center, up, down, t, nt):
    """Build the zero-halo'd padded tile in VMEM.

    xpad_ref : (TH+2, W+2, 128) bf16 scratch
    center   : (TH, W, 128) bf16  -- rows [t*TH, (t+1)*TH) of the image
    up/down  : (W, 128) bf16      -- rows t*TH-1 / t*TH+TH (clamped; only
                                     written when they exist, else halo = 0)
    """
    TH, W, C = center.shape

    # Zero only the 1-pixel border; the interior is fully overwritten below.
    zcol = jnp.zeros((TH + 2, 1, C), jnp.bfloat16)
    zrow = jnp.zeros((1, W + 2, C), jnp.bfloat16)
    xpad_ref[:, 0:1, :] = zcol
    xpad_ref[:, W + 1:W + 2, :] = zcol
    xpad_ref[0:1, :, :] = zrow
    xpad_ref[TH + 1:TH + 2, :, :] = zrow

    @pl.when(t > 0)
    def _():
        xpad_ref[0:1, 1:W + 1, :] = up[None]

    @pl.when(t < nt - 1)
    def _():
        xpad_ref[TH + 1:TH + 2, 1:W + 1, :] = down[None]

    xpad_ref[1:TH + 1, 1:W + 1, :] = center


def _conv_from_xpad(xpad_ref, w_ref, y_ref, st_ref):
    """3x3 conv as 9 accumulated (TH*W,128)@(128,128) MXU matmuls + BN stats."""
    _, TH, W, C = y_ref.shape
    acc = jnp.zeros((TH * W, C), jnp.float32)
    for k in range(9):
        dy, dx = divmod(k, 3)
        patch = xpad_ref[dy:dy + TH, dx:dx + W, :].reshape(TH * W, C)
        acc = acc + jnp.dot(patch, w_ref[k * C:(k + 1) * C, :],
                            preferred_element_type=jnp.float32)

    y_ref[...] = acc.reshape(1, TH, W, C).astype(y_ref.dtype)

    # Per-tile partial BN statistics (reduced across tiles in the wrapper).
    s1 = jnp.sum(acc, axis=0)
    s2 = jnp.sum(acc * acc, axis=0)
    st_ref[...] = jnp.concatenate([s1[None], s2[None]], axis=0).reshape(1, 1, 2, C)


# ------------------------------ kernel bodies ---------------------------------

def _conv_kernel(xc_ref, xu_ref, xd_ref, w_ref, y_ref, st_ref, xpad_ref):
    """Conv3x3 on the (pre-padded, bf16) input tile + partial BN stats."""
    t = pl.program_id(1)
    nt = pl.num_programs(1)
    _fill_xpad(xpad_ref, xc_ref[0], xu_ref[0, 0], xd_ref[0, 0], t, nt)
    _conv_from_xpad(xpad_ref, w_ref, y_ref, st_ref)


def _bnrelu_conv_kernel(xc_ref, xu_ref, xd_ref, scale_ref, shift_ref, w_ref,
                        y_ref, st_ref, xpad_ref):
    """Fused BN+ReLU of the previous block, then Conv3x3 + partial BN stats."""
    t = pl.program_id(1)
    nt = pl.num_programs(1)
    scale = scale_ref[...]          # (1, 128) f32
    shift = shift_ref[...]

    def bnrelu(v):                  # math in f32, store bf16
        return jnp.maximum(v.astype(jnp.float32) * scale + shift,
                           0.0).astype(jnp.bfloat16)

    _fill_xpad(xpad_ref, bnrelu(xc_ref[0]), bnrelu(xu_ref[0, 0]),
               bnrelu(xd_ref[0, 0]), t, nt)
    _conv_from_xpad(xpad_ref, w_ref, y_ref, st_ref)


def _bn_relu_kernel(x_ref, scale_ref, shift_ref, o_ref):
    """Final BN+ReLU; slices down to the real cout inside the kernel."""
    cout = o_ref.shape[-1]
    v = x_ref[...].astype(jnp.float32) * scale_ref[...] + shift_ref[...]
    o_ref[...] = jnp.maximum(v[..., :cout], 0.0)


# ------------------------------ pallas wrappers --------------------------------

def _vmem_limit_bytes():
    try:
        cap = int(pltpu.get_tpu_info().vmem_capacity_bytes)
    except Exception:
        cap = 64 * 1024 * 1024          # conservative fallback (v7x-sized)
    return min(cap * 3 // 4, 100 * 1024 * 1024)


def _compiler_params():
    return pltpu.CompilerParams(
        dimension_semantics=("parallel", "parallel"),
        vmem_limit_bytes=_vmem_limit_bytes())


def _pick_row_tile(H, W, N):
    """Largest divisor of H keeping the tile ~8K pixels; ensure a few grid steps."""
    target = max(8, 8192 // max(W, 1))
    th = 1
    for d in range(1, H + 1):
        if H % d == 0 and d <= target:
            th = d
    while N * (H // th) < 4 and th % 2 == 0:
        th //= 2
    return th


def _conv_pass(x, w_big, th, scale=None, shift=None):
    """(optional fused BN+ReLU of previous block) + Conv3x3 + partial BN stats."""
    N, H, W, C = x.shape
    T = H // th

    center = pl.BlockSpec((1, th, W, C), lambda n, t: (n, t, 0, 0))
    up = pl.BlockSpec((1, 1, W, C),
                      lambda n, t: (n, jnp.maximum(t * th - 1, 0), 0, 0))
    down = pl.BlockSpec((1, 1, W, C),
                        lambda n, t: (n, jnp.minimum(t * th + th, H - 1), 0, 0))

    def const_spec(shape):
        return pl.BlockSpec(shape, lambda n, t: (0, 0))

    in_specs = [center, up, down]
    args = [x, x, x]
    if scale is not None:
        in_specs += [const_spec((1, C)), const_spec((1, C))]
        args += [scale, shift]
    in_specs += [const_spec((9 * C, C))]
    args += [w_big]

    grid_spec = pltpu.PrefetchScalarGridSpec(
        num_scalar_prefetch=0,
        grid=(N, T),
        in_specs=in_specs,
        out_specs=[pl.BlockSpec((1, th, W, C), lambda n, t: (n, t, 0, 0)),
                   pl.BlockSpec((1, 1, 2, C), lambda n, t: (n, t, 0, 0))],
        scratch_shapes=[pltpu.VMEM((th + 2, W + 2, C), jnp.bfloat16)])

    out_shape = (jax.ShapeDtypeStruct((N, H, W, C), jnp.bfloat16),
                 jax.ShapeDtypeStruct((N, T, 2, C), jnp.float32))

    kernel = _conv_kernel if scale is None else _bnrelu_conv_kernel
    return pl.pallas_call(kernel, out_shape=out_shape, grid_spec=grid_spec,
                          compiler_params=_compiler_params())(*args)


def _bn_relu(y, scale, shift, cout, th):
    N, H, W, C = y.shape
    T = H // th
    return pl.pallas_call(
        _bn_relu_kernel,
        out_shape=jax.ShapeDtypeStruct((N, H, W, cout), jnp.float32),
        grid_spec=pltpu.PrefetchScalarGridSpec(
            num_scalar_prefetch=0, grid=(N, T),
            in_specs=[pl.BlockSpec((1, th, W, C), lambda n, t: (n, t, 0, 0)),
                      pl.BlockSpec((1, C), lambda n, t: (0, 0)),
                      pl.BlockSpec((1, C), lambda n, t: (0, 0))],
            out_specs=pl.BlockSpec((1, th, W, cout), lambda n, t: (n, t, 0, 0))),
        compiler_params=_compiler_params(),
    )(y, scale, shift)


# --------------------------- parameter preparation -----------------------------

def _pack_weight(w_oihw):
    """PyTorch (Cout, Cin, 3, 3) -> (9*128, 128) bf16, tap-major, lane-padded."""
    cout, cin = w_oihw.shape[0], w_oihw.shape[1]
    w = jnp.transpose(w_oihw, (2, 3, 1, 0)).reshape(9, cin, cout)
    wp = jnp.zeros((9, _LANES, _LANES), jnp.float32)
    wp = wp.at[:, :cin, :cout].set(w)
    return wp.reshape(9 * _LANES, _LANES).astype(jnp.bfloat16)


def _pad_vec(v):
    return jnp.zeros((_LANES,), jnp.float32).at[:v.shape[0]].set(v)


def _bn_scale_shift(stats, count, gamma_pad, beta_pad):
    """Fold batch statistics + BN affine into one per-channel scale/shift."""
    s = jnp.sum(stats, axis=(0, 1))                          # (2, 128)
    mean = s[0] / count
    var = jnp.maximum(s[1] / count - mean * mean, 0.0)       # E[x^2] - mean^2
    scale = gamma_pad * lax.rsqrt(var + _EPS)
    shift = beta_pad - mean * scale
    return scale.reshape(1, _LANES), shift.reshape(1, _LANES)


@jax.jit
def double_conv(x_nchw, params):
    """Forward pass of DoubleConv.  Input/output NCHW (PyTorch convention)."""
    N, cin, H, W = x_nchw.shape
    cout = params["w1"].shape[0]
    assert cin <= _LANES and cout <= _LANES  # TODO(synk): tile channels > 128
    count = N * H * W
    C = _LANES
    th = _pick_row_tile(H, W, N)

    # NCHW -> NHWC, channel-pad to 128 lanes, cast to bf16 (tiny tensor).
    x = jnp.transpose(x_nchw, (0, 2, 3, 1))
    x = jnp.pad(x, ((0, 0), (0, 0), (0, 0), (0, C - cin))).astype(jnp.bfloat16)

    w1, w2 = _pack_weight(params["w1"]), _pack_weight(params["w2"])
    g1, bt1 = _pad_vec(params["g1"]), _pad_vec(params["beta1"])
    g2, bt2 = _pad_vec(params["g2"]), _pad_vec(params["beta2"])
    # NOTE: conv biases (params["b1"], params["b2"]) are intentionally unused:
    # batch-statistics BN subtracts the per-channel mean, cancelling them exactly.

    y1_raw, st1 = _conv_pass(x, w1, th)                       # conv1 + stats
    sc1, sh1 = _bn_scale_shift(st1, count, g1, bt1)
    y2_raw, st2 = _conv_pass(y1_raw, w2, th, sc1, sh1)        # bn1+relu fused w/ conv2
    sc2, sh2 = _bn_scale_shift(st2, count, g2, bt2)
    out_nhwc = _bn_relu(y2_raw, sc2, sh2, cout, th)           # final bn2 + relu

    return jnp.transpose(out_nhwc, (0, 3, 1, 2))              # NHWC -> NCHW


# ----------------------------- pure-JAX reference ------------------------------

def _ref_conv_bn_relu(x_nchw, w_oihw, b, g, beta):
    y = lax.conv_general_dilated(
        x_nchw, w_oihw, window_strides=(1, 1), padding=((1, 1), (1, 1)),
        dimension_numbers=("NCHW", "OIHW", "NCHW"))
    y = y + b[None, :, None, None]
    mean = jnp.mean(y, axis=(0, 2, 3), keepdims=True)
    var = jnp.mean(jnp.square(y - mean), axis=(0, 2, 3), keepdims=True)
    y = (y - mean) * lax.rsqrt(var + _EPS)
    y = y * g[None, :, None, None] + beta[None, :, None, None]
    return jnp.maximum(y, 0.0)


def _ref_double_conv(x_nchw, params):
    y = _ref_conv_bn_relu(x_nchw, params["w1"], params["b1"], params["g1"],
                          params["beta1"])
    y = _ref_conv_bn_relu(y, params["w2"], params["b2"], params["g2"],
                          params["beta2"])
    return y


# ----------------------------------- main ---------------------------------------

if __name__ == "__main__":
    N, IN_CH, OUT_CH, H, W = 2, 4, 8, 16, 16

    key = jax.random.PRNGKey(0)
    ks = jax.random.split(key, 7)

    # Deterministic synthetic parameters (PyTorch-shaped conv weights: OIHW).
    params = {
        "w1": 0.1 * jax.random.normal(ks[0], (OUT_CH, IN_CH, 3, 3), jnp.float32),
        "b1": 0.1 * jax.random.normal(ks[1], (OUT_CH,), jnp.float32),
        "g1": 1.0 + 0.1 * jax.random.normal(ks[2], (OUT_CH,), jnp.float32),
        "beta1": 0.1 * jax.random.normal(ks[3], (OUT_CH,), jnp.float32),
        "w2": 0.1 * jax.random.normal(ks[4], (OUT_CH, OUT_CH, 3, 3), jnp.float32),
        "b2": 0.1 * jax.random.normal(ks[5], (OUT_CH,), jnp.float32),
        "g2": jnp.ones((OUT_CH,), jnp.float32),
        "beta2": jnp.zeros((OUT_CH,), jnp.float32),
    }

    x = jax.random.normal(ks[6], (N, IN_CH, H, W), jnp.float32)

    out = jax.block_until_ready(double_conv(x, params))

    ref = _ref_double_conv(x, params)
    # bf16 MXU operands + bf16 intermediate activations -> loosened tolerance.
    np.testing.assert_allclose(np.asarray(out), np.asarray(ref),
                               rtol=3e-2, atol=3e-2)

    assert out.shape == (N, OUT_CH, H, W)
    print("KERNEL_OK")
</pallas_src>

<mosaic_0001>
module attributes {stable_mosaic.version = 11 : i64} {
  func.func @_conv_kernel(%arg0: i32, %arg1: i32, %arg2: memref<1x8x16x128xbf16, #tpu.memory_space<vmem>>, %arg3: memref<1x1x16x128xbf16, #tpu.memory_space<vmem>>, %arg4: memref<1x1x16x128xbf16, #tpu.memory_space<vmem>>, %arg5: memref<1152x128xbf16, #tpu.memory_space<vmem>>, %arg6: memref<1x8x16x128xbf16, #tpu.memory_space<vmem>>, %arg7: memref<1x1x2x128xf32, #tpu.memory_space<vmem>>, %arg8: memref<10x18x128xbf16, #tpu.memory_space<vmem>>) attributes {dimension_semantics = [#tpu.dimension_semantics<parallel>, #tpu.dimension_semantics<parallel>], iteration_bounds = array<i64: 2, 2>, scalar_prefetch = 0 : i64, scratch_operands = 1 : i64, tpu.core_type = #tpu.core_type<tc>, window_params = [{transform_indices = @transform_0, window_bounds = array<i64: 1, 8, 16, 128>}, {transform_indices = @transform_1, window_bounds = array<i64: 1, 1, 16, 128>}, {transform_indices = @transform_2, window_bounds = array<i64: 1, 1, 16, 128>}, {pipeline_mode = #tpu.pipeline_mode<synchronous>, transform_indices = @transform_3, window_bounds = array<i64: 1152, 128>}, {transform_indices = @transform_4, window_bounds = array<i64: 1, 8, 16, 128>}, {transform_indices = @transform_5, window_bounds = array<i64: 1, 1, 2, 128>}]} {
    %c0 = arith.constant 0 : index
    %c0_0 = arith.constant 0 : index
    %c0_1 = arith.constant 0 : index
    %c0_2 = arith.constant 0 : index
    %0 = vector.load %arg2[%c0, %c0_0, %c0_1, %c0_2] : memref<1x8x16x128xbf16, #tpu.memory_space<vmem>>, vector<1x8x16x128xbf16>
    %1 = vector.shape_cast %0 : vector<1x8x16x128xbf16> to vector<8x16x128xbf16>
    %c0_3 = arith.constant 0 : index
    %c0_4 = arith.constant 0 : index
    %c0_5 = arith.constant 0 : index
    %c0_6 = arith.constant 0 : index
    %2 = vector.load %arg3[%c0_3, %c0_4, %c0_5, %c0_6] : memref<1x1x16x128xbf16, #tpu.memory_space<vmem>>, vector<1x1x16x128xbf16>
    %3 = vector.shape_cast %2 : vector<1x1x16x128xbf16> to vector<16x128xbf16>
    %c0_7 = arith.constant 0 : index
    %c0_8 = arith.constant 0 : index
    %c0_9 = arith.constant 0 : index
    %c0_10 = arith.constant 0 : index
    %4 = vector.load %arg4[%c0_7, %c0_8, %c0_9, %c0_10] : memref<1x1x16x128xbf16, #tpu.memory_space<vmem>>, vector<1x1x16x128xbf16>
    %5 = vector.shape_cast %4 : vector<1x1x16x128xbf16> to vector<16x128xbf16>
    %cst = arith.constant 0.000000e+00 : bf16
    %6 = vector.broadcast %cst : bf16 to vector<10x1x128xbf16>
    %cst_11 = arith.constant 0.000000e+00 : bf16
    %7 = vector.broadcast %cst_11 : bf16 to vector<1x18x128xbf16>
    %c0_12 = arith.constant 0 : index
    %c0_13 = arith.constant 0 : index
    %c0_14 = arith.constant 0 : index
    %8 = vector.load %arg8[%c0_12, %c0_13, %c0_14] : memref<10x18x128xbf16, #tpu.memory_space<vmem>>, vector<10x1x128xbf16>
    tpu.vector_store %arg8[%c0_12, %c0_13, %c0_14], %6 {strides = array<i32>} : memref<10x18x128xbf16, #tpu.memory_space<vmem>>, vector<10x1x128xbf16>,
    %c0_15 = arith.constant 0 : index
    %c17 = arith.constant 17 : index
    %c0_16 = arith.constant 0 : index
    %9 = vector.load %arg8[%c0_15, %c17, %c0_16] : memref<10x18x128xbf16, #tpu.memory_space<vmem>>, vector<10x1x128xbf16>
    tpu.vector_store %arg8[%c0_15, %c17, %c0_16], %6 {strides = array<i32>} : memref<10x18x128xbf16, #tpu.memory_space<vmem>>, vector<10x1x128xbf16>,
    %c0_17 = arith.constant 0 : index
    %c0_18 = arith.constant 0 : index
    %c0_19 = arith.constant 0 : index
    %10 = vector.load %arg8[%c0_17, %c0_18, %c0_19] : memref<10x18x128xbf16, #tpu.memory_space<vmem>>, vector<1x18x128xbf16>
    tpu.vector_store %arg8[%c0_17, %c0_18, %c0_19], %7 {strides = array<i32>} : memref<10x18x128xbf16, #tpu.memory_space<vmem>>, vector<1x18x128xbf16>,
    %c9 = arith.constant 9 : index
    %c0_20 = arith.constant 0 : index
    %c0_21 = arith.constant 0 : index
    %11 = vector.load %arg8[%c9, %c0_20, %c0_21] : memref<10x18x128xbf16, #tpu.memory_space<vmem>>, vector<1x18x128xbf16>
    tpu.vector_store %arg8[%c9, %c0_20, %c0_21], %7 {strides = array<i32>} : memref<10x18x128xbf16, #tpu.memory_space<vmem>>, vector<1x18x128xbf16>,
    %c0_i32 = arith.constant 0 : i32
    %12 = arith.cmpi sgt, %arg1, %c0_i32 : i32
    %13 = arith.extui %12 : i1 to i32
    %c0_i32_22 = arith.constant 0 : i32
    %14 = arith.cmpi ne, %13, %c0_i32_22 : i32
    scf.if %14 {
      %76 = vector.shape_cast %3 : vector<16x128xbf16> to vector<1x16x128xbf16>
      %c0_82 = arith.constant 0 : index
      %c1_83 = arith.constant 1 : index
      %c0_84 = arith.constant 0 : index
      %77 = vector.load %arg8[%c0_82, %c1_83, %c0_84] : memref<10x18x128xbf16, #tpu.memory_space<vmem>>, vector<1x16x128xbf16>
      tpu.vector_store %arg8[%c0_82, %c1_83, %c0_84], %76 {strides = array<i32>} : memref<10x18x128xbf16, #tpu.memory_space<vmem>>, vector<1x16x128xbf16>,
    } else {
    }
    %c1_i32 = arith.constant 1 : i32
    %15 = arith.cmpi slt, %arg1, %c1_i32 : i32
    %16 = arith.extui %15 : i1 to i32
    %c0_i32_23 = arith.constant 0 : i32
    %17 = arith.cmpi ne, %16, %c0_i32_23 : i32
    scf.if %17 {
      %76 = vector.shape_cast %5 : vector<16x128xbf16> to vector<1x16x128xbf16>
      %c9_82 = arith.constant 9 : index
      %c1_83 = arith.constant 1 : index
      %c0_84 = arith.constant 0 : index
      %77 = vector.load %arg8[%c9_82, %c1_83, %c0_84] : memref<10x18x128xbf16, #tpu.memory_space<vmem>>, vector<1x16x128xbf16>
      tpu.vector_store %arg8[%c9_82, %c1_83, %c0_84], %76 {strides = array<i32>} : memref<10x18x128xbf16, #tpu.memory_space<vmem>>, vector<1x16x128xbf16>,
    } else {
    }
    %c1 = arith.constant 1 : index
    %c1_24 = arith.constant 1 : index
    %c0_25 = arith.constant 0 : index
    %18 = vector.load %arg8[%c1, %c1_24, %c0_25] : memref<10x18x128xbf16, #tpu.memory_space<vmem>>, vector<8x16x128xbf16>
    tpu.vector_store %arg8[%c1, %c1_24, %c0_25], %1 {strides = array<i32>} : memref<10x18x128xbf16, #tpu.memory_space<vmem>>, vector<8x16x128xbf16>,
    %cst_26 = arith.constant 0.000000e+00 : f32
    %19 = vector.broadcast %cst_26 : f32 to vector<128x128xf32>
    %c0_27 = arith.constant 0 : index
    %c0_28 = arith.constant 0 : index
    %c0_29 = arith.constant 0 : index
    %20 = vector.load %arg8[%c0_27, %c0_28, %c0_29] : memref<10x18x128xbf16, #tpu.memory_space<vmem>>, vector<8x16x128xbf16>
    %21 = vector.shape_cast %20 : vector<8x16x128xbf16> to vector<128x128xbf16>
    %c0_30 = arith.constant 0 : index
    %c0_31 = arith.constant 0 : index
    %22 = vector.load %arg5[%c0_30, %c0_31] : memref<1152x128xbf16, #tpu.memory_space<vmem>>, vector<128x128xbf16>
    %cst_32 = arith.constant dense<0.000000e+00> : vector<128x128xf32>
    %23 = tpu.matmul %21, %22, %cst_32 {dimension_numbers = #tpu.dot_dimension_numbers<[1], [0], [0], [1], [0, 0, 1, 1], [], []>} : vector<128x128xbf16>, vector<128x128xbf16>, vector<128x128xf32> -> vector<128x128xf32>
    %24 = arith.addf %19, %23 : vector<128x128xf32>
    %c0_33 = arith.constant 0 : index
    %c1_34 = arith.constant 1 : index
    %c0_35 = arith.constant 0 : index
    %25 = vector.load %arg8[%c0_33, %c1_34, %c0_35] : memref<10x18x128xbf16, #tpu.memory_space<vmem>>, vector<8x16x128xbf16>
    %26 = vector.shape_cast %25 : vector<8x16x128xbf16> to vector<128x128xbf16>
    %c128 = arith.constant 128 : index
    %c0_36 = arith.constant 0 : index
    %27 = vector.load %arg5[%c128, %c0_36] : memref<1152x128xbf16, #tpu.memory_space<vmem>>, vector<128x128xbf16>
    %cst_37 = arith.constant dense<0.000000e+00> : vector<128x128xf32>
    %28 = tpu.matmul %26, %27, %cst_37 {dimension_numbers = #tpu.dot_dimension_numbers<[1], [0], [0], [1], [0, 0, 1, 1], [], []>} : vector<128x128xbf16>, vector<128x128xbf16>, vector<128x128xf32> -> vector<128x128xf32>
    %29 = arith.addf %24, %28 : vector<128x128xf32>
    %c0_38 = arith.constant 0 : index
    %c2 = arith.constant 2 : index
    %c0_39 = arith.constant 0 : index
    %30 = vector.load %arg8[%c0_38, %c2, %c0_39] : memref<10x18x128xbf16, #tpu.memory_space<vmem>>, vector<8x16x128xbf16>
    %31 = vector.shape_cast %30 : vector<8x16x128xbf16> to vector<128x128xbf16>
    %c256 = arith.constant 256 : index
    %c0_40 = arith.constant 0 : index
    %32 = vector.load %arg5[%c256, %c0_40] : memref<1152x128xbf16, #tpu.memory_space<vmem>>, vector<128x128xbf16>
    %cst_41 = arith.constant dense<0.000000e+00> : vector<128x128xf32>
    %33 = tpu.matmul %31, %32, %cst_41 {dimension_numbers = #tpu.dot_dimension_numbers<[1], [0], [0], [1], [0, 0, 1, 1], [], []>} : vector<128x128xbf16>, vector<128x128xbf16>, vector<128x128xf32> -> vector<128x128xf32>
    %34 = arith.addf %29, %33 : vector<128x128xf32>
    %c1_42 = arith.constant 1 : index
    %c0_43 = arith.constant 0 : index
    %c0_44 = arith.constant 0 : index
    %35 = vector.load %arg8[%c1_42, %c0_43, %c0_44] : memref<10x18x128xbf16, #tpu.memory_space<vmem>>, vector<8x16x128xbf16>
    %36 = vector.shape_cast %35 : vector<8x16x128xbf16> to vector<128x128xbf16>
    %c384 = arith.constant 384 : index
    %c0_45 = arith.constant 0 : index
    %37 = vector.load %arg5[%c384, %c0_45] : memref<1152x128xbf16, #tpu.memory_space<vmem>>, vector<128x128xbf16>
    %cst_46 = arith.constant dense<0.000000e+00> : vector<128x128xf32>
    %38 = tpu.matmul %36, %37, %cst_46 {dimension_numbers = #tpu.dot_dimension_numbers<[1], [0], [0], [1], [0, 0, 1, 1], [], []>} : vector<128x128xbf16>, vector<128x128xbf16>, vector<128x128xf32> -> vector<128x128xf32>
    %39 = arith.addf %34, %38 : vector<128x128xf32>
    %c1_47 = arith.constant 1 : index
    %c1_48 = arith.constant 1 : index
    %c0_49 = arith.constant 0 : index
    %40 = vector.load %arg8[%c1_47, %c1_48, %c0_49] : memref<10x18x128xbf16, #tpu.memory_space<vmem>>, vector<8x16x128xbf16>
    %41 = vector.shape_cast %40 : vector<8x16x128xbf16> to vector<128x128xbf16>
    %c512 = arith.constant 512 : index
    %c0_50 = arith.constant 0 : index
    %42 = vector.load %arg5[%c512, %c0_50] : memref<1152x128xbf16, #tpu.memory_space<vmem>>, vector<128x128xbf16>
    %cst_51 = arith.constant dense<0.000000e+00> : vector<128x128xf32>
    %43 = tpu.matmul %41, %42, %cst_51 {dimension_numbers = #tpu.dot_dimension_numbers<[1], [0], [0], [1], [0, 0, 1, 1], [], []>} : vector<128x128xbf16>, vector<128x128xbf16>, vector<128x128xf32> -> vector<128x128xf32>
    %44 = arith.addf %39, %43 : vector<128x128xf32>
    %c1_52 = arith.constant 1 : index
    %c2_53 = arith.constant 2 : index
    %c0_54 = arith.constant 0 : index
    %45 = vector.load %arg8[%c1_52, %c2_53, %c0_54] : memref<10x18x128xbf16, #tpu.memory_space<vmem>>, vector<8x16x128xbf16>
    %46 = vector.shape_cast %45 : vector<8x16x128xbf16> to vector<128x128xbf16>
    %c640 = arith.constant 640 : index
    %c0_55 = arith.constant 0 : index
    %47 = vector.load %arg5[%c640, %c0_55] : memref<1152x128xbf16, #tpu.memory_space<vmem>>, vector<128x128xbf16>
    %cst_56 = arith.constant dense<0.000000e+00> : vector<128x128xf32>
    %48 = tpu.matmul %46, %47, %cst_56 {dimension_numbers = #tpu.dot_dimension_numbers<[1], [0], [0], [1], [0, 0, 1, 1], [], []>} : vector<128x128xbf16>, vector<128x128xbf16>, vector<128x128xf32> -> vector<128x128xf32>
    %49 = arith.addf %44, %48 : vector<128x128xf32>
    %c2_57 = arith.constant 2 : index
    %c0_58 = arith.constant 0 : index
    %c0_59 = arith.constant 0 : index
    %50 = vector.load %arg8[%c2_57, %c0_58, %c0_59] : memref<10x18x128xbf16, #tpu.memory_space<vmem>>, vector<8x16x128xbf16>
    %51 = vector.shape_cast %50 : vector<8x16x128xbf16> to vector<128x128xbf16>
    %c768 = arith.constant 768 : index
    %c0_60 = arith.constant 0 : index
    %52 = vector.load %arg5[%c768, %c0_60] : memref<1152x128xbf16, #tpu.memory_space<vmem>>, vector<128x128xbf16>
    %cst_61 = arith.constant dense<0.000000e+00> : vector<128x128xf32>
    %53 = tpu.matmul %51, %52, %cst_61 {dimension_numbers = #tpu.dot_dimension_numbers<[1], [0], [0], [1], [0, 0, 1, 1], [], []>} : vector<128x128xbf16>, vector<128x128xbf16>, vector<128x128xf32> -> vector<128x128xf32>
    %54 = arith.addf %49, %53 : vector<128x128xf32>
    %c2_62 = arith.constant 2 : index
    %c1_63 = arith.constant 1 : index
    %c0_64 = arith.constant 0 : index
    %55 = vector.load %arg8[%c2_62, %c1_63, %c0_64] : memref<10x18x128xbf16, #tpu.memory_space<vmem>>, vector<8x16x128xbf16>
    %56 = vector.shape_cast %55 : vector<8x16x128xbf16> to vector<128x128xbf16>
    %c896 = arith.constant 896 : index
    %c0_65 = arith.constant 0 : index
    %57 = vector.load %arg5[%c896, %c0_65] : memref<1152x128xbf16, #tpu.memory_space<vmem>>, vector<128x128xbf16>
    %cst_66 = arith.constant dense<0.000000e+00> : vector<128x128xf32>
    %58 = tpu.matmul %56, %57, %cst_66 {dimension_numbers = #tpu.dot_dimension_numbers<[1], [0], [0], [1], [0, 0, 1, 1], [], []>} : vector<128x128xbf16>, vector<128x128xbf16>, vector<128x128xf32> -> vector<128x128xf32>
    %59 = arith.addf %54, %58 : vector<128x128xf32>
    %c2_67 = arith.constant 2 : index
    %c2_68 = arith.constant 2 : index
    %c0_69 = arith.constant 0 : index
    %60 = vector.load %arg8[%c2_67, %c2_68, %c0_69] : memref<10x18x128xbf16, #tpu.memory_space<vmem>>, vector<8x16x128xbf16>
    %61 = vector.shape_cast %60 : vector<8x16x128xbf16> to vector<128x128xbf16>
    %c1024 = arith.constant 1024 : index
    %c0_70 = arith.constant 0 : index
    %62 = vector.load %arg5[%c1024, %c0_70] : memref<1152x128xbf16, #tpu.memory_space<vmem>>, vector<128x128xbf16>
    %cst_71 = arith.constant dense<0.000000e+00> : vector<128x128xf32>
    %63 = tpu.matmul %61, %62, %cst_71 {dimension_numbers = #tpu.dot_dimension_numbers<[1], [0], [0], [1], [0, 0, 1, 1], [], []>} : vector<128x128xbf16>, vector<128x128xbf16>, vector<128x128xf32> -> vector<128x128xf32>
    %64 = arith.addf %59, %63 : vector<128x128xf32>
    %65 = vector.shape_cast %64 : vector<128x128xf32> to vector<1x8x16x128xf32>
    %66 = arith.truncf %65 : vector<1x8x16x128xf32> to vector<1x8x16x128xbf16>
    %c0_72 = arith.constant 0 : index
    %c0_73 = arith.constant 0 : index
    %c0_74 = arith.constant 0 : index
    %c0_75 = arith.constant 0 : index
    %67 = vector.load %arg6[%c0_72, %c0_73, %c0_74, %c0_75] : memref<1x8x16x128xbf16, #tpu.memory_space<vmem>>, vector<1x8x16x128xbf16>
    tpu.vector_store %arg6[%c0_72, %c0_73, %c0_74, %c0_75], %66 {strides = array<i32>} : memref<1x8x16x128xbf16, #tpu.memory_space<vmem>>, vector<1x8x16x128xbf16>,
    %cst_76 = arith.constant dense<0.000000e+00> : vector<128xf32>
    %68 = vector.multi_reduction <add>, %64, %cst_76 [0] : vector<128x128xf32> to vector<128xf32>
    %69 = arith.mulf %64, %64 : vector<128x128xf32>
    %cst_77 = arith.constant dense<0.000000e+00> : vector<128xf32>
    %70 = vector.multi_reduction <add>, %69, %cst_77 [0] : vector<128x128xf32> to vector<128xf32>
    %71 = vector.shape_cast %68 : vector<128xf32> to vector<1x128xf32>
    %72 = vector.shape_cast %70 : vector<128xf32> to vector<1x128xf32>
    %73 = tpu.concatenate %71, %72 in 0 : vector<1x128xf32>, vector<1x128xf32> -> vector<2x128xf32>
    %74 = vector.shape_cast %73 : vector<2x128xf32> to vector<1x1x2x128xf32>
    %c0_78 = arith.constant 0 : index
    %c0_79 = arith.constant 0 : index
    %c0_80 = arith.constant 0 : index
    %c0_81 = arith.constant 0 : index
    %75 = vector.load %arg7[%c0_78, %c0_79, %c0_80, %c0_81] : memref<1x1x2x128xf32, #tpu.memory_space<vmem>>, vector<1x1x2x128xf32>
    tpu.vector_store %arg7[%c0_78, %c0_79, %c0_80, %c0_81], %74 {strides = array<i32>} : memref<1x1x2x128xf32, #tpu.memory_space<vmem>>, vector<1x1x2x128xf32>,
    return
  }
  func.func @transform_0(%arg0: i32, %arg1: i32) -> (i32, i32, i32, i32) {
    %c0_i32 = arith.constant 0 : i32
    %c0_i32_0 = arith.constant 0 : i32
    %c0_i32_1 = arith.constant 0 : i32
    return %arg0, %arg1, %c0_i32, %c0_i32_0 : i32, i32, i32, i32
  }
  func.func @transform_1(%arg0: i32, %arg1: i32) -> (i32, i32, i32, i32) {
    %c8_i32 = arith.constant 8 : i32
    %0 = arith.muli %arg1, %c8_i32 : i32
    %c1_i32 = arith.constant 1 : i32
    %1 = arith.subi %0, %c1_i32 : i32
    %c0_i32 = arith.constant 0 : i32
    %2 = arith.maxsi %1, %c0_i32 : i32
    %c0_i32_0 = arith.constant 0 : i32
    %c0_i32_1 = arith.constant 0 : i32
    %c0_i32_2 = arith.constant 0 : i32
    return %arg0, %2, %c0_i32_0, %c0_i32_1 : i32, i32, i32, i32
  }
  func.func @transform_2(%arg0: i32, %arg1: i32) -> (i32, i32, i32, i32) {
    %c8_i32 = arith.constant 8 : i32
    %0 = arith.muli %arg1, %c8_i32 : i32
    %c8_i32_0 = arith.constant 8 : i32
    %1 = arith.addi %0, %c8_i32_0 : i32
    %c15_i32 = arith.constant 15 : i32
    %2 = arith.minsi %1, %c15_i32 : i32
    %c0_i32 = arith.constant 0 : i32
    %c0_i32_1 = arith.constant 0 : i32
    %c0_i32_2 = arith.constant 0 : i32
    return %arg0, %2, %c0_i32, %c0_i32_1 : i32, i32, i32, i32
  }
  func.func @transform_3(%arg0: i32, %arg1: i32) -> (i32, i32) {
    %c0_i32 = arith.constant 0 : i32
    %c0_i32_0 = arith.constant 0 : i32
    %c0_i32_1 = arith.constant 0 : i32
    return %c0_i32, %c0_i32_0 : i32, i32
  }
  func.func @transform_4(%arg0: i32, %arg1: i32) -> (i32, i32, i32, i32) {
    %c0_i32 = arith.constant 0 : i32
    %c0_i32_0 = arith.constant 0 : i32
    %c0_i32_1 = arith.constant 0 : i32
    return %arg0, %arg1, %c0_i32, %c0_i32_0 : i32, i32, i32, i32
  }
  func.func @transform_5(%arg0: i32, %arg1: i32) -> (i32, i32, i32, i32) {
    %c0_i32 = arith.constant 0 : i32
    %c0_i32_0 = arith.constant 0 : i32
    %c0_i32_1 = arith.constant 0 : i32
    return %arg0, %arg1, %c0_i32, %c0_i32_0 : i32, i32, i32, i32
  }
}

module attributes {stable_mosaic.version = 11 : i64} {
  func.func @_bnrelu_conv_kernel(%arg0: i32, %arg1: i32, %arg2: memref<1x8x16x128xbf16, #tpu.memory_space<vmem>>, %arg3: memref<1x1x16x128xbf16, #tpu.memory_space<vmem>>, %arg4: memref<1x1x16x128xbf16, #tpu.memory_space<vmem>>, %arg5: memref<1x128xf32, #tpu.memory_space<vmem>>, %arg6: memref<1x128xf32, #tpu.memory_space<vmem>>, %arg7: memref<1152x128xbf16, #tpu.memory_space<vmem>>, %arg8: memref<1x8x16x128xbf16, #tpu.memory_space<vmem>>, %arg9: memref<1x1x2x128xf32, #tpu.memory_space<vmem>>, %arg10: memref<10x18x128xbf16, #tpu.memory_space<vmem>>) attributes {dimension_semantics = [#tpu.dimension_semantics<parallel>, #tpu.dimension_semantics<parallel>], iteration_bounds = array<i64: 2, 2>, scalar_prefetch = 0 : i64, scratch_operands = 1 : i64, tpu.core_type = #tpu.core_type<tc>, window_params = [{transform_indices = @transform_0, window_bounds = array<i64: 1, 8, 16, 128>}, {transform_indices = @transform_1, window_bounds = array<i64: 1, 1, 16, 128>}, {transform_indices = @transform_2, window_bounds = array<i64: 1, 1, 16, 128>}, {pipeline_mode = #tpu.pipeline_mode<synchronous>, transform_indices = @transform_3, window_bounds = array<i64: 1, 128>}, {pipeline_mode = #tpu.pipeline_mode<synchronous>, transform_indices = @transform_4, window_bounds = array<i64: 1, 128>}, {pipeline_mode = #tpu.pipeline_mode<synchronous>, transform_indices = @transform_5, window_bounds = array<i64: 1152, 128>}, {transform_indices = @transform_6, window_bounds = array<i64: 1, 8, 16, 128>}, {transform_indices = @transform_7, window_bounds = array<i64: 1, 1, 2, 128>}]} {
    %c0 = arith.constant 0 : index
    %c0_0 = arith.constant 0 : index
    %0 = vector.load %arg5[%c0, %c0_0] : memref<1x128xf32, #tpu.memory_space<vmem>>, vector<1x128xf32>
    %c0_1 = arith.constant 0 : index
    %c0_2 = arith.constant 0 : index
    %1 = vector.load %arg6[%c0_1, %c0_2] : memref<1x128xf32, #tpu.memory_space<vmem>>, vector<1x128xf32>
    %c0_3 = arith.constant 0 : index
    %c0_4 = arith.constant 0 : index
    %c0_5 = arith.constant 0 : index
    %c0_6 = arith.constant 0 : index
    %2 = vector.load %arg2[%c0_3, %c0_4, %c0_5, %c0_6] : memref<1x8x16x128xbf16, #tpu.memory_space<vmem>>, vector<1x8x16x128xbf16>
    %3 = vector.shape_cast %2 : vector<1x8x16x128xbf16> to vector<8x16x128xbf16>
    %4 = arith.extf %3 : vector<8x16x128xbf16> to vector<8x16x128xf32>
    %5 = vector.shape_cast %0 : vector<1x128xf32> to vector<1x1x128xf32>
    %6 = vector.broadcast %5 : vector<1x1x128xf32> to vector<8x16x128xf32>
    %7 = arith.mulf %4, %6 : vector<8x16x128xf32>
    %8 = vector.shape_cast %1 : vector<1x128xf32> to vector<1x1x128xf32>
    %9 = vector.broadcast %8 : vector<1x1x128xf32> to vector<8x16x128xf32>
    %10 = arith.addf %7, %9 : vector<8x16x128xf32>
    %cst = arith.constant 0.000000e+00 : f32
    %11 = vector.broadcast %cst : f32 to vector<8x16x128xf32>
    %12 = arith.maximumf %10, %11 : vector<8x16x128xf32>
    %13 = arith.truncf %12 : vector<8x16x128xf32> to vector<8x16x128xbf16>
    %c0_7 = arith.constant 0 : index
    %c0_8 = arith.constant 0 : index
    %c0_9 = arith.constant 0 : index
    %c0_10 = arith.constant 0 : index
    %14 = vector.load %arg3[%c0_7, %c0_8, %c0_9, %c0_10] : memref<1x1x16x128xbf16, #tpu.memory_space<vmem>>, vector<1x1x16x128xbf16>
    %15 = vector.shape_cast %14 : vector<1x1x16x128xbf16> to vector<16x128xbf16>
    %16 = arith.extf %15 : vector<16x128xbf16> to vector<16x128xf32>
    %17 = vector.broadcast %0 : vector<1x128xf32> to vector<16x128xf32>
    %18 = arith.mulf %16, %17 : vector<16x128xf32>
    %19 = vector.broadcast %1 : vector<1x128xf32> to vector<16x128xf32>
    %20 = arith.addf %18, %19 : vector<16x128xf32>
    %cst_11 = arith.constant 0.000000e+00 : f32
    %21 = vector.broadcast %cst_11 : f32 to vector<16x128xf32>
    %22 = arith.maximumf %20, %21 : vector<16x128xf32>
    %23 = arith.truncf %22 : vector<16x128xf32> to vector<16x128xbf16>
    %c0_12 = arith.constant 0 : index
    %c0_13 = arith.constant 0 : index
    %c0_14 = arith.constant 0 : index
    %c0_15 = arith.constant 0 : index
    %24 = vector.load %arg4[%c0_12, %c0_13, %c0_14, %c0_15] : memref<1x1x16x128xbf16, #tpu.memory_space<vmem>>, vector<1x1x16x128xbf16>
    %25 = vector.shape_cast %24 : vector<1x1x16x128xbf16> to vector<16x128xbf16>
    %26 = arith.extf %25 : vector<16x128xbf16> to vector<16x128xf32>
    %27 = vector.broadcast %0 : vector<1x128xf32> to vector<16x128xf32>
    %28 = arith.mulf %26, %27 : vector<16x128xf32>
    %29 = vector.broadcast %1 : vector<1x128xf32> to vector<16x128xf32>
    %30 = arith.addf %28, %29 : vector<16x128xf32>
    %cst_16 = arith.constant 0.000000e+00 : f32
    %31 = vector.broadcast %cst_16 : f32 to vector<16x128xf32>
    %32 = arith.maximumf %30, %31 : vector<16x128xf32>
    %33 = arith.truncf %32 : vector<16x128xf32> to vector<16x128xbf16>
    %cst_17 = arith.constant 0.000000e+00 : bf16
    %34 = vector.broadcast %cst_17 : bf16 to vector<10x1x128xbf16>
    %cst_18 = arith.constant 0.000000e+00 : bf16
    %35 = vector.broadcast %cst_18 : bf16 to vector<1x18x128xbf16>
    %c0_19 = arith.constant 0 : index
    %c0_20 = arith.constant 0 : index
    %c0_21 = arith.constant 0 : index
    %36 = vector.load %arg10[%c0_19, %c0_20, %c0_21] : memref<10x18x128xbf16, #tpu.memory_space<vmem>>, vector<10x1x128xbf16>
    tpu.vector_store %arg10[%c0_19, %c0_20, %c0_21], %34 {strides = array<i32>} : memref<10x18x128xbf16, #tpu.memory_space<vmem>>, vector<10x1x128xbf16>,
    %c0_22 = arith.constant 0 : index
    %c17 = arith.constant 17 : index
    %c0_23 = arith.constant 0 : index
    %37 = vector.load %arg10[%c0_22, %c17, %c0_23] : memref<10x18x128xbf16, #tpu.memory_space<vmem>>, vector<10x1x128xbf16>
    tpu.vector_store %arg10[%c0_22, %c17, %c0_23], %34 {strides = array<i32>} : memref<10x18x128xbf16, #tpu.memory_space<vmem>>, vector<10x1x128xbf16>,
    %c0_24 = arith.constant 0 : index
    %c0_25 = arith.constant 0 : index
    %c0_26 = arith.constant 0 : index
    %38 = vector.load %arg10[%c0_24, %c0_25, %c0_26] : memref<10x18x128xbf16, #tpu.memory_space<vmem>>, vector<1x18x128xbf16>
    tpu.vector_store %arg10[%c0_24, %c0_25, %c0_26], %35 {strides = array<i32>} : memref<10x18x128xbf16, #tpu.memory_space<vmem>>, vector<1x18x128xbf16>,
    %c9 = arith.constant 9 : index
    %c0_27 = arith.constant 0 : index
    %c0_28 = arith.constant 0 : index
    %39 = vector.load %arg10[%c9, %c0_27, %c0_28] : memref<10x18x128xbf16, #tpu.memory_space<vmem>>, vector<1x18x128xbf16>
    tpu.vector_store %arg10[%c9, %c0_27, %c0_28], %35 {strides = array<i32>} : memref<10x18x128xbf16, #tpu.memory_space<vmem>>, vector<1x18x128xbf16>,
    %c0_i32 = arith.constant 0 : i32
    %40 = arith.cmpi sgt, %arg1, %c0_i32 : i32
    %41 = arith.extui %40 : i1 to i32
    %c0_i32_29 = arith.constant 0 : i32
    %42 = arith.cmpi ne, %41, %c0_i32_29 : i32
    scf.if %42 {
      %104 = vector.shape_cast %23 : vector<16x128xbf16> to vector<1x16x128xbf16>
      %c0_89 = arith.constant 0 : index
      %c1_90 = arith.constant 1 : index
      %c0_91 = arith.constant 0 : index
      %105 = vector.load %arg10[%c0_89, %c1_90, %c0_91] : memref<10x18x128xbf16, #tpu.memory_space<vmem>>, vector<1x16x128xbf16>
      tpu.vector_store %arg10[%c0_89, %c1_90, %c0_91], %104 {strides = array<i32>} : memref<10x18x128xbf16, #tpu.memory_space<vmem>>, vector<1x16x128xbf16>,
    } else {
    }
    %c1_i32 = arith.constant 1 : i32
    %43 = arith.cmpi slt, %arg1, %c1_i32 : i32
    %44 = arith.extui %43 : i1 to i32
    %c0_i32_30 = arith.constant 0 : i32
    %45 = arith.cmpi ne, %44, %c0_i32_30 : i32
    scf.if %45 {
      %104 = vector.shape_cast %33 : vector<16x128xbf16> to vector<1x16x128xbf16>
      %c9_89 = arith.constant 9 : index
      %c1_90 = arith.constant 1 : index
      %c0_91 = arith.constant 0 : index
      %105 = vector.load %arg10[%c9_89, %c1_90, %c0_91] : memref<10x18x128xbf16, #tpu.memory_space<vmem>>, vector<1x16x128xbf16>
      tpu.vector_store %arg10[%c9_89, %c1_90, %c0_91], %104 {strides = array<i32>} : memref<10x18x128xbf16, #tpu.memory_space<vmem>>, vector<1x16x128xbf16>,
    } else {
    }
    %c1 = arith.constant 1 : index
    %c1_31 = arith.constant 1 : index
    %c0_32 = arith.constant 0 : index
    %46 = vector.load %arg10[%c1, %c1_31, %c0_32] : memref<10x18x128xbf16, #tpu.memory_space<vmem>>, vector<8x16x128xbf16>
    tpu.vector_store %arg10[%c1, %c1_31, %c0_32], %13 {strides = array<i32>} : memref<10x18x128xbf16, #tpu.memory_space<vmem>>, vector<8x16x128xbf16>,
    %cst_33 = arith.constant 0.000000e+00 : f32
    %47 = vector.broadcast %cst_33 : f32 to vector<128x128xf32>
    %c0_34 = arith.constant 0 : index
    %c0_35 = arith.constant 0 : index
    %c0_36 = arith.constant 0 : index
    %48 = vector.load %arg10[%c0_34, %c0_35, %c0_36] : memref<10x18x128xbf16, #tpu.memory_space<vmem>>, vector<8x16x128xbf16>
    %49 = vector.shape_cast %48 : vector<8x16x128xbf16> to vector<128x128xbf16>
    %c0_37 = arith.constant 0 : index
    %c0_38 = arith.constant 0 : index
    %50 = vector.load %arg7[%c0_37, %c0_38] : memref<1152x128xbf16, #tpu.memory_space<vmem>>, vector<128x128xbf16>
    %cst_39 = arith.constant dense<0.000000e+00> : vector<128x128xf32>
    %51 = tpu.matmul %49, %50, %cst_39 {dimension_numbers = #tpu.dot_dimension_numbers<[1], [0], [0], [1], [0, 0, 1, 1], [], []>} : vector<128x128xbf16>, vector<128x128xbf16>, vector<128x128xf32> -> vector<128x128xf32>
    %52 = arith.addf %47, %51 : vector<128x128xf32>
    %c0_40 = arith.constant 0 : index
    %c1_41 = arith.constant 1 : index
    %c0_42 = arith.constant 0 : index
    %53 = vector.load %arg10[%c0_40, %c1_41, %c0_42] : memref<10x18x128xbf16, #tpu.memory_space<vmem>>, vector<8x16x128xbf16>
    %54 = vector.shape_cast %53 : vector<8x16x128xbf16> to vector<128x128xbf16>
    %c128 = arith.constant 128 : index
    %c0_43 = arith.constant 0 : index
    %55 = vector.load %arg7[%c128, %c0_43] : memref<1152x128xbf16, #tpu.memory_space<vmem>>, vector<128x128xbf16>
    %cst_44 = arith.constant dense<0.000000e+00> : vector<128x128xf32>
    %56 = tpu.matmul %54, %55, %cst_44 {dimension_numbers = #tpu.dot_dimension_numbers<[1], [0], [0], [1], [0, 0, 1, 1], [], []>} : vector<128x128xbf16>, vector<128x128xbf16>, vector<128x128xf32> -> vector<128x128xf32>
    %57 = arith.addf %52, %56 : vector<128x128xf32>
    %c0_45 = arith.constant 0 : index
    %c2 = arith.constant 2 : index
    %c0_46 = arith.constant 0 : index
    %58 = vector.load %arg10[%c0_45, %c2, %c0_46] : memref<10x18x128xbf16, #tpu.memory_space<vmem>>, vector<8x16x128xbf16>
    %59 = vector.shape_cast %58 : vector<8x16x128xbf16> to vector<128x128xbf16>
    %c256 = arith.constant 256 : index
    %c0_47 = arith.constant 0 : index
    %60 = vector.load %arg7[%c256, %c0_47] : memref<1152x128xbf16, #tpu.memory_space<vmem>>, vector<128x128xbf16>
    %cst_48 = arith.constant dense<0.000000e+00> : vector<128x128xf32>
    %61 = tpu.matmul %59, %60, %cst_48 {dimension_numbers = #tpu.dot_dimension_numbers<[1], [0], [0], [1], [0, 0, 1, 1], [], []>} : vector<128x128xbf16>, vector<128x128xbf16>, vector<128x128xf32> -> vector<128x128xf32>
    %62 = arith.addf %57, %61 : vector<128x128xf32>
    %c1_49 = arith.constant 1 : index
    %c0_50 = arith.constant 0 : index
    %c0_51 = arith.constant 0 : index
    %63 = vector.load %arg10[%c1_49, %c0_50, %c0_51] : memref<10x18x128xbf16, #tpu.memory_space<vmem>>, vector<8x16x128xbf16>
    %64 = vector.shape_cast %63 : vector<8x16x128xbf16> to vector<128x128xbf16>
    %c384 = arith.constant 384 : index
    %c0_52 = arith.constant 0 : index
    %65 = vector.load %arg7[%c384, %c0_52] : memref<1152x128xbf16, #tpu.memory_space<vmem>>, vector<128x128xbf16>
    %cst_53 = arith.constant dense<0.000000e+00> : vector<128x128xf32>
    %66 = tpu.matmul %64, %65, %cst_53 {dimension_numbers = #tpu.dot_dimension_numbers<[1], [0], [0], [1], [0, 0, 1, 1], [], []>} : vector<128x128xbf16>, vector<128x128xbf16>, vector<128x128xf32> -> vector<128x128xf32>
    %67 = arith.addf %62, %66 : vector<128x128xf32>
    %c1_54 = arith.constant 1 : index
    %c1_55 = arith.constant 1 : index
    %c0_56 = arith.constant 0 : index
    %68 = vector.load %arg10[%c1_54, %c1_55, %c0_56] : memref<10x18x128xbf16, #tpu.memory_space<vmem>>, vector<8x16x128xbf16>
    %69 = vector.shape_cast %68 : vector<8x16x128xbf16> to vector<128x128xbf16>
    %c512 = arith.constant 512 : index
    %c0_57 = arith.constant 0 : index
    %70 = vector.load %arg7[%c512, %c0_57] : memref<1152x128xbf16, #tpu.memory_space<vmem>>, vector<128x128xbf16>
    %cst_58 = arith.constant dense<0.000000e+00> : vector<128x128xf32>
    %71 = tpu.matmul %69, %70, %cst_58 {dimension_numbers = #tpu.dot_dimension_numbers<[1], [0], [0], [1], [0, 0, 1, 1], [], []>} : vector<128x128xbf16>, vector<128x128xbf16>, vector<128x128xf32> -> vector<128x128xf32>
    %72 = arith.addf %67, %71 : vector<128x128xf32>
    %c1_59 = arith.constant 1 : index
    %c2_60 = arith.constant 2 : index
    %c0_61 = arith.constant 0 : index
    %73 = vector.load %arg10[%c1_59, %c2_60, %c0_61] : memref<10x18x128xbf16, #tpu.memory_space<vmem>>, vector<8x16x128xbf16>
    %74 = vector.shape_cast %73 : vector<8x16x128xbf16> to vector<128x128xbf16>
    %c640 = arith.constant 640 : index
    %c0_62 = arith.constant 0 : index
    %75 = vector.load %arg7[%c640, %c0_62] : memref<1152x128xbf16, #tpu.memory_space<vmem>>, vector<128x128xbf16>
    %cst_63 = arith.constant dense<0.000000e+00> : vector<128x128xf32>
    %76 = tpu.matmul %74, %75, %cst_63 {dimension_numbers = #tpu.dot_dimension_numbers<[1], [0], [0], [1], [0, 0, 1, 1], [], []>} : vector<128x128xbf16>, vector<128x128xbf16>, vector<128x128xf32> -> vector<128x128xf32>
    %77 = arith.addf %72, %76 : vector<128x128xf32>
    %c2_64 = arith.constant 2 : index
    %c0_65 = arith.constant 0 : index
    %c0_66 = arith.constant 0 : index
    %78 = vector.load %arg10[%c2_64, %c0_65, %c0_66] : memref<10x18x128xbf16, #tpu.memory_space<vmem>>, vector<8x16x128xbf16>
    %79 = vector.shape_cast %78 : vector<8x16x128xbf16> to vector<128x128xbf16>
    %c768 = arith.constant 768 : index
    %c0_67 = arith.constant 0 : index
    %80 = vector.load %arg7[%c768, %c0_67] : memref<1152x128xbf16, #tpu.memory_space<vmem>>, vector<128x128xbf16>
    %cst_68 = arith.constant dense<0.000000e+00> : vector<128x128xf32>
    %81 = tpu.matmul %79, %80, %cst_68 {dimension_numbers = #tpu.dot_dimension_numbers<[1], [0], [0], [1], [0, 0, 1, 1], [], []>} : vector<128x128xbf16>, vector<128x128xbf16>, vector<128x128xf32> -> vector<128x128xf32>
    %82 = arith.addf %77, %81 : vector<128x128xf32>
    %c2_69 = arith.constant 2 : index
    %c1_70 = arith.constant 1 : index
    %c0_71 = arith.constant 0 : index
    %83 = vector.load %arg10[%c2_69, %c1_70, %c0_71] : memref<10x18x128xbf16, #tpu.memory_space<vmem>>, vector<8x16x128xbf16>
    %84 = vector.shape_cast %83 : vector<8x16x128xbf16> to vector<128x128xbf16>
    %c896 = arith.constant 896 : index
    %c0_72 = arith.constant 0 : index
    %85 = vector.load %arg7[%c896, %c0_72] : memref<1152x128xbf16, #tpu.memory_space<vmem>>, vector<128x128xbf16>
    %cst_73 = arith.constant dense<0.000000e+00> : vector<128x128xf32>
    %86 = tpu.matmul %84, %85, %cst_73 {dimension_numbers = #tpu.dot_dimension_numbers<[1], [0], [0], [1], [0, 0, 1, 1], [], []>} : vector<128x128xbf16>, vector<128x128xbf16>, vector<128x128xf32> -> vector<128x128xf32>
    %87 = arith.addf %82, %86 : vector<128x128xf32>
    %c2_74 = arith.constant 2 : index
    %c2_75 = arith.constant 2 : index
    %c0_76 = arith.constant 0 : index
    %88 = vector.load %arg10[%c2_74, %c2_75, %c0_76] : memref<10x18x128xbf16, #tpu.memory_space<vmem>>, vector<8x16x128xbf16>
    %89 = vector.shape_cast %88 : vector<8x16x128xbf16> to vector<128x128xbf16>
    %c1024 = arith.constant 1024 : index
    %c0_77 = arith.constant 0 : index
    %90 = vector.load %arg7[%c1024, %c0_77] : memref<1152x128xbf16, #tpu.memory_space<vmem>>, vector<128x128xbf16>
    %cst_78 = arith.constant dense<0.000000e+00> : vector<128x128xf32>
    %91 = tpu.matmul %89, %90, %cst_78 {dimension_numbers = #tpu.dot_dimension_numbers<[1], [0], [0], [1], [0, 0, 1, 1], [], []>} : vector<128x128xbf16>, vector<128x128xbf16>, vector<128x128xf32> -> vector<128x128xf32>
    %92 = arith.addf %87, %91 : vector<128x128xf32>
    %93 = vector.shape_cast %92 : vector<128x128xf32> to vector<1x8x16x128xf32>
    %94 = arith.truncf %93 : vector<1x8x16x128xf32> to vector<1x8x16x128xbf16>
    %c0_79 = arith.constant 0 : index
    %c0_80 = arith.constant 0 : index
    %c0_81 = arith.constant 0 : index
    %c0_82 = arith.constant 0 : index
    %95 = vector.load %arg8[%c0_79, %c0_80, %c0_81, %c0_82] : memref<1x8x16x128xbf16, #tpu.memory_space<vmem>>, vector<1x8x16x128xbf16>
    tpu.vector_store %arg8[%c0_79, %c0_80, %c0_81, %c0_82], %94 {strides = array<i32>} : memref<1x8x16x128xbf16, #tpu.memory_space<vmem>>, vector<1x8x16x128xbf16>,
    %cst_83 = arith.constant dense<0.000000e+00> : vector<128xf32>
    %96 = vector.multi_reduction <add>, %92, %cst_83 [0] : vector<128x128xf32> to vector<128xf32>
    %97 = arith.mulf %92, %92 : vector<128x128xf32>
    %cst_84 = arith.constant dense<0.000000e+00> : vector<128xf32>
    %98 = vector.multi_reduction <add>, %97, %cst_84 [0] : vector<128x128xf32> to vector<128xf32>
    %99 = vector.shape_cast %96 : vector<128xf32> to vector<1x128xf32>
    %100 = vector.shape_cast %98 : vector<128xf32> to vector<1x128xf32>
    %101 = tpu.concatenate %99, %100 in 0 : vector<1x128xf32>, vector<1x128xf32> -> vector<2x128xf32>
    %102 = vector.shape_cast %101 : vector<2x128xf32> to vector<1x1x2x128xf32>
    %c0_85 = arith.constant 0 : index
    %c0_86 = arith.constant 0 : index
    %c0_87 = arith.constant 0 : index
    %c0_88 = arith.constant 0 : index
    %103 = vector.load %arg9[%c0_85, %c0_86, %c0_87, %c0_88] : memref<1x1x2x128xf32, #tpu.memory_space<vmem>>, vector<1x1x2x128xf32>
    tpu.vector_store %arg9[%c0_85, %c0_86, %c0_87, %c0_88], %102 {strides = array<i32>} : memref<1x1x2x128xf32, #tpu.memory_space<vmem>>, vector<1x1x2x128xf32>,
    return
  }
  func.func @transform_0(%arg0: i32, %arg1: i32) -> (i32, i32, i32, i32) {
    %c0_i32 = arith.constant 0 : i32
    %c0_i32_0 = arith.constant 0 : i32
    %c0_i32_1 = arith.constant 0 : i32
    return %arg0, %arg1, %c0_i32, %c0_i32_0 : i32, i32, i32, i32
  }
  func.func @transform_1(%arg0: i32, %arg1: i32) -> (i32, i32, i32, i32) {
    %c8_i32 = arith.constant 8 : i32
    %0 = arith.muli %arg1, %c8_i32 : i32
    %c1_i32 = arith.constant 1 : i32
    %1 = arith.subi %0, %c1_i32 : i32
    %c0_i32 = arith.constant 0 : i32
    %2 = arith.maxsi %1, %c0_i32 : i32
    %c0_i32_0 = arith.constant 0 : i32
    %c0_i32_1 = arith.constant 0 : i32
    %c0_i32_2 = arith.constant 0 : i32
    return %arg0, %2, %c0_i32_0, %c0_i32_1 : i32, i32, i32, i32
  }
  func.func @transform_2(%arg0: i32, %arg1: i32) -> (i32, i32, i32, i32) {
    %c8_i32 = arith.constant 8 : i32
    %0 = arith.muli %arg1, %c8_i32 : i32
    %c8_i32_0 = arith.constant 8 : i32
    %1 = arith.addi %0, %c8_i32_0 : i32
    %c15_i32 = arith.constant 15 : i32
    %2 = arith.minsi %1, %c15_i32 : i32
    %c0_i32 = arith.constant 0 : i32
    %c0_i32_1 = arith.constant 0 : i32
    %c0_i32_2 = arith.constant 0 : i32
    return %arg0, %2, %c0_i32, %c0_i32_1 : i32, i32, i32, i32
  }
  func.func @transform_3(%arg0: i32, %arg1: i32) -> (i32, i32) {
    %c0_i32 = arith.constant 0 : i32
    %c0_i32_0 = arith.constant 0 : i32
    %c0_i32_1 = arith.constant 0 : i32
    return %c0_i32, %c0_i32_0 : i32, i32
  }
  func.func @transform_4(%arg0: i32, %arg1: i32) -> (i32, i32) {
    %c0_i32 = arith.constant 0 : i32
    %c0_i32_0 = arith.constant 0 : i32
    %c0_i32_1 = arith.constant 0 : i32
    return %c0_i32, %c0_i32_0 : i32, i32
  }
  func.func @transform_5(%arg0: i32, %arg1: i32) -> (i32, i32) {
    %c0_i32 = arith.constant 0 : i32
    %c0_i32_0 = arith.constant 0 : i32
    %c0_i32_1 = arith.constant 0 : i32
    return %c0_i32, %c0_i32_0 : i32, i32
  }
  func.func @transform_6(%arg0: i32, %arg1: i32) -> (i32, i32, i32, i32) {
    %c0_i32 = arith.constant 0 : i32
    %c0_i32_0 = arith.constant 0 : i32
    %c0_i32_1 = arith.constant 0 : i32
    return %arg0, %arg1, %c0_i32, %c0_i32_0 : i32, i32, i32, i32
  }
  func.func @transform_7(%arg0: i32, %arg1: i32) -> (i32, i32, i32, i32) {
    %c0_i32 = arith.constant 0 : i32
    %c0_i32_0 = arith.constant 0 : i32
    %c0_i32_1 = arith.constant 0 : i32
    return %arg0, %arg1, %c0_i32, %c0_i32_0 : i32, i32, i32, i32
  }
}

module attributes {stable_mosaic.version = 11 : i64} {
  func.func @_bn_relu_kernel(%arg0: i32, %arg1: i32, %arg2: memref<1x8x16x128xbf16, #tpu.memory_space<vmem>>, %arg3: memref<1x128xf32, #tpu.memory_space<vmem>>, %arg4: memref<1x128xf32, #tpu.memory_space<vmem>>, %arg5: memref<1x8x16x8xf32, #tpu.memory_space<vmem>>) attributes {dimension_semantics = [#tpu.dimension_semantics<parallel>, #tpu.dimension_semantics<parallel>], iteration_bounds = array<i64: 2, 2>, scalar_prefetch = 0 : i64, scratch_operands = 0 : i64, tpu.core_type = #tpu.core_type<tc>, window_params = [{transform_indices = @transform_0, window_bounds = array<i64: 1, 8, 16, 128>}, {pipeline_mode = #tpu.pipeline_mode<synchronous>, transform_indices = @transform_1, window_bounds = array<i64: 1, 128>}, {pipeline_mode = #tpu.pipeline_mode<synchronous>, transform_indices = @transform_2, window_bounds = array<i64: 1, 128>}, {transform_indices = @transform_3, window_bounds = array<i64: 1, 8, 16, 8>}]} {
    %c0 = arith.constant 0 : index
    %c0_0 = arith.constant 0 : index
    %c0_1 = arith.constant 0 : index
    %c0_2 = arith.constant 0 : index
    %0 = vector.load %arg2[%c0, %c0_0, %c0_1, %c0_2] : memref<1x8x16x128xbf16, #tpu.memory_space<vmem>>, vector<1x8x16x128xbf16>
    %1 = arith.extf %0 : vector<1x8x16x128xbf16> to vector<1x8x16x128xf32>
    %c0_3 = arith.constant 0 : index
    %c0_4 = arith.constant 0 : index
    %2 = vector.load %arg3[%c0_3, %c0_4] : memref<1x128xf32, #tpu.memory_space<vmem>>, vector<1x128xf32>
    %3 = vector.shape_cast %2 : vector<1x128xf32> to vector<1x1x1x128xf32>
    %4 = vector.broadcast %3 : vector<1x1x1x128xf32> to vector<1x8x16x128xf32>
    %5 = arith.mulf %1, %4 : vector<1x8x16x128xf32>
    %c0_5 = arith.constant 0 : index
    %c0_6 = arith.constant 0 : index
    %6 = vector.load %arg4[%c0_5, %c0_6] : memref<1x128xf32, #tpu.memory_space<vmem>>, vector<1x128xf32>
    %7 = vector.shape_cast %6 : vector<1x128xf32> to vector<1x1x1x128xf32>
    %8 = vector.broadcast %7 : vector<1x1x1x128xf32> to vector<1x8x16x128xf32>
    %9 = arith.addf %5, %8 : vector<1x8x16x128xf32>
    %10 = vector.extract_strided_slice %9 {offsets = [0, 0, 0, 0], sizes = [1, 8, 16, 8], strides = [1, 1, 1, 1]} : vector<1x8x16x128xf32> to vector<1x8x16x8xf32>
    %cst = arith.constant 0.000000e+00 : f32
    %11 = vector.broadcast %cst : f32 to vector<1x8x16x8xf32>
    %12 = arith.maximumf %10, %11 : vector<1x8x16x8xf32>
    %c0_7 = arith.constant 0 : index
    %c0_8 = arith.constant 0 : index
    %c0_9 = arith.constant 0 : index
    %c0_10 = arith.constant 0 : index
    %13 = vector.load %arg5[%c0_7, %c0_8, %c0_9, %c0_10] : memref<1x8x16x8xf32, #tpu.memory_space<vmem>>, vector<1x8x16x8xf32>
    tpu.vector_store %arg5[%c0_7, %c0_8, %c0_9, %c0_10], %12 {strides = array<i32>} : memref<1x8x16x8xf32, #tpu.memory_space<vmem>>, vector<1x8x16x8xf32>,
    return
  }
  func.func @transform_0(%arg0: i32, %arg1: i32) -> (i32, i32, i32, i32) {
    %c0_i32 = arith.constant 0 : i32
    %c0_i32_0 = arith.constant 0 : i32
    %c0_i32_1 = arith.constant 0 : i32
    return %arg0, %arg1, %c0_i32, %c0_i32_0 : i32, i32, i32, i32
  }
  func.func @transform_1(%arg0: i32, %arg1: i32) -> (i32, i32) {
    %c0_i32 = arith.constant 0 : i32
    %c0_i32_0 = arith.constant 0 : i32
    %c0_i32_1 = arith.constant 0 : i32
    return %c0_i32, %c0_i32_0 : i32, i32
  }
  func.func @transform_2(%arg0: i32, %arg1: i32) -> (i32, i32) {
    %c0_i32 = arith.constant 0 : i32
    %c0_i32_0 = arith.constant 0 : i32
    %c0_i32_1 = arith.constant 0 : i32
    return %c0_i32, %c0_i32_0 : i32, i32
  }
  func.func @transform_3(%arg0: i32, %arg1: i32) -> (i32, i32, i32, i32) {
    %c0_i32 = arith.constant 0 : i32
    %c0_i32_0 = arith.constant 0 : i32
    %c0_i32_1 = arith.constant 0 : i32
    return %arg0, %arg1, %c0_i32, %c0_i32_0 : i32, i32, i32, i32
  }
}

</mosaic_0001>

<bundles_post_ra>
// kernel: double_conv.5
= control target key start
LH: loop header
LB: loop body
LE: loop exit
PB: predicated region body
PF: predicated region fallthrough
CT: control target
= control target key end

     0   :  { %s581_s12 = smov 0   ;;  %s583_s13 = smov 0   ;;  %s722_s0 = inlined_call_operand.vmem [shape: bf16[2,16,16,128], index: 0, kind: input, shape index: {}]   ;;  %s723_s1 = inlined_call_operand.vmem [shape: f32[1,128], index: 1, kind: input, shape index: {}]   ;;  %s724_s2 = inlined_call_operand.vmem [shape: f32[1,128], index: 2, kind: input, shape index: {}]   ;;  %s725_s3 = inlined_call_operand.vmem [shape: f32[2,16,16,8], index: 3, kind: output, shape index: {}]  }
   0x1   :  { %s585_s14 = smov 0   ;;  %s587_s15 = smov 0  }
   0x2   :  { %s589_s16 = smov 0  }
   0x3 LB: > { %s22_s17 = sadd.s32 1, %s551_s14  ;;  %s25_s18 = sadd.s32 1, %s555_s15  ;;  %s559_s16 = sphi %s589_s16, %s13_s16   ;;  %s555_s15 = sphi %s587_s15, %s729_s15   ;;  %s551_s14 = sphi %s585_s14, %s728_s14   ;;  %s547_s13 = sphi %s583_s13, %s727_s13   ;;  %s543_s12 = sphi %s581_s12, %s726_s12  }
   0x4   : > { %p23_p0 = scmp.ge.s32.totalorder %s22_s17, 2  ;;  %p429_p1 = scmp.ge.s32.totalorder %s559_s16, 1 }
   0x5   : > { %p159_p2 = scmp.lt.s32.totalorder %s559_s16, 5 }
   0x6   : > { %s731_s17 = smov (%p23_p0, %s22_s17), 0  ;;  %s733_s18 = smov (!%p23_p0, %s25_s18), %s555_s15 }
   0x7   : > { %p160_p3 = pnand %p429_p1, %p159_p2  ;;  %p27_p4 = scmp.ge.s32.totalorder %s733_s18, 2 }
   0x8   : > { %s430_s19 = sshll.u32 (!%p160_p3), %s543_s12, 3  ;;  %p194_p5 = scmp.lt.s32.totalorder (!%p160_p3), %s547_s13, 1 }
   0x9   : > { %s735_s18 = smov (%p27_p4, %s733_s18), 0  ;;  %163 = sbr.rel (%p160_p3) target bundleno = 40 (0x28), region = 32 }
   0xa   : > { %p196_p6 = scmp.lt.s32.totalorder (!%p160_p3), %s430_s19, 15 }
   0xe   : > { %s737_s13 = smov (!%p194_p5, %s547_s13), 1  ;;  %s739_s19 = smov (!%p196_p6, %s430_s19), 15  ;;  %v622_v0 = vld [vmem:[%s723_s1] ss:$0 sm:$0xff]  ;;  %vm309_vm0 = vcmask 64512  }
   0xf   : > { %s432_s20 = sshll.u32 %s737_s13, 5  ;;  %s431_s21 = sshll.u32 %s739_s19, 1  ;;  %v631_v9 = vld [vmem:[%s724_s2] ss:$0 sm:$0xff] }
  0x10   : > { %s611_s22 = sadd.s32 %s432_s20, %s431_s21 }
  0x11   : > { %s433_s23 = sshll.u32 %s611_s22, 2  ;;  %s437_s4 = sshll.u32 %s611_s22, 3 }
  0x12   : > { %s617_s26 = scalar_lea.vmem %s722_s0, %s433_s23  ;;  %s649_s7 = scalar_lea.vmem %s725_s3, %s437_s4 }
  0x13   : > { %v443_v1 = vld [vmem:[%s617_s26] sm:$0xff]   ;;  %v474_v2 = vld [vmem:[%s617_s26 + $0x8] sm:$0xff]   ;;  %v475_v3 = vld [vmem:[%s617_s26 + $0x10] sm:$0xff]  }
  0x14   : > { %v444_v4 = vunpack.c.l.bf16 %v443_v1  ;;  %v445_v5 = vunpack.c.h.bf16 %v443_v1  ;;  %v448_v6 = vunpack.c.l.bf16 %v474_v2  ;;  %v449_v7 = vunpack.c.h.bf16 %v474_v2  ;;  %v476_v8 = vld [vmem:[%s617_s26 + $0x18] sm:$0xff]   ;;  %v477_v30 = vld [vmem:[%s617_s26 + $0x20] sm:$0xff]   ;;  %v478_v31 = vld [vmem:[%s617_s26 + $0x28] sm:$0xff]  }
  0x15   : > { %v452_v10 = vunpack.c.l.bf16 %v475_v3  ;;  %v453_v11 = vunpack.c.h.bf16 %v475_v3  ;;  %v456_v12 = vunpack.c.l.bf16 %v476_v8  ;;  %v457_v13 = vunpack.c.h.bf16 %v476_v8  ;;  %v479_v36 = vld [vmem:[%s617_s26 + $0x30] sm:$0xff]   ;;  %v480_v37 = vld [vmem:[%s617_s26 + $0x38] sm:$0xff]  }
  0x16   : > { %v254_v14 = vmul.f32 %v444_v4, %v622_v0  ;;  %v255_v15 = vmul.f32 %v445_v5, %v622_v0  ;;  %v256_v16 = vmul.f32 %v448_v6, %v622_v0  ;;  %v257_v17 = vmul.f32 %v449_v7, %v622_v0 }
  0x17   : > { %v258_v18 = vmul.f32 %v452_v10, %v622_v0  ;;  %v259_v19 = vmul.f32 %v453_v11, %v622_v0  ;;  %v260_v20 = vmul.f32 %v456_v12, %v622_v0  ;;  %v261_v21 = vmul.f32 %v457_v13, %v622_v0 }
  0x18   : > { %v277_v22 = vadd.f32 %v631_v9, %v254_v14  ;;  %v278_v23 = vadd.f32 %v631_v9, %v255_v15  ;;  %v279_v24 = vadd.f32 %v631_v9, %v256_v16  ;;  %v280_v25 = vadd.f32 %v631_v9, %v257_v17 }
  0x19   : > { %v281_v26 = vadd.f32 %v631_v9, %v258_v18  ;;  %v282_v27 = vadd.f32 %v631_v9, %v259_v19  ;;  %v283_v28 = vadd.f32 %v631_v9, %v260_v20  ;;  %v284_v29 = vadd.f32 %v631_v9, %v261_v21 }
  0x1a   : > { %v293_v32 = vmax.f32 %v277_v22, 0.0  ;;  %v294_v33 = vmax.f32 %v278_v23, 0.0  ;;  %v295_v34 = vmax.f32 %v279_v24, 0.0  ;;  %v296_v35 = vmax.f32 %v280_v25, 0.0 }
  0x1b   : > { %v297_v38 = vmax.f32 %v281_v26, 0.0  ;;  %v298_v39 = vmax.f32 %v282_v27, 0.0  ;;  %v299_v40 = vmax.f32 %v283_v28, 0.0  ;;  %v300_v41 = vmax.f32 %v284_v29, 0.0 }
  0x1c   : > { %310 = vst.msk [vmem:[%s649_s7] sm:$0xff] %vm309_vm0, %v293_v32  ;;  %311 = vst.msk [vmem:[%s649_s7 + $0x8] sm:$0xff] %vm309_vm0, %v294_v33  ;;  %v460_v42 = vunpack.c.l.bf16 %v477_v30  ;;  %v461_v43 = vunpack.c.h.bf16 %v477_v30  ;;  %v464_v44 = vunpack.c.l.bf16 %v478_v31  ;;  %v465_v45 = vunpack.c.h.bf16 %v478_v31 }
  0x1d   : > { %312 = vst.msk [vmem:[%s649_s7 + $0x10] sm:$0xff] %vm309_vm0, %v295_v34  ;;  %313 = vst.msk [vmem:[%s649_s7 + $0x18] sm:$0xff] %vm309_vm0, %v296_v35  ;;  %v468_v46 = vunpack.c.l.bf16 %v479_v36  ;;  %v469_v47 = vunpack.c.h.bf16 %v479_v36  ;;  %v472_v48 = vunpack.c.l.bf16 %v480_v37  ;;  %v473_v49 = vunpack.c.h.bf16 %v480_v37 }
  0x1e   : > { %314 = vst.msk [vmem:[%s649_s7 + $0x20] sm:$0xff] %vm309_vm0, %v297_v38  ;;  %315 = vst.msk [vmem:[%s649_s7 + $0x28] sm:$0xff] %vm309_vm0, %v298_v39  ;;  %v262_v50 = vmul.f32 %v460_v42, %v622_v0  ;;  %v263_v51 = vmul.f32 %v461_v43, %v622_v0  ;;  %v264_v52 = vmul.f32 %v464_v44, %v622_v0 }
  0x1f   : > { %316 = vst.msk [vmem:[%s649_s7 + $0x30] sm:$0xff] %vm309_vm0, %v299_v40  ;;  %317 = vst.msk [vmem:[%s649_s7 + $0x38] sm:$0xff] %vm309_vm0, %v300_v41  ;;  %v265_v53 = vmul.f32 %v465_v45, %v622_v0  ;;  %v266_v54 = vmul.f32 %v468_v46, %v622_v0  ;;  %v267_v55 = vmul.f32 %v469_v47, %v622_v0 }
  0x20   : > { %v268_v56 = vmul.f32 %v472_v48, %v622_v0  ;;  %v269_v57 = vmul.f32 %v473_v49, %v622_v0  ;;  %v285_v58 = vadd.f32 %v631_v9, %v262_v50  ;;  %v286_v59 = vadd.f32 %v631_v9, %v263_v51 }
  0x21   : > { %v287_v60 = vadd.f32 %v631_v9, %v264_v52  ;;  %v288_v61 = vadd.f32 %v631_v9, %v265_v53  ;;  %v289_v62 = vadd.f32 %v631_v9, %v266_v54  ;;  %v290_v63 = vadd.f32 %v631_v9, %v267_v55 }
  0x22   : > { %v291_v0 = vadd.f32 %v631_v9, %v268_v56  ;;  %v292_v1 = vadd.f32 %v631_v9, %v269_v57  ;;  %v301_v2 = vmax.f32 %v285_v58, 0.0  ;;  %v302_v3 = vmax.f32 %v286_v59, 0.0 }
  0x23   : > { %v303_v4 = vmax.f32 %v287_v60, 0.0  ;;  %v304_v5 = vmax.f32 %v288_v61, 0.0  ;;  %v305_v6 = vmax.f32 %v289_v62, 0.0  ;;  %v306_v7 = vmax.f32 %v290_v63, 0.0 }
  0x24   : > { %v307_v8 = vmax.f32 %v291_v0, 0.0  ;;  %v308_v10 = vmax.f32 %v292_v1, 0.0  ;;  %318 = vst.msk [vmem:[%s649_s7 + $0x40] sm:$0xff] %vm309_vm0, %v301_v2  ;;  %319 = vst.msk [vmem:[%s649_s7 + $0x48] sm:$0xff] %vm309_vm0, %v302_v3 }
  0x25   : > { %320 = vst.msk [vmem:[%s649_s7 + $0x50] sm:$0xff] %vm309_vm0, %v303_v4  ;;  %321 = vst.msk [vmem:[%s649_s7 + $0x58] sm:$0xff] %vm309_vm0, %v304_v5 }
  0x26   : > { %322 = vst.msk [vmem:[%s649_s7 + $0x60] sm:$0xff] %vm309_vm0, %v305_v6  ;;  %323 = vst.msk [vmem:[%s649_s7 + $0x68] sm:$0xff] %vm309_vm0, %v306_v7 }
  0x27   : > { %324 = vst.msk [vmem:[%s649_s7 + $0x70] sm:$0xff] %vm309_vm0, %v307_v8  ;;  %325 = vst.msk [vmem:[%s649_s7 + $0x78] sm:$0xff] %vm309_vm0, %v308_v10 }
  0x28 PF: > { %s13_s16 = sadd.s32 1, %s559_s16   ;;  %s726_s12 = smov %s551_s14 }
  0x29   : > { %p10_p7 = scmp.ge.s32.totalorder %s13_s16, 6   ;;  %s727_s13 = smov %s555_s15 }
  0x2a   : > { %s728_s14 = smov %s731_s17  ;;  %s729_s15 = smov %s735_s18 }
  0x2b   :  { %12 = sbr.rel (!%p10_p7) target bundleno = 3 (0x3), region = 62 }

// kernel: double_conv.3
= control target key start
LH: loop header
LB: loop body
LE: loop exit
PB: predicated region body
PF: predicated region fallthrough
CT: control target
= control target key end

     0   :  { %s4914_s18 = smov 0   ;;  %s4916_s19 = smov 0   ;;  %s6185_s0 = inlined_call_operand.vmem [shape: bf16[2,16,16,128], index: 0, kind: input, shape index: {}, may-alias: {0,1,2}]   ;;  %s6186_s1 = inlined_call_operand.vmem [shape: bf16[2,16,16,128], index: 1, kind: input, shape index: {}, may-alias: {0,1,2}]   ;;  %s6187_s2 = inlined_call_operand.vmem [shape: bf16[2,16,16,128], index: 2, kind: input, shape index: {}, may-alias: {0,1,2}]   ;;  %s6188_s3 = inlined_call_operand.vmem [shape: bf16[1152,128], index: 3, kind: input, shape index: {}]   ;;  %s6189_s4 = inlined_call_operand.vmem [shape: bf16[2,16,16,128], index: 4, kind: output, shape index: {0}]   ;;  %s6190_s5 = inlined_call_operand.vmem [shape: f32[2,2,2,128], index: 5, kind: output, shape index: {1}]  }
   0x1   :  { %s4918_s20 = smov 0   ;;  %s4920_s21 = smov 0  }
   0x2   :  { %s4922_s22 = smov 0  }
   0x3 LB: > { %s25_s23 = sadd.s32 1, %s4873_s20  ;;  %s28_s24 = sadd.s32 1, %s4877_s21  ;;  %s4881_s22 = sphi %s4922_s22, %s16_s22   ;;  %s4877_s21 = sphi %s4920_s21, %s6241_s21   ;;  %s4873_s20 = sphi %s4918_s20, %s6240_s20   ;;  %s4869_s19 = sphi %s4916_s19, %s6239_s19   ;;  %s4865_s18 = sphi %s4914_s18, %s6238_s18  }
   0x4   : > { %p26_p0 = scmp.ge.s32.totalorder %s25_s23, 2  ;;  %p3977_p1 = scmp.ge.s32.totalorder %s4881_s22, 1 }
   0x5   : > { %p278_p2 = scmp.lt.s32.totalorder %s4881_s22, 5 }
   0x6   : > { %s6243_s23 = smov (%p26_p0, %s25_s23), 0  ;;  %s6245_s24 = smov (!%p26_p0, %s28_s24), %s4877_s21 }
   0x7   : > { %p279_p3 = pnand %p3977_p1, %p278_p2  ;;  %p30_p4 = scmp.ge.s32.totalorder %s6245_s24, 2 }
   0x9   : > { %s6247_s24 = smov (%p30_p4, %s6245_s24), 0  ;;  %282 = sbr.rel (%p279_p3) target bundleno = 507 (0x1fb), region = 36 }
   0xe   : > { %s4947_s25 = sshll.u32 %s4865_s18, 3  ;;  %p351_p5 = scmp.lt.s32.totalorder %s4869_s19, 1  ;;  %vm435_vm0 = vcmask 1040384   ;;  %vm436_vm1 = vsmask.f32 256  ;;  %v4883_v3 = vmov 0  }
   0xf   : > { %p353_p6 = scmp.lt.s32.totalorder %s4947_s25, 15  ;;  %s4951_s26 = sadd.s32 4294967295, %s4947_s25  ;;  %vm4955_vm2 = vmand %vm435_vm0, %vm436_vm1  ;;  %v438_v1 = vld [vmem:[#allocation2] sm:$0x1]  ;;  %v465_v2 = vld [vmem:[#allocation2 + $0x6c] sm:$0x1] }
  0x10   : > { %501 = vst [vmem:[#allocation2 + $0x4] sm:$0xf] %v4883_v3  ;;  %505 = vst [vmem:[#allocation2 + $0x70] sm:$0xf] %v4883_v3  ;;  %s6249_s19 = smov (!%p351_p5, %s4869_s19), 1  ;;  %v439_v4 = vsel %vm4955_vm2, 0, %v438_v1 }
  0x11   : > { %v466_v5 = vsel %vm4955_vm2, 0, %v465_v2  ;;  %vm468_vm3 = vsmask.f32 7938  ;;  %s354_s27 = scalar_select %p353_p6, %s4947_s25, 15  ;;  %440 = vst [vmem:[#allocation2] sm:$0x1] %v439_v4 }
  0x12   : > { %467 = vst [vmem:[#allocation2 + $0x6c] sm:$0x1] %v466_v5  ;;  %vm4968_vm4 = vmand %vm435_vm0, %vm468_vm3  ;;  %v470_v7 = vld [vmem:[#allocation2 + $0x8] sm:$0x1]  ;;  %v497_v8 = vld [vmem:[#allocation2 + $0x74] sm:$0x1] }
  0x13   : > { %s4973_s28 = sshll.u32 %s6249_s19, 5  ;;  %p363_p7 = scmp.gt.s32.totalorder %s4951_s26, 0  ;;  %v471_v9 = vsel %vm4968_vm4, 0, %v470_v7  ;;  %v498_v10 = vsel %vm4968_vm4, 0, %v497_v8  ;;  %v441_v11 = vld [vmem:[#allocation2 + $0xc] sm:$0x1] }
  0x14   : > { %500 = vst [vmem:[#allocation2] sm:$0xf] %v4883_v3  ;;  %504 = vst [vmem:[#allocation2 + $0x6c] sm:$0xf] %v4883_v3  ;;  %s3979_s29 = sshll.u32 %s354_s27, 1  ;;  %p3984_p8 = scmp.lt.s32.totalorder %s4951_s26, 15 }
  0x15   : > { %472 = vst [vmem:[#allocation2 + $0x8] sm:$0x1] %v471_v9  ;;  %499 = vst [vmem:[#allocation2 + $0x74] sm:$0x1] %v498_v10  ;;  %v442_v12 = vsel %vm4955_vm2, 0, %v441_v11  ;;  %s357_s30 = sadd.s32 %s4973_s28, %s3979_s29  ;;  %s379_s6 = sadd.s32 8, %s4947_s25 }
  0x16   : > { %v444_v13 = vld [vmem:[#allocation2 + $0x18] sm:$0x1]  ;;  %443 = vst [vmem:[#allocation2 + $0xc] sm:$0x1] %v442_v12  ;;  %v447_v15 = vld [vmem:[#allocation2 + $0x24] sm:$0x1] }
  0x17   : > { %v445_v14 = vsel %vm4955_vm2, 0, %v444_v13  ;;  %v450_v16 = vld [vmem:[#allocation2 + $0x30] sm:$0x1]  ;;  %502 = vst [vmem:[#allocation2 + $0x8] sm:$0x1] %v4883_v3  ;;  %s3981_s7 = sshll.u32 %s357_s30, 2 }
  0x18   : > { %506 = vst [vmem:[#allocation2 + $0x74] sm:$0x1] %v4883_v3  ;;  %p4987_p9 = scmp.lt.s32.totalorder %s379_s6, 15  ;;  %446 = vst [vmem:[#allocation2 + $0x18] sm:$0x1] %v445_v14  ;;  %v448_v17 = vsel %vm4955_vm2, 0, %v447_v15  ;;  %s4998_s11 = scalar_lea.vmem %s6185_s0, %s3981_s7 }
  0x19   : > { %v451_v18 = vsel %vm4955_vm2, 0, %v450_v16  ;;  %v453_v19 = vld [vmem:[#allocation2 + $0x3c] sm:$0x1]  ;;  %s5003_s14 = scalar_lea.vmem %s6189_s4, %s3981_s7  ;;  %449 = vst [vmem:[#allocation2 + $0x24] sm:$0x1] %v448_v17  ;;  %p408_p10 = scmp.lt.s32.totalorder %s4865_s18, 1 }
  0x1a   : > { %452 = vst [vmem:[#allocation2 + $0x30] sm:$0x1] %v451_v18  ;;  %v454_v20 = vsel %vm4955_vm2, 0, %v453_v19  ;;  %v456_v21 = vld [vmem:[#allocation2 + $0x48] sm:$0x1]  ;;  %s364_s15 = scalar_select %p363_p7, %s4951_s26, 0 }
  0x1b   : > { %v459_v22 = vld [vmem:[#allocation2 + $0x54] sm:$0x1]  ;;  %v5011_v23 = vld [vmem:[%s4998_s11] sm:$0xf]  ;;  %v5014_v24 = vld [vmem:[%s4998_s11 + $0x4] sm:$0xf] }
  0x1c   : > { %455 = vst [vmem:[#allocation2 + $0x3c] sm:$0x1] %v454_v20  ;;  %v457_v25 = vsel %vm4955_vm2, 0, %v456_v21  ;;  %s6251_s6 = smov (!%p4987_p9, %s379_s6), 15  ;;  %v5021_v26 = vld [vmem:[%s4998_s11 + $0x8] sm:$0xf] }
  0x1d   : > { %v5024_v27 = vld [vmem:[%s4998_s11 + $0xc] sm:$0xf]  ;;  %458 = vst [vmem:[#allocation2 + $0x48] sm:$0x1] %v457_v25  ;;  %v460_v28 = vsel %vm4955_vm2, 0, %v459_v22  ;;  %s6253_s15 = smov (!%p3984_p8, %s364_s15), 15 }
  0x1e   : > { %v5031_v29 = vld [vmem:[%s4998_s11 + $0x10] sm:$0xf]  ;;  %v5034_v30 = vld [vmem:[%s4998_s11 + $0x14] sm:$0xf]  ;;  %461 = vst [vmem:[#allocation2 + $0x54] sm:$0x1] %v460_v28 }
  0x1f   : > { %s6255_s6 = smov (!%p4987_p9, %s6251_s6), 15  ;;  %v5039_v31 = vld [vmem:[%s4998_s11 + $0x18] sm:$0xf]  ;;  %v5042_v32 = vld [vmem:[%s4998_s11 + $0x1c] sm:$0xf]  ;;  %s3989_s16 = sshll.u32 %s6253_s15, 1 }
  0x20   : > { %v5046_v33 = vld [vmem:[%s4998_s11 + $0x20] sm:$0xf]  ;;  %v5049_v34 = vld [vmem:[%s4998_s11 + $0x24] sm:$0xf]  ;;  %s371_s17 = sadd.s32 %s3989_s16, %s4973_s28  ;;  %s3996_s25 = sshll.u32 %s6255_s6, 1 }
  0x21   : > { %v5053_v35 = vld [vmem:[%s4998_s11 + $0x28] sm:$0xf]  ;;  %v5056_v36 = vld [vmem:[%s4998_s11 + $0x2c] sm:$0xf]  ;;  %s3991_s26 = sshll.u32 %s371_s17, 2  ;;  %s388_s27 = sadd.s32 %s3996_s25, %s4973_s28 }
  0x22   : > { %v5060_v37 = vld [vmem:[%s4998_s11 + $0x30] sm:$0xf]  ;;  %v5063_v38 = vld [vmem:[%s4998_s11 + $0x34] sm:$0xf]  ;;  %s373_s7 = scalar_lea.vmem %s6186_s1, %s3991_s26  ;;  %s3998_s8 = sshll.u32 %s388_s27, 2 }
  0x23   : > { %v5069_v39 = vld [vmem:[%s4998_s11 + $0x38] sm:$0xf]  ;;  %v5072_v40 = vld [vmem:[%s4998_s11 + $0x3c] sm:$0xf]  ;;  %s390_s10 = scalar_lea.vmem %s6187_s2, %s3998_s8  ;;  %s4003_s12 = sshll.u32 %s6249_s19, 1 }
  0x24   : > { %v431_v41 = vld [vmem:[%s373_s7] sm:$0xf]  ;;  %v432_v42 = vld [vmem:[%s373_s7 + $0x4] sm:$0xf]  ;;  %s409_s28 = scalar_select %p408_p10, %s4865_s18, 1 }
  0x25   : > { %v5081_v43 = vld [vmem:[%s390_s10] sm:$0xf]  ;;  %v5083_v44 = vld [vmem:[%s390_s10 + $0x4] sm:$0xf]  ;;  %v473_v46 = vld [vmem:[#allocation2 + $0x14] sm:$0x1] }
  0x26   : > { %v462_v45 = vld [vmem:[#allocation2 + $0x60] sm:$0x1]  ;;  %s411_s13 = sadd.s32 %s4003_s12, %s409_s28  ;;  %v474_v49 = vsel %vm4968_vm4, 0, %v473_v46  ;;  %v479_v51 = vld [vmem:[#allocation2 + $0x2c] sm:$0x1]  ;;  %p4005_p11 = scmp.le.s32.totalorder %s4865_s18, 0 }
  0x27   : > { %v476_v47 = vld [vmem:[#allocation2 + $0x20] sm:$0x1]  ;;  %v463_v48 = vsel %vm4955_vm2, 0, %v462_v45  ;;  %s4004_s19 = sshll.u32 %s411_s13, 1  ;;  %475 = vst [vmem:[#allocation2 + $0x14] sm:$0x1] %v474_v49 }
  0x28   : > { %v477_v50 = vsel %vm4968_vm4, 0, %v476_v47  ;;  %464 = vst [vmem:[#allocation2 + $0x60] sm:$0x1] %v463_v48  ;;  %v480_v52 = vsel %vm4968_vm4, 0, %v479_v51  ;;  %v482_v53 = vld [vmem:[#allocation2 + $0x38] sm:$0x1]  ;;  %s5096_s16 = scalar_lea.vmem %s6190_s5, %s4004_s19 }
  0x29   : > { %478 = vst [vmem:[#allocation2 + $0x20] sm:$0x1] %v477_v50  ;;  %v485_v54 = vld [vmem:[#allocation2 + $0x44] sm:$0x1]  ;;  %481 = vst [vmem:[#allocation2 + $0x2c] sm:$0x1] %v480_v52 }
  0x2a   : > { %v483_v55 = vsel %vm4968_vm4, 0, %v482_v53  ;;  %v486_v56 = vsel %vm4968_vm4, 0, %v485_v54  ;;  %v488_v57 = vld [vmem:[#allocation2 + $0x50] sm:$0x1]  ;;  %v491_v58 = vld [vmem:[#allocation2 + $0x5c] sm:$0x1] }
  0x2b   : > { %484 = vst [vmem:[#allocation2 + $0x38] sm:$0x1] %v483_v55  ;;  %487 = vst [vmem:[#allocation2 + $0x44] sm:$0x1] %v486_v56  ;;  %v489_v59 = vsel %vm4968_vm4, 0, %v488_v57  ;;  %v492_v60 = vsel %vm4968_vm4, 0, %v491_v58 }
  0x2c   : > { %v494_v61 = vld [vmem:[#allocation2 + $0x68] sm:$0x1]  ;;  %490 = vst [vmem:[#allocation2 + $0x50] sm:$0x1] %v489_v59  ;;  %493 = vst [vmem:[#allocation2 + $0x5c] sm:$0x1] %v492_v60 }
  0x2d   : > { %v495_v62 = vsel %vm4968_vm4, 0, %v494_v61  ;;  %510 = sbr.rel (%p4005_p11) target bundleno = 59 (0x3b), region = 40 }
  0x2e   : > { %496 = vst [vmem:[#allocation2 + $0x68] sm:$0x1] %v495_v62 }
  0x32   : > { %v514_v63 = vshrl.u32 %v431_v41, 16  ;;  %v517_v1 = vshll.u32 %v431_v41, 16  ;;  %vm533_vm5 = vcmask 1043456   ;;  %v522_v2 = vshrl.u32 %v432_v42, 16  ;;  %v535_v7 = vld [vmem:[#allocation2] sm:$0xf] }
  0x33   : > { %vm511_vm6 = vsmask.f32 4368  ;;  %v525_v3 = vshll.u32 %v432_v42, 16  ;;  %vm534_vm7 = vmand %vm533_vm5, %vm468_vm3  ;;  %v539_v8 = vld [vmem:[#allocation2 + $0x8] sm:$0x1] }
  0x34   : > { %v516_v4 = vrot.slane %v514_v63, 7  ;;  %v524_v5 = vrot.slane %v522_v2, 7  ;;  %vm512_vm8 = vmor %vm436_vm1, %vm511_vm6 }
  0x36   : > { %v519_v6 = vor.u32 %v517_v1, %v516_v4  ;;  %v520_v9 = vrot.slane %v516_v4, 4  ;;  %v527_v10 = vor.u32 %v525_v3, %v524_v5  ;;  %v529_v11 = vrot.slane %v524_v5, 4 }
  0x38   : > { %v536_v12 = vsel %vm534_vm7, %v519_v6, %v535_v7  ;;  %v528_v13 = vsel %vm512_vm8, %v520_v9, %v527_v10  ;;  %v540_v14 = vsel %vm4955_vm2, %v529_v11, %v539_v8 }
  0x39   : > { %537 = vst [vmem:[#allocation2] sm:$0xf] %v536_v12  ;;  %538 = vst [vmem:[#allocation2 + $0x4] sm:$0xf] %v528_v13 }
  0x3a   : > { %541 = vst [vmem:[#allocation2 + $0x8] sm:$0x1] %v540_v14 }
  0x3b PF: > { %p4006_p12 = scmp.ge.s32.totalorder %s4865_s18, 1 }
  0x3d   : > { %545 = sbr.rel (%p4006_p12) target bundleno = 75 (0x4b), region = 44 }
  0x42   : > { %v549_v15 = vshrl.u32 %v5081_v43, 16  ;;  %v552_v16 = vshll.u32 %v5081_v43, 16  ;;  %vm568_vm9 = vcmask 1043456   ;;  %v557_v17 = vshrl.u32 %v5083_v44, 16  ;;  %v570_v21 = vld [vmem:[#allocation2 + $0x6c] sm:$0xf] }
  0x43   : > { %vm546_vm10 = vsmask.f32 4368  ;;  %v560_v18 = vshll.u32 %v5083_v44, 16  ;;  %vm569_vm11 = vmand %vm568_vm9, %vm468_vm3  ;;  %v574_v22 = vld [vmem:[#allocation2 + $0x74] sm:$0x1] }
  0x44   : > { %v551_v19 = vrot.slane %v549_v15, 7  ;;  %v559_v20 = vrot.slane %v557_v17, 7  ;;  %vm547_vm12 = vmor %vm436_vm1, %vm546_vm10 }
  0x46   : > { %v554_v25 = vor.u32 %v552_v16, %v551_v19  ;;  %v555_v28 = vrot.slane %v551_v19, 4  ;;  %v562_v41 = vor.u32 %v560_v18, %v559_v20  ;;  %v564_v42 = vrot.slane %v559_v20, 4 }
  0x48   : > { %v571_v45 = vsel %vm569_vm11, %v554_v25, %v570_v21  ;;  %v563_v43 = vsel %vm547_vm12, %v555_v28, %v562_v41  ;;  %v575_v46 = vsel %vm4955_vm2, %v564_v42, %v574_v22 }
  0x49   : > { %572 = vst [vmem:[#allocation2 + $0x6c] sm:$0xf] %v571_v45  ;;  %573 = vst [vmem:[#allocation2 + $0x70] sm:$0xf] %v563_v43 }
  0x4a   : > { %576 = vst [vmem:[#allocation2 + $0x74] sm:$0x1] %v575_v46 }
  0x4b PF: > { %v4747_v44 = vld [vmem:[%s6188_s3 + $0x78] sm:$0xff]   ;;  %v580_v47 = vshrl.u32 %v5011_v23, 16  ;;  %v4749_v49 = vld [vmem:[%s6188_s3 + $0x70] sm:$0xff]   ;;  %v4751_v51 = vld [vmem:[%s6188_s3 + $0x68] sm:$0xff]   ;;  %v588_v54 = vshrl.u32 %v5014_v24, 16  ;;  %v583_v55 = vshll.u32 %v5011_v23, 16 }
  0x4c   : > { %v4748_v48 = vld [vmem:[%s6188_s3 + $0x38] sm:$0xff]   ;;  %4402 = vmatprep.subr.bf16.mxu0 %v4747_v44  ;;  %v4750_v50 = vld [vmem:[%s6188_s3 + $0x30] sm:$0xff]   ;;  %v4752_v53 = vld [vmem:[%s6188_s3 + $0x28] sm:$0xff]   ;;  %v597_v59 = vshrl.u32 %v5021_v26, 16  ;;  %v591_v61 = vshll.u32 %v5014_v24, 16  ;;  %v600_v62 = vshll.u32 %v5021_v26, 16 }
  0x4d   : > { %4434 = vmatprep.subr.bf16.mxu1 %v4748_v48  ;;  %4403 = vmatpush3.bf16.msra.mxu0 %v4747_v44  ;;  %v5138_v52 = vrot.slane %v580_v47, 7  ;;  %v4753_v56 = vld [vmem:[%s6188_s3 + $0x60] sm:$0xff]   ;;  %v590_v60 = vrot.slane %v588_v54, 7  ;;  %v4755_v23 = vld [vmem:[%s6188_s3 + $0x58] sm:$0xff]   ;;  %v605_v1 = vshrl.u32 %v5024_v27, 16  ;;  %v4757_v24 = vld [vmem:[%s6188_s3 + $0x50] sm:$0xff]  }
  0x4e   : > { %4435 = vmatpush3.bf16.msra.mxu1 %v4748_v48  ;;  %4404 = vmatprep.subr.bf16.mxu0 %v4749_v49  ;;  %v4754_v58 = vld [vmem:[%s6188_s3 + $0x20] sm:$0xff]   ;;  %v5158_v63 = vrot.slane %v597_v59, 7  ;;  %v4756_v2 = vld [vmem:[%s6188_s3 + $0x18] sm:$0xff]   ;;  %vm740_vm13 = vcmask 1043456   ;;  %v4758_v26 = vld [vmem:[%s6188_s3 + $0x10] sm:$0xff]   ;;  %v608_v19 = vshll.u32 %v5024_v27, 16 }
  0x4f   : > { %4436 = vmatprep.subr.bf16.mxu1 %v4750_v50  ;;  %v586_v57 = vrot.slane %v5138_v52, 4  ;;  %v595_v3 = vrot.slane %v590_v60, 4  ;;  %v5170_v4 = vrot.slane %v605_v1, 7  ;;  %v798_v5 = vld [vmem:[#allocation2] sm:$0xf]  ;;  %v585_v6 = vor.u32 %v583_v55, %v5138_v52  ;;  %vm5180_vm4 = vmand %vm740_vm13, %vm468_vm3  ;;  %v4759_v14 = vld [vmem:[%s6188_s3 + $0x48] sm:$0xff]  }
  0x50   : > { %v5172_v7 = vld [vmem:[#allocation2 + $0x4] sm:$0xf]  ;;  %v5174_v8 = vld [vmem:[#allocation2 + $0x8] sm:$0x1]  ;;  %v593_v9 = vor.u32 %v591_v61, %v590_v60  ;;  %v602_v10 = vor.u32 %v600_v62, %v5158_v63  ;;  %vm838_vm14 = vsmask.f32 3328 }
  0x51   : > { %4405 = vmatpush3.bf16.msra.mxu0 %v4749_v49  ;;  %vm839_vm15 = vsmask.f32 7440  ;;  %v842_v11 = vshrl.u32 %v798_v5, 16  ;;  %v845_v12 = vshll.u32 %v798_v5, 16  ;;  %v851_v15 = vshll.u32 %v5172_v7, 16  ;;  %v4760_v28 = vld [vmem:[%s6188_s3 + $0x8] sm:$0xff]  }
  0x52   : > { %4437 = vmatpush3.bf16.msra.mxu1 %v4750_v50  ;;  %4406 = vmatprep.subr.bf16.mxu0 %v4751_v51  ;;  %v855_v16 = vshrl.u32 %v5172_v7, 16  ;;  %v861_v17 = vshll.u32 %v5174_v8, 16  ;;  %v742_v18 = vld [vmem:[#allocation2 + $0xc] sm:$0xf]  ;;  %v4023_v22 = vcombine.low %v798_v5, %v5172_v7  ;;  %vm577_vm3 = vsmask.f32 4368 }
  0x53   : > { %4438 = vmatprep.subr.bf16.mxu1 %v4752_v53  ;;  %v844_v20 = vrot.slane %v842_v11, 4  ;;  %v847_v21 = vrot.slane %v845_v12, 5  ;;  %v746_v25 = vld [vmem:[#allocation2 + $0x14] sm:$0x1]  ;;  %v853_v41 = vrot.slane %v851_v15, 5  ;;  %vm5196_vm5 = vmor %vm436_vm1, %vm577_vm3  ;;  %v743_v27 = vsel %vm5180_vm4, %v585_v6, %v742_v18  ;;  %v4761_v54 = vld [vmem:[%s6188_s3 + $0x40] sm:$0xff]  }
  0x54   : > { %v857_v42 = vrot.slane %v855_v16, 4  ;;  %v603_v43 = vrot.slane %v5158_v63, 4  ;;  %4450 = vmatprep.mubr.bf16.mxu1 %v4023_v22  ;;  %v594_v44 = vsel %vm5196_vm5, %v586_v57, %v593_v9  ;;  %744 = vst [vmem:[#allocation2 + $0xc] sm:$0xf] %v743_v27  ;;  %v747_v47 = vsel %vm4955_vm2, %v595_v3, %v746_v25  ;;  %vm5209_vm1 = vmor %vm838_vm14, %vm839_vm15  ;;  %v749_v57 = vld [vmem:[#allocation2 + $0x18] sm:$0xf] }
  0x55   : > { %4407 = vmatpush3.bf16.msra.mxu0 %v4751_v51  ;;  %v848_v46 = vor.u32 %v847_v21, %v844_v20  ;;  %v863_v50 = vrot.slane %v861_v17, 5  ;;  %745 = vst [vmem:[#allocation2 + $0x10] sm:$0xf] %v594_v44  ;;  %748 = vst [vmem:[#allocation2 + $0x14] sm:$0x1] %v747_v47  ;;  %v610_v51 = vor.u32 %v608_v19, %v5170_v4  ;;  %v612_v52 = vrot.slane %v5170_v4, 4 }
  0x56   : > { %4439 = vmatpush3.bf16.msra.mxu1 %v4752_v53  ;;  %4408 = vmatprep.subr.bf16.mxu0 %v4753_v56  ;;  %v858_v49 = vor.u32 %v857_v42, %v853_v41  ;;  %v4762_v59 = vld [vmem:[%s6188_s3] sm:$0xff]   ;;  %v750_v61 = vsel %vm5180_vm4, %v602_v10, %v749_v57  ;;  %v614_v62 = vshrl.u32 %v5031_v29, 16  ;;  %v5235_v1 = vld [vmem:[%s6188_s3 + $0xb8] sm:$0xff]   ;;  %v622_v3 = vshrl.u32 %v5034_v30, 16  ;;  %v4768_v42 = vld [vmem:[%s6188_s3 + $0xf0] sm:$0xff]  }
  0x57   : > { %4440 = vmatprep.subr.bf16.mxu1 %v4754_v58  ;;  %v849_v53 = vrot.slane %v848_v46, 4  ;;  %751 = vst [vmem:[#allocation2 + $0x18] sm:$0xf] %v750_v61  ;;  %v625_v9 = vshll.u32 %v5034_v30, 16  ;;  %v756_v10 = vld [vmem:[#allocation2 + $0x24] sm:$0xf] }
  0x58   : > { %v859_v55 = vrot.slane %v858_v49, 4  ;;  %v616_v4 = vrot.slane %v614_v62, 7  ;;  %v5242_v6 = vrot.slane %v622_v3, 7  ;;  %v1451_v16 = vrot.slane %v5174_v8, 5  ;;  %v4802_v13 = vld [vmem:[%s6188_s3 + $0x158] sm:$0xff]  }
  0x59   : > { %4409 = vmatpush3.bf16.msra.mxu0 %v4753_v56  ;;  %v611_v56 = vsel %vm5196_vm5, %v603_v43, %v610_v51  ;;  %v854_v60 = vsel %vm5209_vm1, %v849_v53, %v853_v41  ;;  %vm1443_vm6 = vcmask 1042432   ;;  %vm1444_vm7 = vcmask 1046532  }
  0x5a   : > { %4441 = vmatpush3.bf16.msra.mxu1 %v4754_v58  ;;  %4410 = vmatprep.subr.bf16.mxu0 %v4755_v23  ;;  %v753_v58 = vld [vmem:[#allocation2 + $0x20] sm:$0x1]  ;;  %752 = vst [vmem:[#allocation2 + $0x1c] sm:$0xf] %v611_v56  ;;  %v864_v63 = vsel %vm5209_vm1, %v859_v55, %v863_v50  ;;  %v620_v22 = vrot.slane %v616_v4, 4  ;;  %v627_v43 = vor.u32 %v625_v9, %v5242_v6  ;;  %v4767_v9 = vld [vmem:[%s6188_s3 + $0xb0] sm:$0xff]   ;;  %vm5466_vm8 = vmor %vm1443_vm6, %vm1444_vm7 }
  0x5b   : > { %4442 = vmatprep.subr.bf16.mxu1 %v4756_v2  ;;  %v800_v5 = vld [vmem:[#allocation2 + $0xc] sm:$0xf] }
  0x5c   : > { %v5247_v11 = vld [vmem:[#allocation2 + $0x14] sm:$0x1]  ;;  %v866_v12 = vshrl.u32 %v800_v5, 16 }
  0x5d   : > { %4411 = vmatpush3.bf16.msra.mxu0 %v4755_v23  ;;  %v754_v23 = vsel %vm4955_vm2, %v612_v52, %v753_v58  ;;  %v885_v19 = vshll.u32 %v5247_v11, 16 }
  0x5e   : > { %4443 = vmatpush3.bf16.msra.mxu1 %v4756_v2  ;;  %4412 = vmatprep.subr.bf16.mxu0 %v4757_v24  ;;  %755 = vst [vmem:[#allocation2 + $0x20] sm:$0x1] %v754_v23  ;;  %v617_v2 = vshll.u32 %v5031_v29, 16  ;;  %v5245_v29 = vld [vmem:[#allocation2 + $0x10] sm:$0xf]  ;;  %v868_v30 = vrot.slane %v866_v12, 4 }
  0x5f   : > { %4444 = vmatprep.subr.bf16.mxu1 %v4758_v26  ;;  %v875_v17 = vshll.u32 %v5245_v29, 16  ;;  %v879_v18 = vshrl.u32 %v5245_v29, 16  ;;  %v4024_v21 = vcombine.low %v800_v5, %v5245_v29  ;;  %v887_v41 = vrot.slane %v885_v19, 5  ;;  %v802_v44 = vld [vmem:[#allocation2 + $0x18] sm:$0xf] }
  0x60   : > { %v619_v15 = vor.u32 %v617_v2, %v616_v4  ;;  %v890_v53 = vshrl.u32 %v802_v44, 16  ;;  %v629_v4 = vrot.slane %v5242_v6, 4  ;;  %v631_v12 = vshrl.u32 %v5039_v31, 16  ;;  %v763_v19 = vld [vmem:[#allocation2 + $0x30] sm:$0xf] }
  0x61   : > { %4413 = vmatpush3.bf16.msra.mxu0 %v4757_v24  ;;  %v4007_v24 = vcombine.low %v854_v60, %v864_v63  ;;  %v877_v25 = vrot.slane %v875_v17, 5  ;;  %v5258_v27 = vld [vmem:[#allocation2 + $0x1c] sm:$0xf]  ;;  %v760_v63 = vld [vmem:[#allocation2 + $0x2c] sm:$0x1] }
  0x62   : > { %4445 = vmatpush3.bf16.msra.mxu1 %v4758_v26  ;;  %4414 = vmatprep.subr.bf16.mxu0 %v4759_v14  ;;  %v4766_v26 = vld [vmem:[%s6188_s3 + $0xf8] sm:$0xff]   ;;  %v899_v49 = vshll.u32 %v5258_v27, 16  ;;  %v903_v50 = vshrl.u32 %v5258_v27, 16  ;;  %v757_v51 = vsel %vm5180_vm4, %v619_v15, %v756_v10  ;;  %v892_v61 = vrot.slane %v890_v53, 4 }
  0x63   : > { %4446 = vmatprep.subr.bf16.mxu1 %v4760_v28  ;;  %4418 = vmatprep.mubr.bf16.mxu0 %v4007_v24  ;;  %758 = vst [vmem:[#allocation2 + $0x24] sm:$0xf] %v757_v51  ;;  %v628_v24 = vsel %vm5196_vm5, %v620_v22, %v627_v43  ;;  %v761_v6 = vsel %vm4955_vm2, %v629_v4, %v760_v63  ;;  %v767_v22 = vld [vmem:[#allocation2 + $0x38] sm:$0x1] }
  0x64   : > { %v901_v57 = vrot.slane %v899_v49, 5  ;;  %v905_v58 = vrot.slane %v903_v50, 4  ;;  %759 = vst [vmem:[#allocation2 + $0x28] sm:$0xf] %v628_v24  ;;  %762 = vst [vmem:[#allocation2 + $0x2c] sm:$0x1] %v761_v6 }
  0x65   : > { %4415 = vmatpush3.bf16.msra.mxu0 %v4759_v14  ;;  %v869_v14 = vshll.u32 %v800_v5, 16  ;;  %v5261_v47 = vld [vmem:[#allocation2 + $0x20] sm:$0x1]  ;;  %v4772_v5 = vld [vmem:[%s6188_s3 + $0xe8] sm:$0xff]   ;;  %v4778_v63 = vld [vmem:[%s6188_s3 + $0xd8] sm:$0xff]  }
  0x66   : > { %4447 = vmatpush3.bf16.msra.mxu1 %v4760_v28  ;;  %4416 = vmatprep.subr.bf16.mxu0 %v4761_v54  ;;  %v881_v28 = vrot.slane %v879_v18, 4  ;;  %v909_v55 = vshll.u32 %v5261_v47, 16  ;;  %v906_v3 = vor.u32 %v905_v58, %v901_v57  ;;  %v639_v18 = vshrl.u32 %v5042_v32, 16 }
  0x67   : > { %4448 = vmatprep.subr.bf16.mxu1 %v4762_v59  ;;  %v871_v20 = vrot.slane %v869_v14, 5  ;;  %v634_v14 = vshll.u32 %v5039_v31, 16 }
  0x68   : > { %v882_v52 = vor.u32 %v881_v28, %v877_v25  ;;  %v911_v62 = vrot.slane %v909_v55, 5  ;;  %v907_v17 = vrot.slane %v906_v3, 4  ;;  %v641_v43 = vrot.slane %v639_v18, 7 }
  0x69   : > { %4417 = vmatpush3.bf16.msra.mxu0 %v4761_v54  ;;  %v872_v46 = vor.u32 %v871_v20, %v868_v30  ;;  %v893_v54 = vshll.u32 %v802_v44, 16  ;;  %v633_v20 = vrot.slane %v631_v12, 7 }
  0x6a   : > { %4449 = vmatpush3.bf16.msra.mxu1 %v4762_v59  ;;  %4466 = vmatprep.subr.bf16.mxu0 %v5235_v1  ;;  %v4025_v59 = vcombine.low %v802_v44, %v5258_v27  ;;  %v883_v60 = vrot.slane %v882_v52, 4  ;;  %v912_v31 = vsel %vm5209_vm1, %v907_v17, %v911_v62  ;;  %v804_v28 = vld [vmem:[#allocation2 + $0x24] sm:$0xf]  ;;  %v646_v55 = vrot.slane %v641_v43, 4 }
  0x6b   : > { %4498 = vmatprep.subr.bf16.mxu1 %v4766_v26  ;;  %v873_v56 = vrot.slane %v872_v46, 4  ;;  %v895_v23 = vrot.slane %v893_v54, 5  ;;  %v656_v46 = vshrl.u32 %v5049_v34, 16  ;;  %v914_v49 = vshrl.u32 %v804_v28, 16 }
  0x6c   : > { %v917_v50 = vshll.u32 %v804_v28, 16  ;;  %v636_v51 = vor.u32 %v634_v14, %v633_v20  ;;  %v637_v53 = vrot.slane %v633_v20, 4  ;;  %v659_v62 = vshll.u32 %v5049_v34, 16 }
  0x6d   : > { %4451 = vmatmul.mubr.bf16.vlgmr.msra.gmra.mxu1 %v4024_v21  ;;  %v878_v2 = vsel %vm5209_vm1, %v873_v56, %v877_v25  ;;  %v896_v10 = vor.u32 %v895_v23, %v892_v61  ;;  %v642_v21 = vshll.u32 %v5042_v32, 16  ;;  %v648_v25 = vshrl.u32 %v5046_v33, 16 }
  0x6e   : > { %4499 = vmatpush3.bf16.msra.mxu1 %v4766_v26  ;;  %4454 = vmatprep.mubr.bf16.mxu1 %v4025_v59  ;;  %v888_v26 = vsel %vm5209_vm1, %v883_v60, %v887_v41  ;;  %v4771_v41 = vld [vmem:[%s6188_s3 + $0xa8] sm:$0xff]   ;;  %v651_v32 = vshll.u32 %v5046_v33, 16  ;;  %v916_v56 = vrot.slane %v914_v49, 4  ;;  %v919_v58 = vrot.slane %v917_v50, 5 }
  0x6f   : > { %4500 = vmatprep.subr.bf16.mxu1 %v4768_v42  ;;  %v4008_v15 = vcombine.low %v878_v2, %v888_v26  ;;  %v897_v30 = vrot.slane %v896_v10, 4  ;;  %v644_v54 = vor.u32 %v642_v21, %v641_v43  ;;  %v764_v33 = vsel %vm5180_vm4, %v636_v51, %v763_v19  ;;  %v774_v26 = vld [vmem:[#allocation2 + $0x44] sm:$0x1]  ;;  %v5322_v10 = vld [vmem:[#allocation2 + $0x2c] sm:$0x1]  ;;  %v4777_v21 = vld [vmem:[%s6188_s3 + $0x98] sm:$0xff]  }
  0x70   : > { %v650_v59 = vrot.slane %v648_v25, 7  ;;  %765 = vst [vmem:[#allocation2 + $0x30] sm:$0xf] %v764_v33  ;;  %v768_v61 = vsel %vm4955_vm2, %v646_v55, %v767_v22  ;;  %v658_v23 = vrot.slane %v656_v46, 7  ;;  %v920_v2 = vor.u32 %v919_v58, %v916_v56  ;;  %v4780_v22 = vld [vmem:[%s6188_s3 + $0xd0] sm:$0xff]  }
  0x71   : > { %4419 = vmatmul.mubr.bf16.vlgmr.msra.gmra.mxu0 %v4008_v15  ;;  %v902_v44 = vsel %vm5209_vm1, %v897_v30, %v901_v57  ;;  %v5309_v57 = vld [vmem:[%s6188_s3 + $0xa0] sm:$0xff]   ;;  %v645_v60 = vsel %vm5196_vm5, %v637_v53, %v644_v54  ;;  %769 = vst [vmem:[#allocation2 + $0x38] sm:$0x1] %v768_v61  ;;  %v933_v18 = vshll.u32 %v5322_v10, 16  ;;  %v665_v25 = vshrl.u32 %v5053_v35, 16 }
  0x72   : > { %4501 = vmatpush3.bf16.msra.mxu1 %v4768_v42  ;;  %v4774_v42 = vld [vmem:[%s6188_s3 + $0xe0] sm:$0xff]   ;;  %4467 = vmatpush3.bf16.msra.mxu0 %v5235_v1  ;;  %v4009_v52 = vcombine.low %v902_v44, %v912_v31  ;;  %v5304_v1 = vld [vmem:[#allocation2 + $0x28] sm:$0xf]  ;;  %766 = vst [vmem:[#allocation2 + $0x34] sm:$0xf] %v645_v60  ;;  %v653_v34 = vor.u32 %v651_v32, %v650_v59  ;;  %v654_v12 = vrot.slane %v650_v59, 4 }
  0x73   : > { %4502 = vmatprep.subr.bf16.mxu1 %v4772_v5  ;;  %4468 = vmatprep.subr.bf16.mxu0 %v4767_v9  ;;  %v923_v3 = vshll.u32 %v5304_v1, 16  ;;  %v927_v24 = vshrl.u32 %v5304_v1, 16  ;;  %v4026_v4 = vcombine.low %v804_v28, %v5304_v1  ;;  %v661_v14 = vor.u32 %v659_v62, %v658_v23 }
  0x74   : > { %4422 = vmatprep.mubr.bf16.mxu0 %v4009_v52  ;;  %v663_v15 = vrot.slane %v658_v23, 4  ;;  %v921_v17 = vrot.slane %v920_v2, 4  ;;  %v668_v43 = vshll.u32 %v5053_v35, 16  ;;  %v5342_v32 = vrot.slane %v665_v25, 7  ;;  %v777_v52 = vld [vmem:[#allocation2 + $0x48] sm:$0xf] }
  0x75   : > { %v929_v6 = vrot.slane %v927_v24, 4  ;;  %4455 = vmatmul.mubr.bf16.gmra.mxu1 %v4026_v4  ;;  %v662_v19 = vsel %vm5196_vm5, %v654_v12, %v661_v14  ;;  %v673_v46 = vshrl.u32 %v5056_v36, 16  ;;  %v676_v44 = vshll.u32 %v5056_v36, 16 }
  0x76   : > { %4503 = vmatpush3.bf16.msra.mxu1 %v4772_v5  ;;  %4469 = vmatpush3.bf16.msra.mxu0 %v4767_v9  ;;  %v770_v5 = vld [vmem:[#allocation2 + $0x3c] sm:$0xf]  ;;  %v925_v9 = vrot.slane %v923_v3, 5  ;;  %v775_v20 = vsel %vm4955_vm2, %v663_v15, %v774_v26  ;;  %773 = vst [vmem:[#allocation2 + $0x40] sm:$0xf] %v662_v19  ;;  %v682_v49 = vshrl.u32 %v5060_v37, 16  ;;  %v670_v33 = vor.u32 %v668_v43, %v5342_v32 }
  0x77   : > { %4504 = vmatprep.subr.bf16.mxu1 %v4774_v42  ;;  %4470 = vmatprep.subr.bf16.mxu0 %v4771_v41  ;;  %v771_v30 = vsel %vm5180_vm4, %v653_v34, %v770_v5  ;;  %776 = vst [vmem:[#allocation2 + $0x44] sm:$0x1] %v775_v20  ;;  %v806_v51 = vld [vmem:[#allocation2 + $0x30] sm:$0xf]  ;;  %v690_v53 = vshrl.u32 %v5063_v38, 16  ;;  %v693_v54 = vshll.u32 %v5063_v38, 16 }
  0x78   : > { %v926_v31 = vsel %vm5209_vm1, %v921_v17, %v925_v9  ;;  %v930_v28 = vor.u32 %v929_v6, %v925_v9  ;;  %772 = vst [vmem:[#allocation2 + $0x3c] sm:$0xf] %v771_v30  ;;  %v5352_v55 = vld [vmem:[#allocation2 + $0x38] sm:$0x1]  ;;  %v938_v56 = vshrl.u32 %v806_v51, 16  ;;  %v941_v58 = vshll.u32 %v806_v51, 16 }
  0x79   : > { %v5350_v35 = vld [vmem:[#allocation2 + $0x34] sm:$0xf]  ;;  %v957_v23 = vshll.u32 %v5352_v55, 16  ;;  %v671_v34 = vrot.slane %v5342_v32, 4  ;;  %v778_v9 = vsel %vm5180_vm4, %v670_v33, %v777_v52  ;;  %v4783_v20 = vld [vmem:[%s6188_s3 + $0x88] sm:$0xff]   ;;  %v4786_v43 = vld [vmem:[%s6188_s3 + $0xc0] sm:$0xff]  }
  0x7a   : > { %4505 = vmatpush3.bf16.msra.mxu1 %v4774_v42  ;;  %v935_v42 = vrot.slane %v933_v18, 5  ;;  %4471 = vmatpush3.bf16.msra.mxu0 %v4771_v41  ;;  %v931_v50 = vrot.slane %v930_v28, 4  ;;  %v685_v41 = vshll.u32 %v5060_v37, 16  ;;  %v947_v60 = vshll.u32 %v5350_v35, 16  ;;  %779 = vst [vmem:[#allocation2 + $0x48] sm:$0xf] %v778_v9 }
  0x7b   : > { %4506 = vmatprep.subr.bf16.mxu1 %v4778_v63  ;;  %4472 = vmatprep.subr.bf16.mxu0 %v5309_v57  ;;  %v951_v61 = vshrl.u32 %v5350_v35, 16  ;;  %v940_v2 = vrot.slane %v938_v56, 4  ;;  %v943_v3 = vrot.slane %v941_v58, 5  ;;  %v4027_v24 = vcombine.low %v806_v51, %v5350_v35  ;;  %v781_v51 = vld [vmem:[#allocation2 + $0x50] sm:$0x1] }
  0x7c   : > { %v936_v59 = vsel %vm5209_vm1, %v931_v50, %v935_v42  ;;  %v949_v4 = vrot.slane %v947_v60, 5  ;;  %v959_v26 = vrot.slane %v957_v23, 5  ;;  %v675_v33 = vrot.slane %v673_v46, 7 }
  0x7d   : > { %v4010_v62 = vcombine.low %v926_v31, %v936_v59  ;;  %v953_v5 = vrot.slane %v951_v61, 4  ;;  %v944_v12 = vor.u32 %v943_v3, %v940_v2  ;;  %4458 = vmatprep.mubr.bf16.mxu1 %v4027_v24  ;;  %v5369_v15 = vld [vmem:[#allocation2 + $0x40] sm:$0xf]  ;;  %v684_v23 = vrot.slane %v682_v49, 7  ;;  %v784_v2 = vld [vmem:[#allocation2 + $0x54] sm:$0xf] }
  0x7e   : > { %4507 = vmatpush3.bf16.msra.mxu1 %v4778_v63  ;;  %4473 = vmatpush3.bf16.msra.mxu0 %v5309_v57  ;;  %v4779_v63 = vld [vmem:[%s6188_s3 + $0x90] sm:$0xff]   ;;  %v4784_v57 = vld [vmem:[%s6188_s3 + $0xc8] sm:$0xff]   ;;  %v5371_v17 = vld [vmem:[#allocation2 + $0x44] sm:$0x1]  ;;  %v971_v30 = vshll.u32 %v5369_v15, 16  ;;  %v975_v31 = vshrl.u32 %v5369_v15, 16  ;;  %v678_v46 = vor.u32 %v676_v44, %v675_v33 }
  0x7f   : > { %4508 = vmatprep.subr.bf16.mxu1 %v4780_v22  ;;  %4474 = vmatprep.subr.bf16.mxu0 %v4777_v21  ;;  %v808_v14 = vld [vmem:[#allocation2 + $0x3c] sm:$0xf]  ;;  %v954_v6 = vor.u32 %v953_v5, %v949_v4  ;;  %v945_v25 = vrot.slane %v944_v12, 4  ;;  %v981_v28 = vshll.u32 %v5371_v17, 16  ;;  %v4785_v59 = vld [vmem:[%s6188_s3 + $0x80] sm:$0xff]   ;;  %v680_v5 = vrot.slane %v675_v33, 4 }
  0x80   : > { %4423 = vmatmul.mubr.bf16.gmra.mxu0 %v4010_v62  ;;  %v962_v18 = vshrl.u32 %v808_v14, 16  ;;  %v965_v19 = vshll.u32 %v808_v14, 16  ;;  %v4028_v42 = vcombine.low %v808_v14, %v5369_v15  ;;  %v973_v50 = vrot.slane %v971_v30, 5  ;;  %v788_v3 = vld [vmem:[#allocation2 + $0x5c] sm:$0x1] }
  0x81   : > { %v950_v52 = vsel %vm5209_vm1, %v945_v25, %v949_v4  ;;  %v977_v56 = vrot.slane %v975_v31, 4  ;;  %v983_v58 = vrot.slane %v981_v28, 5  ;;  %v692_v62 = vrot.slane %v690_v53, 7  ;;  %v810_v14 = vld [vmem:[#allocation2 + $0x48] sm:$0xf] }
  0x82   : > { %4475 = vmatpush3.bf16.msra.mxu0 %v4777_v21  ;;  %4509 = vmatpush3.bf16.msra.mxu1 %v4780_v22  ;;  %v955_v21 = vrot.slane %v954_v6, 4  ;;  %v964_v22 = vrot.slane %v962_v18, 4  ;;  %v967_v32 = vrot.slane %v965_v19, 5  ;;  %v687_v49 = vor.u32 %v685_v41, %v684_v23  ;;  %v5419_v19 = vld [vmem:[#allocation2] sm:$0xe] }
  0x83   : > { %4476 = vmatprep.subr.bf16.mxu0 %v4779_v63  ;;  %4510 = vmatprep.subr.bf16.mxu1 %v4784_v57  ;;  %v978_v4 = vor.u32 %v977_v56, %v973_v50  ;;  %v688_v53 = vrot.slane %v684_v23, 4  ;;  %v679_v36 = vsel %vm5196_vm5, %v671_v34, %v678_v46  ;;  %v782_v44 = vsel %vm4955_vm2, %v680_v5, %v781_v51  ;;  %v5423_v28 = vld [vmem:[#allocation2 + $0xc] sm:$0xe] }
  0x84   : > { %4459 = vmatmul.mubr.bf16.gmra.mxu1 %v4028_v42  ;;  %v960_v60 = vsel %vm5209_vm1, %v955_v21, %v959_v26  ;;  %v968_v61 = vor.u32 %v967_v32, %v964_v22  ;;  %v5399_v26 = vld [vmem:[%s6188_s3 + $0x178] sm:$0xff]   ;;  %v697_v9 = vrot.slane %v692_v62, 4  ;;  %780 = vst [vmem:[#allocation2 + $0x4c] sm:$0xf] %v679_v36  ;;  %783 = vst [vmem:[#allocation2 + $0x50] sm:$0x1] %v782_v44 }
  0x85   : > { %v4011_v24 = vcombine.low %v950_v52, %v960_v60  ;;  %v979_v12 = vrot.slane %v978_v4, 4  ;;  %v986_v37 = vshrl.u32 %v810_v14, 16  ;;  %v989_v41 = vshll.u32 %v810_v14, 16  ;;  %v5428_v42 = vld [vmem:[%s6188_s3 + $0x138] sm:$0xff]  }
  0x86   : > { %4477 = vmatpush3.bf16.msra.mxu0 %v4779_v63  ;;  %4511 = vmatpush3.bf16.msra.mxu1 %v4784_v57  ;;  %v969_v63 = vrot.slane %v968_v61, 4  ;;  %v695_v57 = vor.u32 %v693_v54, %v692_v62  ;;  %v785_v34 = vsel %vm5180_vm4, %v687_v49, %v784_v2  ;;  %v789_v18 = vsel %vm4955_vm2, %v697_v9, %v788_v3  ;;  %v5432_v22 = vld [vmem:[#allocation2 + $0x18] sm:$0xe] }
  0x87   : > { %4478 = vmatprep.subr.bf16.mxu0 %v4783_v20  ;;  %4512 = vmatprep.subr.bf16.mxu1 %v4786_v43  ;;  %v984_v54 = vsel %vm5209_vm1, %v979_v12, %v983_v58  ;;  %v1458_v30 = vrot.slane %v5247_v11, 5  ;;  %v991_v31 = vrot.slane %v989_v41, 5  ;;  %786 = vst [vmem:[#allocation2 + $0x54] sm:$0xf] %v785_v34  ;;  %790 = vst [vmem:[#allocation2 + $0x5c] sm:$0x1] %v789_v18 }
  0x88   : > { %4426 = vmatprep.mubr.bf16.mxu0 %v4011_v24  ;;  %v974_v6 = vsel %vm5209_vm1, %v969_v63, %v973_v50  ;;  %v696_v38 = vsel %vm5196_vm5, %v688_v53, %v695_v57  ;;  %v1455_v21 = vrot.slane %v5245_v29, 5  ;;  %v1462_v50 = vrot.slane %v5258_v27, 5  ;;  %v4787_v53 = vld [vmem:[#allocation2 + $0xc] sm:$0xff]   ;;  %v1422_v57 = vld [vmem:[#allocation2 + $0x24] sm:$0xe] }
  0x89   : > { %787 = vst [vmem:[#allocation2 + $0x58] sm:$0xf] %v696_v38  ;;  %v4012_v25 = vcombine.low %v974_v6, %v984_v54  ;;  %v4039_v51 = vrot.slane %v5419_v19, 9  ;;  %v4040_v52 = vrot.slane %v5423_v28, 9  ;;  %v1465_v33 = vrot.slane %v5261_v47, 5 }
  0x8a   : > { %4479 = vmatpush3.bf16.msra.mxu0 %v4783_v20  ;;  %4513 = vmatpush3.bf16.msra.mxu1 %v4786_v43  ;;  %v988_v20 = vrot.slane %v986_v37, 4  ;;  %v1448_v43 = vrot.slane %v5172_v7, 5  ;;  %v5439_v58 = vrot.slane %v1455_v21, 4  ;;  %v4041_v7 = vrot.slane %v5432_v22, 9 }
  0x8b   : > { %4480 = vmatprep.subr.bf16.mxu0 %v4785_v59  ;;  %4562 = vmatprep.subr.bf16.mxu1 %v5399_v26  ;;  %v5444_v60 = vld [vmem:[#allocation2 + $0x4c] sm:$0xf]  ;;  %v5446_v61 = vld [vmem:[#allocation2 + $0x50] sm:$0x1]  ;;  %v5450_v23 = vrot.slane %v1462_v50, 4  ;;  %v1469_v9 = vrot.slane %v5304_v1, 5 }
  0x8c   : > { %4427 = vmatmul.mubr.bf16.gmra.mxu0 %v4012_v25  ;;  %v992_v32 = vor.u32 %v991_v31, %v988_v20  ;;  %v1450_v56 = vrot.slane %v1448_v43, 4  ;;  %v995_v62 = vshll.u32 %v5444_v60, 16  ;;  %v999_v2 = vshrl.u32 %v5444_v60, 16  ;;  %v1423_v1 = vld [vmem:[#allocation2 + $0x30] sm:$0xe] }
  0x8d   : > { %v1005_v3 = vshll.u32 %v5446_v61, 16  ;;  %v4029_v24 = vcombine.low %v810_v14, %v5444_v60  ;;  %v1483_v8 = vrot.slane %v5369_v15, 5  ;;  %v5505_v15 = vsel %vm5466_vm8, %v4041_v7, %v1462_v50  ;;  %v4796_v50 = vld [vmem:[%s6188_s3 + $0x168] sm:$0xff]  }
  0x8e   : > { %4481 = vmatpush3.bf16.msra.mxu0 %v4785_v59  ;;  %v993_v59 = vrot.slane %v992_v32, 4  ;;  %v812_v46 = vld [vmem:[#allocation2 + $0x54] sm:$0xf]  ;;  %v5458_v5 = vld [vmem:[#allocation2 + $0x5c] sm:$0x1]  ;;  %v997_v12 = vrot.slane %v995_v62, 5  ;;  %v1459_v29 = vsel %vm5466_vm8, %v5439_v58, %v1458_v30  ;;  %v1466_v27 = vsel %vm5466_vm8, %v5450_v23, %v1465_v33 }
  0x8f   : > { %4530 = vmatprep.subr.bf16.mxu0 %v5428_v42  ;;  %v1001_v36 = vrot.slane %v999_v2, 4  ;;  %4462 = vmatprep.mubr.bf16.mxu1 %v4029_v24  ;;  %v1010_v44 = vshrl.u32 %v812_v46, 16  ;;  %v1013_v6 = vshll.u32 %v812_v46, 16  ;;  %v1029_v41 = vshll.u32 %v5458_v5, 16  ;;  %v1426_v33 = vld [vmem:[#allocation2 + $0x54] sm:$0xe] }
  0x90   : > { %v5456_v4 = vld [vmem:[#allocation2 + $0x58] sm:$0xf]  ;;  %v1007_v34 = vrot.slane %v1005_v3, 5  ;;  %v998_v32 = vsel %vm5209_vm1, %v993_v59, %v997_v12  ;;  %v1449_v2 = vsel %vm5466_vm8, %v4039_v51, %v1448_v43  ;;  %v4042_v24 = vrot.slane %v1422_v57, 9 }
  0x91   : > { %v1019_v63 = vshll.u32 %v5456_v4, 16  ;;  %v1023_v49 = vshrl.u32 %v5456_v4, 16  ;;  %v1002_v54 = vor.u32 %v1001_v36, %v997_v12  ;;  %v1012_v18 = vrot.slane %v1010_v44, 4  ;;  %v1424_v36 = vld [vmem:[#allocation2 + $0x3c] sm:$0xe] }
  0x92   : > { %v4030_v19 = vcombine.low %v812_v46, %v5456_v4  ;;  %v1015_v25 = vrot.slane %v1013_v6, 5  ;;  %v1031_v31 = vrot.slane %v1029_v41, 5  ;;  %v1472_v3 = vrot.slane %v5322_v10, 5  ;;  %v4788_v12 = vld [vmem:[#allocation2 + $0x18] sm:$0xff]  }
  0x93   : > { %v1021_v37 = vrot.slane %v1019_v63, 5  ;;  %v1025_v14 = vrot.slane %v1023_v49, 4  ;;  %v1003_v62 = vrot.slane %v1002_v54, 4  ;;  %v1476_v46 = vrot.slane %v5350_v35, 5  ;;  %v4792_v35 = vld [vmem:[%s6188_s3 + $0x170] sm:$0xff]  }
  0x94   : > { %4463 = vmatmul.mubr.bf16.gmra.mxu1 %v4030_v19  ;;  %v1016_v63 = vor.u32 %v1015_v25, %v1012_v18  ;;  %v1452_v59 = vsel %vm5466_vm8, %v1450_v56, %v1451_v16  ;;  %v1471_v6 = vrot.slane %v1469_v9, 4  ;;  %v4043_v43 = vrot.slane %v1423_v1, 9  ;;  %v791_v25 = vld [vmem:[#allocation2 + $0x60] sm:$0xf] }
  0x95   : > { %v1026_v20 = vor.u32 %v1025_v14, %v1021_v37  ;;  %4514 = vmatprep.mubr.bf16.mxu1 %v4787_v53  ;;  %v1008_v44 = vsel %vm5209_vm1, %v1003_v62, %v1007_v34  ;;  %v1479_v10 = vrot.slane %v5352_v55, 5  ;;  %v1478_v14 = vrot.slane %v1476_v46, 4  ;;  %v4791_v62 = vld [vmem:[%s6188_s3 + $0x130] sm:$0xff]  }
  0x96   : > { %v4013_v51 = vcombine.low %v998_v32, %v1008_v44  ;;  %v1017_v57 = vrot.slane %v1016_v63, 4  ;;  %v4044_v41 = vrot.slane %v1424_v36, 9  ;;  %v1486_v16 = vrot.slane %v5371_v17, 5  ;;  %v4793_v17 = vld [vmem:[#allocation2 + $0x24] sm:$0xff]  }
  0x97   : > { %v1027_v49 = vrot.slane %v1026_v20, 4  ;;  %v4047_v54 = vcombine.low %v1449_v2, %v1452_v59  ;;  %v1456_v55 = vsel %vm5466_vm8, %v4040_v52, %v1455_v21  ;;  %v1485_v18 = vrot.slane %v1483_v8, 4  ;;  %v1425_v21 = vld [vmem:[#allocation2 + $0x48] sm:$0xe]  ;;  %v4799_v59 = vld [vmem:[#allocation2 + $0x3c] sm:$0xff]  }
  0x98   : > { %4430 = vmatprep.mubr.bf16.mxu0 %v4013_v51  ;;  %v1022_v56 = vsel %vm5209_vm1, %v1017_v57, %v1021_v37  ;;  %v5519_v28 = vsel %vm5466_vm8, %v4042_v24, %v1469_v9  ;;  %v1490_v22 = vrot.slane %v5444_v60, 5  ;;  %v5524_v11 = vsel %vm5466_vm8, %v1471_v6, %v1472_v3  ;;  %v1952_v57 = vld [vmem:[#allocation2 + $0xc] sm:$0xf] }
  0x99   : > { %v1032_v53 = vsel %vm5209_vm1, %v1027_v49, %v1031_v31  ;;  %v5528_v47 = vsel %vm5466_vm8, %v4043_v43, %v1476_v46  ;;  %v5532_v30 = vsel %vm5466_vm8, %v1478_v14, %v1479_v10  ;;  %v5540_v52 = vsel %vm5466_vm8, %v4044_v41, %v1483_v8  ;;  %v1954_v10 = vld [vmem:[#allocation2 + $0x14] sm:$0x1] }
  0x9a   : > { %v4014_v34 = vcombine.low %v1022_v56, %v1032_v53  ;;  %v5544_v58 = vsel %vm5466_vm8, %v1485_v18, %v1486_v16  ;;  %v1493_v7 = vrot.slane %v5446_v61, 5  ;;  %v699_v60 = vshrl.u32 %v5069_v39, 16  ;;  %v1953_v53 = vld [vmem:[#allocation2 + $0x10] sm:$0xf] }
  0x9b   : > { %v4045_v23 = vrot.slane %v1425_v21, 9  ;;  %v1492_v9 = vrot.slane %v1490_v22, 4  ;;  %v1497_v37 = vrot.slane %v5456_v4, 5  ;;  %v702_v19 = vshll.u32 %v5069_v39, 16  ;;  %v5561_v39 = vld [vmem:[%s6188_s3 + $0x160] sm:$0xff]  }
  0x9c   : > { %4431 = vmatmul.mubr.bf16.gmra.mxu0 %v4014_v34  ;;  %4515 = vmatmul.mubr.bf16.vlgmr.msra.gmra.mxu1 %v4788_v12  ;;  %v4046_v20 = vrot.slane %v1426_v33, 9  ;;  %v701_v31 = vrot.slane %v699_v60, 7  ;;  %v707_v1 = vshrl.u32 %v5072_v40, 16  ;;  %v710_v32 = vshll.u32 %v5072_v40, 16  ;;  %v4797_v60 = vld [vmem:[%s6188_s3 + $0x120] sm:$0xff]  }
  0x9d   : > { %4482 = vmatprep.mubr.bf16.mxu0 %v4047_v54  ;;  %4563 = vmatpush3.bf16.msra.mxu1 %v5399_v26  ;;  %v4794_v26 = vld [vmem:[#allocation2 + $0x30] sm:$0xff]   ;;  %v4048_v61 = vcombine.low %v1456_v55, %v1459_v29  ;;  %v4049_v2 = vcombine.low %v5505_v15, %v1466_v27  ;;  %v4050_v24 = vcombine.low %v5519_v28, %v5524_v11  ;;  %v1499_v36 = vrot.slane %v1497_v37, 4  ;;  %v2377_v54 = vld [vmem:[#allocation2 + $0xc] sm:$0xe]  ;;  %v1955_v27 = vld [vmem:[#allocation2 + $0x18] sm:$0xf] }
  0x9e   : > { %4564 = vmatprep.subr.bf16.mxu1 %v4792_v35  ;;  %4518 = vmatprep.mubr.bf16.mxu1 %v4793_v17  ;;  %v4051_v4 = vcombine.low %v5528_v47, %v5532_v30  ;;  %v704_v40 = vor.u32 %v702_v19, %v701_v31  ;;  %v705_v63 = vrot.slane %v701_v31, 4  ;;  %v5565_v49 = vrot.slane %v707_v1, 7  ;;  %v4800_v15 = vld [vmem:[#allocation2 + $0x48] sm:$0xff]   ;;  %v2378_v19 = vld [vmem:[#allocation2 + $0x18] sm:$0xe] }
  0x9f   : > { %v4052_v3 = vcombine.low %v5540_v52, %v5544_v58  ;;  %v5571_v46 = vsel %vm5466_vm8, %v4045_v23, %v1490_v22  ;;  %v1500_v44 = vrot.slane %v5458_v5, 5  ;;  %v5576_v12 = vsel %vm5466_vm8, %v1492_v9, %v1493_v7  ;;  %v4795_v5 = vld [vmem:[%s6188_s3 + $0x128] sm:$0xff]   ;;  %v1956_v7 = vld [vmem:[#allocation2 + $0x1c] sm:$0xf]  ;;  %v1957_v23 = vld [vmem:[#allocation2 + $0x20] sm:$0x1] }
  0xa0   : > { %v5580_v6 = vsel %vm5466_vm8, %v4046_v20, %v1497_v37  ;;  %v712_v43 = vor.u32 %v710_v32, %v5565_v49  ;;  %v792_v51 = vsel %vm5180_vm4, %v704_v40, %v791_v25  ;;  %v1980_v14 = vshll.u32 %v1952_v57, 16  ;;  %v4804_v25 = vld [vmem:[%s6188_s3 + $0x150] sm:$0xff]   ;;  %v4808_v11 = vld [vmem:[%s6188_s3 + $0x148] sm:$0xff]  }
  0xa1   : > { %4565 = vmatpush3.bf16.msra.mxu1 %v4792_v35  ;;  %793 = vst [vmem:[#allocation2 + $0x60] sm:$0xf] %v792_v51  ;;  %v1977_v35 = vshrl.u32 %v1952_v57, 16  ;;  %v1986_v41 = vshll.u32 %v1953_v53, 16  ;;  %v1990_v8 = vshrl.u32 %v1953_v53, 16  ;;  %v1996_v56 = vshll.u32 %v1954_v10, 16 }
  0xa2   : > { %4566 = vmatprep.subr.bf16.mxu1 %v4796_v50  ;;  %v713_v16 = vsel %vm5196_vm5, %v705_v63, %v712_v43  ;;  %v2411_v34 = vrot.slane %v1953_v53, 5  ;;  %v2414_v55 = vrot.slane %v1954_v10, 5  ;;  %v1982_v18 = vrot.slane %v1980_v14, 5 }
  0xa3   : > { %794 = vst [vmem:[#allocation2 + $0x64] sm:$0xf] %v713_v16  ;;  %v1979_v17 = vrot.slane %v1977_v35, 4  ;;  %v1988_v29 = vrot.slane %v1986_v41, 5  ;;  %v1998_v21 = vrot.slane %v1996_v56, 5  ;;  %v4095_v22 = vrot.slane %v2377_v54, 9 }
  0xa4   : > { %4483 = vmatmul.mubr.bf16.vlgmr.msra.gmra.mxu0 %v4048_v61  ;;  %4519 = vmatmul.mubr.bf16.gmra.mxu1 %v4794_v26  ;;  %v2413_v45 = vrot.slane %v2411_v34, 4  ;;  %v2001_v33 = vshrl.u32 %v1955_v27, 16  ;;  %v2004_v9 = vshll.u32 %v1955_v27, 16  ;;  %v2010_v37 = vshll.u32 %v1956_v7, 16  ;;  %v4805_v61 = vld [vmem:[#allocation2 + $0x54] sm:$0xff]  }
  0xa5   : > { %4531 = vmatpush3.bf16.msra.mxu0 %v5428_v42  ;;  %4486 = vmatprep.mubr.bf16.mxu0 %v4049_v2  ;;  %v1992_v42 = vrot.slane %v1990_v8, 4  ;;  %v5603_v20 = vsel %vm5466_vm8, %v1499_v36, %v1500_v44  ;;  %v5607_v31 = vsel %vm5466_vm8, %v4095_v22, %v2411_v34  ;;  %v2014_v32 = vshrl.u32 %v1956_v7, 16  ;;  %v1958_v54 = vld [vmem:[#allocation2 + $0x24] sm:$0xf] }
  0xa6   : > { %4532 = vmatprep.subr.bf16.mxu0 %v4791_v62  ;;  %4567 = vmatpush3.bf16.msra.mxu1 %v4796_v50  ;;  %v1983_v50 = vor.u32 %v1982_v18, %v1979_v17  ;;  %v2003_v1 = vrot.slane %v2001_v33, 4  ;;  %v5612_v40 = vsel %vm5466_vm8, %v2413_v45, %v2414_v55  ;;  %v2006_v63 = vrot.slane %v2004_v9, 5  ;;  %v1959_v55 = vld [vmem:[#allocation2 + $0x28] sm:$0xf]  ;;  %v2379_v22 = vld [vmem:[#allocation2 + $0x24] sm:$0xe] }
  0xa7   : > { %4568 = vmatprep.subr.bf16.mxu1 %v5561_v39  ;;  %4522 = vmatprep.mubr.bf16.mxu1 %v4799_v59  ;;  %v1993_v26 = vor.u32 %v1992_v42, %v1988_v29  ;;  %v2012_v36 = vrot.slane %v2010_v37, 5  ;;  %v2016_v44 = vrot.slane %v2014_v32, 4  ;;  %v2020_v59 = vshll.u32 %v1957_v23, 16  ;;  %v1961_v45 = vld [vmem:[#allocation2 + $0x30] sm:$0xf] }
  0xa8   : > { %v1984_v2 = vrot.slane %v1983_v50, 4  ;;  %v4096_v43 = vrot.slane %v2378_v19, 9  ;;  %v2007_v53 = vor.u32 %v2006_v63, %v2003_v1  ;;  %v2418_v10 = vrot.slane %v1956_v7, 5  ;;  %v4810_v7 = vld [vmem:[%s6188_s3 + $0x140] sm:$0xff]   ;;  %v5663_v1 = vld [vmem:[#allocation2 + $0x38] sm:$0x1] }
  0xa9   : > { %4533 = vmatpush3.bf16.msra.mxu0 %v4791_v62  ;;  %v1994_v62 = vrot.slane %v1993_v26, 4  ;;  %v714_v28 = vrot.slane %v5565_v49, 4  ;;  %v2022_v35 = vrot.slane %v2020_v59, 5  ;;  %v2421_v14 = vrot.slane %v1957_v23, 5  ;;  %v5661_v23 = vld [vmem:[#allocation2 + $0x34] sm:$0xf] }
  0xaa   : > { %4534 = vmatprep.subr.bf16.mxu0 %v4795_v5  ;;  %4569 = vmatpush3.bf16.msra.mxu1 %v5561_v39  ;;  %v4801_v39 = vld [vmem:[%s6188_s3 + $0x118] sm:$0xff]   ;;  %v1989_v51 = vsel %vm5209_vm1, %v1984_v2, %v1988_v29  ;;  %v4053_v41 = vcombine.low %v5571_v46, %v5576_v12  ;;  %v2008_v8 = vrot.slane %v2007_v53, 4  ;;  %v2420_v47 = vrot.slane %v2418_v10, 4  ;;  %v4803_v46 = vld [vmem:[%s6188_s3 + $0x110] sm:$0xff]  }
  0xab   : > { %4570 = vmatprep.subr.bf16.mxu1 %v4802_v13  ;;  %v1999_v57 = vsel %vm5209_vm1, %v1994_v62, %v1998_v21  ;;  %v4054_v30 = vcombine.low %v5580_v6, %v5603_v20  ;;  %v2025_v17 = vshrl.u32 %v1958_v54, 16  ;;  %v2028_v18 = vshll.u32 %v1958_v54, 16  ;;  %v4811_v6 = vld [vmem:[%s6188_s3 + $0x1b8] sm:$0xff]  }
  0xac   : > { %4487 = vmatmul.mubr.bf16.gmra.mxu0 %v4050_v24  ;;  %4523 = vmatmul.mubr.bf16.gmra.mxu1 %v4800_v15  ;;  %v2017_v24 = vor.u32 %v2016_v44, %v2012_v36  ;;  %v5639_v16 = vcombine.low %v1989_v51, %v1999_v57  ;;  %v2013_v12 = vsel %vm5209_vm1, %v2008_v8, %v2012_v36  ;;  %v1960_v15 = vld [vmem:[#allocation2 + $0x2c] sm:$0x1]  ;;  %v2034_v27 = vshll.u32 %v1959_v55, 16 }
  0xad   : > { %4535 = vmatpush3.bf16.msra.mxu0 %v4795_v5  ;;  %4490 = vmatprep.mubr.bf16.mxu0 %v4051_v4  ;;  %v5635_v5 = vsel %vm5466_vm8, %v4096_v43, %v2418_v10  ;;  %v4806_v4 = vld [vmem:[#allocation2 + $0x60] sm:$0xff]   ;;  %v5650_v34 = vsel %vm5466_vm8, %v2420_v47, %v2421_v14  ;;  %v2038_v21 = vshrl.u32 %v1959_v55, 16  ;;  %v2027_v50 = vrot.slane %v2025_v17, 4 }
  0xae   : > { %4536 = vmatprep.subr.bf16.mxu0 %v4797_v60  ;;  %4571 = vmatpush3.bf16.msra.mxu1 %v4802_v13  ;;  %v4103_v13 = vcombine.low %v5607_v31, %v5612_v40  ;;  %v2018_v56 = vrot.slane %v2017_v24, 4  ;;  %v4104_v42 = vcombine.low %v5635_v5, %v5650_v34  ;;  %v2044_v26 = vshll.u32 %v1960_v15, 16  ;;  %v2380_v40 = vld [vmem:[#allocation2 + $0x30] sm:$0xe]  ;;  %v1965_v17 = vld [vmem:[#allocation2 + $0x40] sm:$0xf] }
  0xaf   : > { %4572 = vmatprep.subr.bf16.mxu1 %v4804_v25  ;;  %4526 = vmatprep.mubr.bf16.mxu1 %v4805_v61  ;;  %v2036_v9 = vrot.slane %v2034_v27, 5  ;;  %v2040_v37 = vrot.slane %v2038_v21, 4  ;;  %v4097_v19 = vrot.slane %v2379_v22, 9  ;;  %v2425_v31 = vrot.slane %v1959_v55, 5  ;;  %v4814_v22 = vld [vmem:[%s6188_s3 + $0x1f0] sm:$0xff]  }
  0xb0   : > { %v2023_v29 = vsel %vm5209_vm1, %v2018_v56, %v2022_v35  ;;  %v2046_v61 = vrot.slane %v2044_v26, 5  ;;  %v2428_v2 = vrot.slane %v1960_v15, 5  ;;  %v2049_v62 = vshrl.u32 %v1961_v45, 16  ;;  %v1964_v15 = vld [vmem:[#allocation2 + $0x3c] sm:$0xf] }
  0xb1   : > { %4537 = vmatpush3.bf16.msra.mxu0 %v4797_v60  ;;  %v5659_v33 = vcombine.low %v2013_v12, %v2023_v29  ;;  %v2030_v60 = vrot.slane %v2028_v18, 5  ;;  %v2041_v63 = vor.u32 %v2040_v37, %v2036_v9  ;;  %v5673_v36 = vsel %vm5466_vm8, %v4097_v19, %v2425_v31  ;;  %v2381_v26 = vld [vmem:[#allocation2 + $0x3c] sm:$0xe]  ;;  %v5723_v34 = vld [vmem:[#allocation2 + $0x50] sm:$0x1] }
  0xb2   : > { %4538 = vmatprep.subr.bf16.mxu0 %v4801_v39  ;;  %4573 = vmatpush3.bf16.msra.mxu1 %v4804_v25  ;;  %v4807_v25 = vld [vmem:[%s6188_s3 + $0x108] sm:$0xff]   ;;  %v2427_v44 = vrot.slane %v2425_v31, 4  ;;  %v2052_v52 = vshll.u32 %v1961_v45, 16  ;;  %v2058_v59 = vshll.u32 %v5661_v23, 16  ;;  %v2062_v43 = vshrl.u32 %v5661_v23, 16 }
  0xb3   : > { %4574 = vmatprep.subr.bf16.mxu1 %v4808_v11  ;;  %v2031_v32 = vor.u32 %v2030_v60, %v2027_v50  ;;  %v2042_v51 = vrot.slane %v2041_v63, 4  ;;  %v2068_v10 = vshll.u32 %v5663_v1, 16  ;;  %v2432_v12 = vrot.slane %v5661_v23, 5 }
  0xb4   : > { %4491 = vmatmul.mubr.bf16.gmra.mxu0 %v4052_v3  ;;  %4527 = vmatmul.mubr.bf16.gmra.mxu1 %v4806_v4  ;;  %v2051_v3 = vrot.slane %v2049_v62, 4  ;;  %v2429_v57 = vsel %vm5466_vm8, %v2427_v44, %v2428_v2  ;;  %v2054_v53 = vrot.slane %v2052_v52, 5  ;;  %v2060_v14 = vrot.slane %v2058_v59, 5  ;;  %v2382_v44 = vld [vmem:[#allocation2 + $0x48] sm:$0xe] }
  0xb5   : > { %4539 = vmatpush3.bf16.msra.mxu0 %v4801_v39  ;;  %4494 = vmatprep.mubr.bf16.mxu0 %v4053_v41  ;;  %v2032_v58 = vrot.slane %v2031_v32, 4  ;;  %v4812_v39 = vld [vmem:[%s6188_s3 + $0x1f8] sm:$0xff]   ;;  %v4105_v35 = vcombine.low %v5673_v36, %v2429_v57  ;;  %v2064_v41 = vrot.slane %v2062_v43, 4  ;;  %v2047_v8 = vsel %vm5209_vm1, %v2042_v51, %v2046_v61  ;;  %v4813_v43 = vld [vmem:[%s6188_s3 + $0x1b0] sm:$0xff]  }
  0xb6   : > { %4540 = vmatprep.subr.bf16.mxu0 %v4803_v46  ;;  %4575 = vmatpush3.bf16.msra.mxu1 %v4808_v11  ;;  %v4809_v11 = vld [vmem:[%s6188_s3 + $0x100] sm:$0xff]   ;;  %v2055_v47 = vor.u32 %v2054_v53, %v2051_v3  ;;  %v2070_v4 = vrot.slane %v2068_v10, 5  ;;  %v2435_v55 = vrot.slane %v5663_v1, 5  ;;  %v2073_v29 = vshrl.u32 %v1964_v15, 16  ;;  %v1967_v1 = vld [vmem:[#allocation2 + $0x48] sm:$0xf] }
  0xb7   : > { %4576 = vmatprep.subr.bf16.mxu1 %v4810_v7  ;;  %4578 = vmatprep.mubr.bf16.mxu1 %v4103_v13  ;;  %v2037_v24 = vsel %vm5209_vm1, %v2032_v58, %v2036_v9  ;;  %v4098_v13 = vrot.slane %v2380_v40, 9  ;;  %v2065_v54 = vor.u32 %v2064_v41, %v2060_v14  ;;  %v2076_v27 = vshll.u32 %v1964_v15, 16  ;;  %v4818_v10 = vld [vmem:[%s6188_s3 + $0x1e0] sm:$0xff]   ;;  %v1970_v15 = vld [vmem:[#allocation2 + $0x54] sm:$0xf] }
  0xb8   : > { %v5691_v56 = vcombine.low %v2037_v24, %v2047_v8  ;;  %v2056_v18 = vrot.slane %v2055_v47, 4  ;;  %v2082_v21 = vshll.u32 %v1965_v17, 16  ;;  %v2434_v50 = vrot.slane %v2432_v12, 4 }
  0xb9   : > { %4541 = vmatpush3.bf16.msra.mxu0 %v4803_v46  ;;  %v1966_v46 = vld [vmem:[#allocation2 + $0x44] sm:$0x1]  ;;  %v2066_v45 = vrot.slane %v2065_v54, 4  ;;  %v2086_v60 = vshrl.u32 %v1965_v17, 16  ;;  %v2078_v23 = vrot.slane %v2076_v27, 5  ;;  %v4099_v5 = vrot.slane %v2381_v26, 9 }
  0xba   : > { %4542 = vmatprep.subr.bf16.mxu0 %v4807_v25  ;;  %4577 = vmatpush3.bf16.msra.mxu1 %v4810_v7  ;;  %v5703_v7 = vsel %vm5466_vm8, %v4098_v13, %v2432_v12  ;;  %v2061_v20 = vsel %vm5209_vm1, %v2056_v18, %v2060_v14  ;;  %v2084_v9 = vrot.slane %v2082_v21, 5  ;;  %v2092_v31 = vshll.u32 %v1966_v46, 16  ;;  %v1971_v27 = vld [vmem:[#allocation2 + $0x58] sm:$0xf]  ;;  %v1972_v21 = vld [vmem:[#allocation2 + $0x5c] sm:$0x1] }
  0xbb   : > { %4626 = vmatprep.subr.bf16.mxu1 %v4812_v39  ;;  %v2071_v37 = vsel %vm5209_vm1, %v2066_v45, %v2070_v4  ;;  %v2088_v19 = vrot.slane %v2086_v60, 4  ;;  %v2439_v63 = vrot.slane %v1965_v17, 5  ;;  %v2442_v36 = vrot.slane %v1966_v46, 5 }
  0xbc   : > { %4495 = vmatmul.mubr.bf16.gmra.mxu0 %v4054_v30  ;;  %v2075_v30 = vrot.slane %v2073_v29, 4  ;;  %v5720_v32 = vcombine.low %v2061_v20, %v2071_v37  ;;  %v2094_v40 = vrot.slane %v2092_v31, 5  ;;  %v2097_v58 = vshrl.u32 %v1967_v1, 16  ;;  %v795_v31 = vld [vmem:[#allocation2 + $0x68] sm:$0x1] }
  0xbd   : > { %4543 = vmatpush3.bf16.msra.mxu0 %v4807_v25  ;;  %4546 = vmatprep.mubr.bf16.mxu0 %v5639_v16  ;;  %v2436_v16 = vsel %vm5466_vm8, %v2434_v50, %v2435_v55  ;;  %v5718_v25 = vld [vmem:[#allocation2 + $0x4c] sm:$0xf]  ;;  %v2089_v62 = vor.u32 %v2088_v19, %v2084_v9  ;;  %v2100_v3 = vshll.u32 %v1967_v1, 16  ;;  %v2440_v51 = vsel %vm5466_vm8, %v4099_v5, %v2439_v63  ;;  %v1973_v5 = vld [vmem:[#allocation2 + $0x60] sm:$0xf] }
  0xbe   : > { %4544 = vmatprep.subr.bf16.mxu0 %v4809_v11  ;;  %4579 = vmatmul.mubr.bf16.vlgmr.msra.gmra.mxu1 %v4104_v42  ;;  %v4106_v61 = vcombine.low %v5703_v7, %v2436_v16  ;;  %v2079_v2 = vor.u32 %v2078_v23, %v2075_v30  ;;  %v4816_v42 = vld [vmem:[%s6188_s3 + $0x1e8] sm:$0xff]   ;;  %v2106_v59 = vshll.u32 %v5718_v25, 16  ;;  %v2441_v57 = vrot.slane %v2439_v63, 4  ;;  %v2383_v30 = vld [vmem:[#allocation2 + $0x54] sm:$0xe]  ;;  %v4817_v23 = vld [vmem:[%s6188_s3 + $0x1a0] sm:$0xff]  }
  0xbf   : > { %4627 = vmatpush3.bf16.msra.mxu1 %v4812_v39  ;;  %4582 = vmatprep.mubr.bf16.mxu1 %v4105_v35  ;;  %v2090_v39 = vrot.slane %v2089_v62, 4  ;;  %v2110_v53 = vshrl.u32 %v5718_v25, 16  ;;  %v2099_v24 = vrot.slane %v2097_v58, 4  ;;  %v2102_v35 = vrot.slane %v2100_v3, 5 }
  0xc0   : > { %4628 = vmatprep.subr.bf16.mxu1 %v4814_v22  ;;  %v2080_v52 = vrot.slane %v2079_v2, 4  ;;  %v2108_v14 = vrot.slane %v2106_v59, 5  ;;  %v2443_v8 = vsel %vm5466_vm8, %v2441_v57, %v2442_v36  ;;  %v2116_v4 = vshll.u32 %v5723_v34, 16  ;;  %v2384_v36 = vld [vmem:[#allocation2 + $0x60] sm:$0xe] }
  0xc1   : > { %4545 = vmatpush3.bf16.msra.mxu0 %v4809_v11  ;;  %v2095_v41 = vsel %vm5209_vm1, %v2090_v39, %v2094_v40  ;;  %v2112_v47 = vrot.slane %v2110_v53, 4  ;;  %v4107_v54 = vcombine.low %v2440_v51, %v2443_v8  ;;  %v2103_v12 = vor.u32 %v2102_v35, %v2099_v24 }
  0xc2   : > { %4594 = vmatprep.subr.bf16.mxu0 %v4811_v6  ;;  %v2085_v11 = vsel %vm5209_vm1, %v2080_v52, %v2084_v9  ;;  %v4100_v55 = vrot.slane %v2382_v44, 9  ;;  %v2118_v18 = vrot.slane %v2116_v4, 5  ;;  %v2446_v46 = vrot.slane %v5718_v25, 5  ;;  %v4822_v44 = vld [vmem:[%s6188_s3 + $0x1d0] sm:$0xff]  }
  0xc3   : > { %4629 = vmatpush3.bf16.msra.mxu1 %v4814_v22  ;;  %v4083_v13 = vcombine.low %v2085_v11, %v2095_v41  ;;  %v2113_v17 = vor.u32 %v2112_v47, %v2108_v14  ;;  %v2449_v29 = vrot.slane %v5723_v34, 5  ;;  %v2121_v22 = vshrl.u32 %v1970_v15, 16  ;;  %v5766_v34 = vld [vmem:[#allocation2 + $0x64] sm:$0xf] }
  0xc4   : > { %4547 = vmatmul.mubr.bf16.vlgmr.msra.gmra.mxu0 %v5659_v33  ;;  %4630 = vmatprep.subr.bf16.mxu1 %v4816_v42  ;;  %v4815_v33 = vld [vmem:[%s6188_s3 + $0x1a8] sm:$0xff]   ;;  %v2124_v45 = vshll.u32 %v1970_v15, 16  ;;  %v2130_v7 = vshll.u32 %v1971_v27, 16  ;;  %v2447_v60 = vsel %vm5466_vm8, %v4100_v55, %v2446_v46  ;;  %v2448_v26 = vrot.slane %v2446_v46, 4  ;;  %v4821_v15 = vld [vmem:[%s6188_s3 + $0x190] sm:$0xff]  }
  0xc5   : > { %4595 = vmatpush3.bf16.msra.mxu0 %v4811_v6  ;;  %4550 = vmatprep.mubr.bf16.mxu0 %v5691_v56  ;;  %v2104_v56 = vrot.slane %v2103_v12, 4  ;;  %v2114_v50 = vrot.slane %v2113_v17, 4  ;;  %v4820_v6 = vld [vmem:[%s6188_s3 + $0x1d8] sm:$0xff]   ;;  %v2134_v20 = vshrl.u32 %v1971_v27, 16  ;;  %v2123_v37 = vrot.slane %v2121_v22, 4  ;;  %v4826_v22 = vld [vmem:[%s6188_s3 + $0x1c0] sm:$0xff]  }
  0xc6   : > { %4596 = vmatprep.subr.bf16.mxu0 %v4813_v43  ;;  %4583 = vmatmul.mubr.bf16.gmra.mxu1 %v4106_v61  ;;  %v2126_v16 = vrot.slane %v2124_v45, 5  ;;  %v2132_v19 = vrot.slane %v2130_v7, 5  ;;  %v2450_v25 = vsel %vm5466_vm8, %v2448_v26, %v2449_v29  ;;  %v2140_v2 = vshll.u32 %v1972_v21, 16  ;;  %v2916_v17 = vld [vmem:[#allocation2 + $0x18] sm:$0xf] }
  0xc7   : > { %4631 = vmatpush3.bf16.msra.mxu1 %v4816_v42  ;;  %4586 = vmatprep.mubr.bf16.mxu1 %v4107_v54  ;;  %v2109_v9 = vsel %vm5209_vm1, %v2104_v56, %v2108_v14  ;;  %v2119_v1 = vsel %vm5209_vm1, %v2114_v50, %v2118_v18  ;;  %v2136_v61 = vrot.slane %v2134_v20, 4  ;;  %v4108_v62 = vcombine.low %v2447_v60, %v2450_v25  ;;  %v4824_v14 = vld [vmem:[%s6188_s3 + $0x1c8] sm:$0xff]   ;;  %v5796_v29 = vld [vmem:[#allocation2 + $0x1c] sm:$0xf]  ;;  %v2919_v25 = vld [vmem:[#allocation2 + $0x24] sm:$0xf] }
  0xc8   : > { %4632 = vmatprep.subr.bf16.mxu1 %v4818_v10  ;;  %v4084_v42 = vcombine.low %v2109_v9, %v2119_v1  ;;  %v2127_v40 = vor.u32 %v2126_v16, %v2123_v37  ;;  %v4101_v63 = vrot.slane %v2383_v30, 9  ;;  %v2142_v58 = vrot.slane %v2140_v2, 5  ;;  %v5818_v2 = vld [vmem:[%s6188_s3 + $0x238] sm:$0xff]  }
  0xc9   : > { %4597 = vmatpush3.bf16.msra.mxu0 %v4813_v43  ;;  %v2137_v52 = vor.u32 %v2136_v61, %v2132_v19  ;;  %v2453_v3 = vrot.slane %v1971_v27, 5  ;;  %v2456_v59 = vrot.slane %v1972_v21, 5  ;;  %v796_v39 = vsel %vm4955_vm2, %v714_v28, %v795_v31  ;;  %v5798_v27 = vld [vmem:[#allocation2 + $0x20] sm:$0x1]  ;;  %v5813_v61 = vld [vmem:[#allocation2 + $0x28] sm:$0xf] }
  0xca   : > { %4598 = vmatprep.subr.bf16.mxu0 %v4815_v33  ;;  %v2128_v43 = vrot.slane %v2127_v40, 4  ;;  %v2145_v51 = vshrl.u32 %v1973_v5, 16  ;;  %v2148_v57 = vshll.u32 %v1973_v5, 16  ;;  %797 = vst [vmem:[#allocation2 + $0x68] sm:$0x1] %v796_v39  ;;  %v2154_v24 = vshll.u32 %v5766_v34, 16 }
  0xcb   : > { %4633 = vmatpush3.bf16.msra.mxu1 %v4818_v10  ;;  %v2138_v53 = vrot.slane %v2137_v52, 4  ;;  %v2454_v10 = vsel %vm5466_vm8, %v4101_v63, %v2453_v3  ;;  %v2455_v11 = vrot.slane %v2453_v3, 4  ;;  %v2158_v35 = vshrl.u32 %v5766_v34, 16  ;;  %v4827_v3 = vld [vmem:[#allocation2 + $0x18] sm:$0xff]  }
  0xcc   : > { %4551 = vmatmul.mubr.bf16.gmra.mxu0 %v5720_v32  ;;  %4634 = vmatprep.subr.bf16.mxu1 %v4820_v6  ;;  %v4819_v32 = vld [vmem:[%s6188_s3 + $0x198] sm:$0xff]   ;;  %v2133_v0 = vsel %vm5209_vm1, %v2128_v43, %v2132_v19  ;;  %v2147_v49 = vrot.slane %v2145_v51, 4  ;;  %v2150_v28 = vrot.slane %v2148_v57, 5  ;;  %v2156_v47 = vrot.slane %v2154_v24, 5  ;;  %v4825_v57 = vld [vmem:[%s6188_s3 + $0x180] sm:$0xff]  }
  0xcd   : > { %4599 = vmatpush3.bf16.msra.mxu0 %v4815_v33  ;;  %4554 = vmatprep.mubr.bf16.mxu0 %v4083_v13  ;;  %v2143_v41 = vsel %vm5209_vm1, %v2138_v53, %v2142_v58  ;;  %v2457_v8 = vsel %vm5466_vm8, %v2455_v11, %v2456_v59  ;;  %v4102_v4 = vrot.slane %v2384_v36, 9  ;;  %v2160_v55 = vrot.slane %v2158_v35, 4 }
  0xce   : > { %4600 = vmatprep.subr.bf16.mxu0 %v4817_v23  ;;  %4587 = vmatmul.mubr.bf16.gmra.mxu1 %v4108_v62  ;;  %v4085_v13 = vcombine.low %v2133_v0, %v2143_v41  ;;  %v4109_v54 = vcombine.low %v2454_v10, %v2457_v8  ;;  %v2151_v12 = vor.u32 %v2150_v28, %v2147_v49  ;;  %v2460_v33 = vrot.slane %v5766_v34, 5  ;;  %v5822_v62 = vld [vmem:[#allocation2 + $0x2c] sm:$0x1]  ;;  %v2922_v49 = vld [vmem:[#allocation2 + $0x30] sm:$0xf] }
  0xcf   : > { %4635 = vmatpush3.bf16.msra.mxu1 %v4820_v6  ;;  %v2161_v46 = vor.u32 %v2160_v55, %v2156_v47  ;;  %v2941_v56 = vshrl.u32 %v2916_v17, 16  ;;  %v2944_v45 = vshll.u32 %v2916_v17, 16  ;;  %v2950_v7 = vshll.u32 %v5796_v29, 16  ;;  %v4823_v6 = vld [vmem:[%s6188_s3 + $0x188] sm:$0xff]   ;;  %v5837_v41 = vld [vmem:[#allocation2 + $0x34] sm:$0xf] }
  0xd0   : > { %4636 = vmatprep.subr.bf16.mxu1 %v4822_v44  ;;  %4590 = vmatprep.mubr.bf16.mxu1 %v4109_v54  ;;  %v2152_v18 = vrot.slane %v2151_v12, 4  ;;  %v2462_v21 = vrot.slane %v2460_v33, 4  ;;  %v2461_v26 = vsel %vm5466_vm8, %v4102_v4, %v2460_v33  ;;  %v2954_v30 = vshrl.u32 %v5796_v29, 16  ;;  %v5839_v8 = vld [vmem:[#allocation2 + $0x38] sm:$0x1]  ;;  %v4828_v55 = vld [vmem:[#allocation2 + $0x24] sm:$0xff]  }
  0xd1   : > { %4601 = vmatpush3.bf16.msra.mxu0 %v4817_v23  ;;  %v1975_v50 = vld [vmem:[#allocation2 + $0x68] sm:$0x1]  ;;  %v2162_v60 = vrot.slane %v2161_v46, 4  ;;  %v2943_v20 = vrot.slane %v2941_v56, 4  ;;  %v2946_v37 = vrot.slane %v2944_v45, 5  ;;  %v2952_v16 = vrot.slane %v2950_v7, 5 }
  0xd2   : > { %4602 = vmatprep.subr.bf16.mxu0 %v4819_v32  ;;  %v2164_v23 = vshll.u32 %v1975_v50, 16  ;;  %v2463_v9 = vrot.slane %v1975_v50, 5  ;;  %v2157_v19 = vsel %vm5209_vm1, %v2152_v18, %v2156_v47  ;;  %v2956_v31 = vrot.slane %v2954_v30, 4 }
  0xd3   : > { %4637 = vmatpush3.bf16.msra.mxu1 %v4822_v44  ;;  %v2960_v1 = vshll.u32 %v5798_v27, 16  ;;  %v2965_v40 = vshrl.u32 %v2919_v25, 16  ;;  %v2968_v52 = vshll.u32 %v2919_v25, 16  ;;  %v2974_v39 = vshll.u32 %v5813_v61, 16 }
  0xd4   : > { %4555 = vmatmul.mubr.bf16.gmra.mxu0 %v4084_v42  ;;  %4638 = vmatprep.subr.bf16.mxu1 %v4824_v14  ;;  %v2166_v5 = vrot.slane %v2164_v23, 5  ;;  %v2464_v34 = vsel %vm5466_vm8, %v2462_v21, %v2463_v9  ;;  %v2947_v42 = vor.u32 %v2946_v37, %v2943_v20  ;;  %v2957_v36 = vor.u32 %v2956_v31, %v2952_v16  ;;  %v4830_v20 = vld [vmem:[%s6188_s3 + $0x230] sm:$0xff]  }
  0xd5   : > { %4603 = vmatpush3.bf16.msra.mxu0 %v4819_v32  ;;  %4558 = vmatprep.mubr.bf16.mxu0 %v4085_v13  ;;  %v4110_v63 = vcombine.low %v2461_v26, %v2464_v34  ;;  %v2962_v44 = vrot.slane %v2960_v1, 5  ;;  %v2967_v43 = vrot.slane %v2965_v40, 4  ;;  %v2970_v53 = vrot.slane %v2968_v52, 5  ;;  %v5847_v26 = vld [vmem:[#allocation2 + $0x40] sm:$0xf] }
  0xd6   : > { %4604 = vmatprep.subr.bf16.mxu0 %v4821_v15  ;;  %v2167_v58 = vsel %vm5209_vm1, %v2162_v60, %v2166_v5  ;;  %v2948_v59 = vrot.slane %v2947_v42, 4  ;;  %v2958_v32 = vrot.slane %v2957_v36, 4  ;;  %v2978_v10 = vshrl.u32 %v5813_v61, 16  ;;  %v4831_v5 = vld [vmem:[#allocation2 + $0x30] sm:$0xff]  }
  0xd7   : > { %4639 = vmatpush3.bf16.msra.mxu1 %v4824_v14  ;;  %v4086_v51 = vcombine.low %v2157_v19, %v2167_v58  ;;  %v2976_v24 = vrot.slane %v2974_v39, 5  ;;  %v2984_v0 = vshll.u32 %v5822_v62, 16  ;;  %v2971_v35 = vor.u32 %v2970_v53, %v2967_v43  ;;  %v4833_v58 = vld [vmem:[%s6188_s3 + $0x228] sm:$0xff]   ;;  %v5871_v53 = vld [vmem:[#allocation2 + $0x50] sm:$0x1] }
  0xd8   : > { %4640 = vmatprep.subr.bf16.mxu1 %v4826_v22  ;;  %4591 = vmatmul.mubr.bf16.gmra.mxu1 %v4110_v63  ;;  %v2953_v11 = vsel %vm5209_vm1, %v2948_v59, %v2952_v16  ;;  %v2963_v28 = vsel %vm5209_vm1, %v2958_v32, %v2962_v44  ;;  %v2980_v14 = vrot.slane %v2978_v10, 4  ;;  %v2989_v47 = vshrl.u32 %v2922_v49, 16  ;;  %v2928_v43 = vld [vmem:[#allocation2 + $0x48] sm:$0xf]  ;;  %v5866_v39 = vld [vmem:[#allocation2 + $0x4c] sm:$0xf] }
  0xd9   : > { %4605 = vmatpush3.bf16.msra.mxu0 %v4821_v15  ;;  %v4135_v4 = vcombine.low %v2953_v11, %v2963_v28  ;;  %v2986_v13 = vrot.slane %v2984_v0, 5  ;;  %v2992_v54 = vshll.u32 %v2922_v49, 16  ;;  %v2998_v12 = vshll.u32 %v5837_v41, 16 }
  0xda   : > { %4606 = vmatprep.subr.bf16.mxu0 %v4823_v6  ;;  %v2972_v15 = vrot.slane %v2971_v35, 4  ;;  %v2981_v33 = vor.u32 %v2980_v14, %v2976_v24  ;;  %v2991_v17 = vrot.slane %v2989_v47, 4  ;;  %v3002_v18 = vshrl.u32 %v5837_v41, 16 }
  0xdb   : > { %4641 = vmatpush3.bf16.msra.mxu1 %v4826_v22  ;;  %4642 = vmatprep.mubr.bf16.mxu1 %v4135_v4  ;;  %v2994_v46 = vrot.slane %v2992_v54, 5  ;;  %v3000_v56 = vrot.slane %v2998_v12, 5  ;;  %v3008_v21 = vshll.u32 %v5839_v8, 16  ;;  %v2925_v22 = vld [vmem:[#allocation2 + $0x3c] sm:$0xf]  ;;  %v3375_v45 = vrot.slane %v5796_v29, 5 }
  0xdc   : > { %4559 = vmatmul.mubr.bf16.gmra.mxu0 %v4086_v51  ;;  %4690 = vmatprep.subr.bf16.mxu1 %v5818_v2  ;;  %v2977_v7 = vsel %vm5209_vm1, %v2972_v15, %v2976_v24  ;;  %v2982_v50 = vrot.slane %v2981_v33, 4  ;;  %v3004_v60 = vrot.slane %v3002_v18, 4  ;;  %v3013_v9 = vshrl.u32 %v2925_v22, 16  ;;  %v4832_v24 = vld [vmem:[#allocation2 + $0x3c] sm:$0xff]   ;;  %v5881_v15 = vld [vmem:[#allocation2 + $0x58] sm:$0xf] }
  0xdd   : > { %4607 = vmatpush3.bf16.msra.mxu0 %v4823_v6  ;;  %4610 = vmatprep.mubr.bf16.mxu0 %v4827_v3  ;;  %v5849_v6 = vld [vmem:[#allocation2 + $0x44] sm:$0x1]  ;;  %v2995_v30 = vor.u32 %v2994_v46, %v2991_v17  ;;  %v3010_v23 = vrot.slane %v3008_v21, 5  ;;  %v3016_v37 = vshll.u32 %v2925_v22, 16  ;;  %v3022_v31 = vshll.u32 %v5847_v26, 16  ;;  %v4835_v18 = vld [vmem:[#allocation2 + $0x48] sm:$0xff]  }
  0xde   : > { %4608 = vmatprep.subr.bf16.mxu0 %v4825_v57  ;;  %v2987_v16 = vsel %vm5209_vm1, %v2982_v50, %v2986_v13  ;;  %v3005_v19 = vor.u32 %v3004_v60, %v3000_v56  ;;  %v3026_v1 = vshrl.u32 %v5847_v26, 16  ;;  %v3015_v42 = vrot.slane %v3013_v9, 4  ;;  %v2931_v13 = vld [vmem:[#allocation2 + $0x54] sm:$0xf]  ;;  %v5883_v33 = vld [vmem:[#allocation2 + $0x5c] sm:$0x1] }
  0xdf   : > { %v4136_v25 = vcombine.low %v2977_v7, %v2987_v16  ;;  %v2996_v34 = vrot.slane %v2995_v30, 4  ;;  %v3018_v40 = vrot.slane %v3016_v37, 5  ;;  %v3024_v36 = vrot.slane %v3022_v31, 5  ;;  %v4837_v37 = vld [vmem:[%s6188_s3 + $0x218] sm:$0xff]   ;;  %v3343_v29 = vld [vmem:[#allocation2 + $0x30] sm:$0xe] }
  0xe0   : > { %v3006_v63 = vrot.slane %v3005_v19, 4  ;;  %v3028_v44 = vrot.slane %v3026_v1, 4  ;;  %v3032_v52 = vshll.u32 %v5849_v6, 16  ;;  %v3037_v10 = vshrl.u32 %v2928_v43, 16 }
  0xe1   : > { %4609 = vmatpush3.bf16.msra.mxu0 %v4825_v57  ;;  %4643 = vmatmul.mubr.bf16.vlgmr.msra.gmra.mxu1 %v4136_v25  ;;  %v3001_v3 = vsel %vm5209_vm1, %v2996_v34, %v3000_v56  ;;  %v3019_v59 = vor.u32 %v3018_v40, %v3015_v42  ;;  %v3040_v49 = vshll.u32 %v2928_v43, 16  ;;  %v3046_v28 = vshll.u32 %v5866_v39, 16 }
  0xe2   : > { %4658 = vmatprep.subr.bf16.mxu0 %v5818_v2  ;;  %4698 = vmatpush3.bf16.msra.mxu1 %v5818_v2  ;;  %v3011_v51 = vsel %vm5209_vm1, %v3006_v63, %v3010_v23  ;;  %v3029_v57 = vor.u32 %v3028_v44, %v3024_v36  ;;  %v3034_v32 = vrot.slane %v3032_v52, 5  ;;  %v3039_v14 = vrot.slane %v3037_v10, 4  ;;  %v2934_v52 = vld [vmem:[#allocation2 + $0x60] sm:$0xf] }
  0xe3   : > { %4691 = vmatprep.subr.bf16.mxu1 %v4830_v20  ;;  %v4137_v11 = vcombine.low %v3001_v3, %v3011_v51  ;;  %v3020_v0 = vrot.slane %v3019_v59, 4  ;;  %v3050_v47 = vshrl.u32 %v5866_v39, 16  ;;  %v3056_v4 = vshll.u32 %v5871_v53, 16  ;;  %v5901_v3 = vld [vmem:[#allocation2 + $0x64] sm:$0xf]  ;;  %v4838_v51 = vld [vmem:[%s6188_s3 + $0x210] sm:$0xff]  }
  0xe4   : > { %4611 = vmatmul.mubr.bf16.vlgmr.msra.gmra.mxu0 %v4828_v55  ;;  %v3030_v35 = vrot.slane %v3029_v57, 4  ;;  %v3042_v12 = vrot.slane %v3040_v49, 5  ;;  %v3048_v55 = vrot.slane %v3046_v28, 5  ;;  %v3061_v21 = vshrl.u32 %v2931_v13, 16  ;;  %v5912_v57 = vld [vmem:[#allocation2 + $0x68] sm:$0x1] }
  0xe5   : > { %4659 = vmatpush3.bf16.msra.mxu0 %v5818_v2  ;;  %4614 = vmatprep.mubr.bf16.mxu0 %v4831_v5  ;;  %v4834_v2 = vld [vmem:[%s6188_s3 + $0x220] sm:$0xff]   ;;  %v3025_v54 = vsel %vm5209_vm1, %v3020_v0, %v3024_v36  ;;  %v3052_v46 = vrot.slane %v3050_v47, 4  ;;  %v3058_v56 = vrot.slane %v3056_v4, 5  ;;  %v3064_v50 = vshll.u32 %v2931_v13, 16  ;;  %v4836_v5 = vld [vmem:[#allocation2 + $0x54] sm:$0xff]  }
  0xe6   : > { %4660 = vmatprep.subr.bf16.mxu0 %v4830_v20  ;;  %4646 = vmatprep.mubr.bf16.mxu1 %v4137_v11  ;;  %v3035_v17 = vsel %vm5209_vm1, %v3030_v35, %v3034_v32  ;;  %v3043_v7 = vor.u32 %v3042_v12, %v3039_v14  ;;  %v3070_v60 = vshll.u32 %v5881_v15, 16  ;;  %v3063_v23 = vrot.slane %v3061_v21, 4  ;;  %v4839_v0 = vld [vmem:[#allocation2 + $0x60] sm:$0xff]   ;;  %v2937_v13 = vld [vmem:[#allocation2 + $0x6c] sm:$0xf] }
  0xe7   : > { %4699 = vmatpush3.bf16.msra.mxu1 %v4830_v20  ;;  %v4138_v22 = vcombine.low %v3025_v54, %v3035_v17  ;;  %v3053_v30 = vor.u32 %v3052_v46, %v3048_v55  ;;  %v3074_v9 = vshrl.u32 %v5881_v15, 16  ;;  %v3066_v19 = vrot.slane %v3064_v50, 5  ;;  %v5919_v17 = vld [vmem:[#allocation2 + $0x70] sm:$0xf] }
  0xe8   : > { %4692 = vmatprep.subr.bf16.mxu1 %v4833_v58  ;;  %v3044_v16 = vrot.slane %v3043_v7, 4  ;;  %v3072_v31 = vrot.slane %v3070_v60, 5  ;;  %v3410_v1 = vrot.slane %v5881_v15, 5  ;;  %v3413_v40 = vrot.slane %v5883_v33, 5 }
  0xe9   : > { %4661 = vmatpush3.bf16.msra.mxu0 %v4830_v20  ;;  %v3080_v20 = vshll.u32 %v5883_v33, 16  ;;  %4647 = vmatmul.mubr.bf16.gmra.mxu1 %v4138_v22  ;;  %v3054_v25 = vrot.slane %v3053_v30, 4  ;;  %v3076_v34 = vrot.slane %v3074_v9, 4  ;;  %v3067_v36 = vor.u32 %v3066_v19, %v3063_v23  ;;  %v4841_v22 = vld [vmem:[%s6188_s3 + $0x208] sm:$0xff]   ;;  %v3341_v19 = vld [vmem:[#allocation2 + $0x18] sm:$0xe] }
  0xea   : > { %4662 = vmatprep.subr.bf16.mxu0 %v4833_v58  ;;  %v3049_v63 = vsel %vm5209_vm1, %v3044_v16, %v3048_v55  ;;  %v5899_v44 = vrot.slane %v3410_v1, 4  ;;  %v3085_v32 = vshrl.u32 %v2934_v52, 16  ;;  %v3088_v10 = vshll.u32 %v2934_v52, 16 }
  0xeb   : > { %4700 = vmatpush3.bf16.msra.mxu1 %v4833_v58  ;;  %v3082_v42 = vrot.slane %v3080_v20, 5  ;;  %v3059_v59 = vsel %vm5209_vm1, %v3054_v25, %v3058_v56  ;;  %v3077_v43 = vor.u32 %v3076_v34, %v3072_v31  ;;  %v3094_v49 = vshll.u32 %v5901_v3, 16 }
  0xec   : > { %4615 = vmatmul.mubr.bf16.gmra.mxu0 %v4832_v24  ;;  %4693 = vmatprep.subr.bf16.mxu1 %v4834_v2  ;;  %v4139_v11 = vcombine.low %v3049_v63, %v3059_v59  ;;  %v3068_v24 = vrot.slane %v3067_v36, 4  ;;  %v3098_v28 = vshrl.u32 %v5901_v3, 16  ;;  %v3087_v14 = vrot.slane %v3085_v32, 4  ;;  %v4840_v36 = vld [vmem:[#allocation2 + $0x6c] sm:$0xff]  }
  0xed   : > { %4663 = vmatpush3.bf16.msra.mxu0 %v4833_v58  ;;  %4618 = vmatprep.mubr.bf16.mxu0 %v4835_v18  ;;  %v5905_v58 = vrot.slane %v3375_v45, 4  ;;  %v3078_v35 = vrot.slane %v3077_v43, 4  ;;  %v3090_v47 = vrot.slane %v3088_v10, 5  ;;  %v3104_v4 = vshll.u32 %v5912_v57, 16  ;;  %v5921_v18 = vld [vmem:[#allocation2 + $0x74] sm:$0x1] }
  0xee   : > { %4664 = vmatprep.subr.bf16.mxu0 %v4834_v2  ;;  %4650 = vmatprep.mubr.bf16.mxu1 %v4139_v11  ;;  %v3073_v54 = vsel %vm5209_vm1, %v3068_v24, %v3072_v31  ;;  %v3096_v12 = vrot.slane %v3094_v49, 5  ;;  %v3100_v55 = vrot.slane %v3098_v28, 4  ;;  %v3109_v21 = vshrl.u32 %v2937_v13, 16  ;;  %v3342_v43 = vld [vmem:[#allocation2 + $0x24] sm:$0xe] }
  0xef   : > { %4701 = vmatpush3.bf16.msra.mxu1 %v4834_v2  ;;  %v3091_v46 = vor.u32 %v3090_v47, %v3087_v14  ;;  %v3106_v56 = vrot.slane %v3104_v4, 5  ;;  %v3112_v60 = vshll.u32 %v2937_v13, 16  ;;  %v3118_v30 = vshll.u32 %v5919_v17, 16  ;;  %v3346_v14 = vld [vmem:[#allocation2 + $0x54] sm:$0xe] }
  0xf0   : > { %4694 = vmatprep.subr.bf16.mxu1 %v4837_v37  ;;  %v3101_v50 = vor.u32 %v3100_v55, %v3096_v12  ;;  %v3111_v9 = vrot.slane %v3109_v21, 4  ;;  %v3122_v20 = vshrl.u32 %v5919_v17, 16  ;;  %v3128_v16 = vshll.u32 %v5921_v18, 16 }
  0xf1   : > { %4665 = vmatpush3.bf16.msra.mxu0 %v4834_v2  ;;  %v3083_v2 = vsel %vm5209_vm1, %v3078_v35, %v3082_v42  ;;  %v3092_v23 = vrot.slane %v3091_v46, 4  ;;  %v3114_v25 = vrot.slane %v3112_v60, 5  ;;  %v4151_v34 = vrot.slane %v3341_v19, 9  ;;  %v3345_v42 = vld [vmem:[#allocation2 + $0x48] sm:$0xe] }
  0xf2   : > { %4666 = vmatprep.subr.bf16.mxu0 %v4837_v37  ;;  %v4140_v7 = vcombine.low %v3073_v54, %v3083_v2  ;;  %v3102_v31 = vrot.slane %v3101_v50, 4  ;;  %v3130_v52 = vrot.slane %v3128_v16, 5  ;;  %v3378_v59 = vrot.slane %v5798_v27, 5  ;;  %v4842_v27 = vld [vmem:[%s6188_s3 + $0x200] sm:$0xff]  }
  0xf3   : > { %4702 = vmatpush3.bf16.msra.mxu1 %v4837_v37  ;;  %v3097_v63 = vsel %vm5209_vm1, %v3092_v23, %v3096_v12  ;;  %v3115_v10 = vor.u32 %v3114_v25, %v3111_v9  ;;  %v3376_v11 = vsel %vm5466_vm8, %v4151_v34, %v3375_v45  ;;  %v4155_v24 = vrot.slane %v3345_v42, 9 }
  0xf4   : > { %4619 = vmatmul.mubr.bf16.gmra.mxu0 %v4836_v5  ;;  %4651 = vmatmul.mubr.bf16.gmra.mxu1 %v4140_v7  ;;  %v3120_v5 = vrot.slane %v3118_v30, 5  ;;  %v3107_v32 = vsel %vm5209_vm1, %v3102_v31, %v3106_v56  ;;  %v3379_v28 = vsel %vm5466_vm8, %v5905_v58, %v3378_v59  ;;  %v3403_v35 = vrot.slane %v5866_v39, 5 }
  0xf5   : > { %4667 = vmatpush3.bf16.msra.mxu0 %v4837_v37  ;;  %4622 = vmatprep.mubr.bf16.mxu0 %v4839_v0  ;;  %v3124_v37 = vrot.slane %v3122_v20, 4  ;;  %v4141_v0 = vcombine.low %v3097_v63, %v3107_v32  ;;  %v3116_v47 = vrot.slane %v3115_v10, 4  ;;  %v4159_v45 = vcombine.low %v3376_v11, %v3379_v28 }
  0xf6   : > { %4668 = vmatprep.subr.bf16.mxu0 %v4838_v51  ;;  %4695 = vmatprep.subr.bf16.mxu1 %v4838_v51  ;;  %v4152_v4 = vrot.slane %v3342_v43, 9  ;;  %v3404_v54 = vsel %vm5466_vm8, %v4155_v24, %v3403_v35  ;;  %v3405_v12 = vrot.slane %v3403_v35, 4  ;;  %v3382_v55 = vrot.slane %v5813_v61, 5 }
  0xf7   : > { %4703 = vmatpush3.bf16.msra.mxu1 %v4838_v51  ;;  %v3125_v49 = vor.u32 %v3124_v37, %v3120_v5  ;;  %4654 = vmatprep.mubr.bf16.mxu1 %v4141_v0  ;;  %v3121_v39 = vsel %vm5209_vm1, %v3116_v47, %v3120_v5  ;;  %v3385_v58 = vrot.slane %v5822_v62, 5  ;;  %v4156_v2 = vrot.slane %v3346_v14, 9 }
  0xf8   : > { %4696 = vmatprep.subr.bf16.mxu1 %v4841_v22  ;;  %v4153_v46 = vrot.slane %v3343_v29, 9  ;;  %v3383_v61 = vsel %vm5466_vm8, %v4152_v4, %v3382_v55  ;;  %v3384_v7 = vrot.slane %v3382_v55, 4  ;;  %v3414_v62 = vsel %vm5466_vm8, %v5899_v44, %v3413_v40 }
  0xf9   : > { %4669 = vmatpush3.bf16.msra.mxu0 %v4838_v51  ;;  %v3406_v51 = vrot.slane %v5871_v53, 5  ;;  %v3126_v13 = vrot.slane %v3125_v49, 4  ;;  %v3347_v53 = vld [vmem:[#allocation2 + $0x60] sm:$0xe]  ;;  %v3389_v48 = vrot.slane %v5837_v41, 5  ;;  %v3411_v23 = vsel %vm5466_vm8, %v4156_v2, %v3410_v1 }
  0xfa   : > { %4670 = vmatprep.subr.bf16.mxu0 %v4841_v22  ;;  %v3386_v30 = vsel %vm5466_vm8, %v3384_v7, %v3385_v58  ;;  %v3392_v9 = vrot.slane %v5839_v8, 5  ;;  %v4157_v20 = vrot.slane %v3347_v53, 9  ;;  %v3417_v41 = vrot.slane %v5901_v3, 5  ;;  %v3348_v8 = vld [vmem:[#allocation2 + $0x6c] sm:$0xe] }
  0xfb   : > { %v3131_v56 = vsel %vm5209_vm1, %v3126_v13, %v3130_v52  ;;  %4704 = vmatpush3.bf16.msra.mxu1 %v4841_v22  ;;  %v3407_v21 = vsel %vm5466_vm8, %v3405_v12, %v3406_v51  ;;  %v4160_v33 = vcombine.low %v3383_v61, %v3386_v30  ;;  %v3390_v40 = vsel %vm5466_vm8, %v4153_v46, %v3389_v48 }
  0xfc   : > { %4623 = vmatmul.mubr.bf16.gmra.mxu0 %v4840_v36  ;;  %v4142_v50 = vcombine.low %v3121_v39, %v3131_v56  ;;  %4697 = vmatprep.subr.bf16.mxu1 %v4842_v27  ;;  %v4163_v60 = vcombine.low %v3404_v54, %v3407_v21  ;;  %v3391_v44 = vrot.slane %v3389_v48, 4  ;;  %v3420_v16 = vrot.slane %v5912_v57, 5 }
  0xfd   : > { %4671 = vmatpush3.bf16.msra.mxu0 %v4841_v22  ;;  %4674 = vmatprep.mubr.bf16.mxu0 %v4159_v45  ;;  %v3344_v22 = vld [vmem:[#allocation2 + $0x3c] sm:$0xe]  ;;  %v3396_v19 = vrot.slane %v5847_v26, 5  ;;  %v3399_v1 = vrot.slane %v5849_v6, 5  ;;  %v3418_v25 = vsel %vm5466_vm8, %v4157_v20, %v3417_v41  ;;  %v3419_v5 = vrot.slane %v3417_v41, 4 }
  0xfe   : > { %4672 = vmatprep.subr.bf16.mxu0 %v4842_v27  ;;  %4655 = vmatmul.mubr.bf16.gmra.mxu1 %v4142_v50  ;;  %v4154_v15 = vrot.slane %v3344_v22, 9  ;;  %v3393_v31 = vsel %vm5466_vm8, %v3391_v44, %v3392_v9  ;;  %v3424_v42 = vrot.slane %v5919_v17, 5  ;;  %v4164_v63 = vcombine.low %v3411_v23, %v3414_v62 }
  0xff   : > { %4705 = vmatpush3.bf16.msra.mxu1 %v4842_v27  ;;  %4682 = vmatprep.mubr.bf16.mxu1 %v4163_v60  ;;  %v4161_v34 = vcombine.low %v3390_v40, %v3393_v31  ;;  %v3398_v3 = vrot.slane %v3396_v19, 4  ;;  %v3421_v57 = vsel %vm5466_vm8, %v3419_v5, %v3420_v16  ;;  %v4158_v6 = vrot.slane %v3348_v8, 9 }
 0x100   : > { %v3397_v26 = vsel %vm5466_vm8, %v4154_v15, %v3396_v19  ;;  %v4165_v36 = vcombine.low %v3418_v25, %v3421_v57  ;;  %v3426_v52 = vrot.slane %v3424_v42, 4  ;;  %v3427_v59 = vrot.slane %v5921_v18, 5 }
 0x101   : > { %4673 = vmatpush3.bf16.msra.mxu0 %v4842_v27  ;;  %v3400_v37 = vsel %vm5466_vm8, %v3398_v3, %v3399_v1  ;;  %v3425_v17 = vsel %vm5466_vm8, %v4158_v6, %v3424_v42 }
 0x102   : > { %v4162_v43 = vcombine.low %v3397_v26, %v3400_v37  ;;  %v3428_v32 = vsel %vm5466_vm8, %v3426_v52, %v3427_v59 }
 0x103   : > { %v4166_v10 = vcombine.low %v3425_v17, %v3428_v32 }
 0x104   : > { %4675 = vmatmul.mubr.bf16.vlgmr.msra.gmra.mxu0 %v4160_v33 }
 0x105   : > { %4678 = vmatprep.mubr.bf16.mxu0 %v4161_v34 }
 0x106   : > { %4683 = vmatmul.mubr.bf16.vlgmr.msra.gmra.mxu1 %v4164_v63 }
 0x107   : > { %4686 = vmatprep.mubr.bf16.mxu1 %v4165_v36 }
 0x10c   : > { %4679 = vmatmul.mubr.bf16.gmra.mxu0 %v4162_v43 }
 0x10e   : > { %4687 = vmatmul.mubr.bf16.gmra.mxu1 %v4166_v10 }
 0x12d   : > { %v4452_v11 = vpop.f32.mrf.mxu1 }
 0x12f   : > { %v1356_v24 = vpop.f32.mrf.mxu1 }
 0x131   : > { %v4453_v0 = vpop.f32.mrf.mxu1  ;;  %v4420_v49 = vpop.f32.mrf.mxu0 }
 0x132   : > { %v1365_v27 = vadd.f32 %v4452_v11, %v4420_v49 }
 0x133   : > { %v1163_v28 = vpop.f32.mrf.mxu0  ;;  %v1359_v18 = vpop.f32.mrf.mxu1 }
 0x134   : > { %v1357_v35 = vadd.f32 %v1356_v24, %v1163_v28 }
 0x135   : > { %v4421_v14 = vpop.f32.mrf.mxu0  ;;  %v4456_v51 = vpop.f32.mrf.mxu1 }
 0x136   : > { %v1368_v29 = vadd.f32 %v4453_v0, %v4421_v14 }
 0x137   : > { %v1166_v47 = vpop.f32.mrf.mxu0  ;;  %v1372_v4 = vpop.f32.mrf.mxu1 }
 0x138   : > { %v1360_v45 = vadd.f32 %v1359_v18, %v1166_v47 }
 0x139   : > { %v4457_v13 = vpop.f32.mrf.mxu1 }
 0x13b   : > { %v1375_v12 = vpop.f32.mrf.mxu1 }
 0x140   : > { %v4424_v38 = vpop.f32.mrf.mxu0 }
 0x141   : > { %v1381_v54 = vadd.f32 %v4456_v51, %v4424_v38 }
 0x142   : > { %v1179_v55 = vpop.f32.mrf.mxu0 }
 0x143   : > { %v1373_v39 = vadd.f32 %v1372_v4, %v1179_v55 }
 0x144   : > { %v4425_v58 = vpop.f32.mrf.mxu0  ;;  %v4460_v46 = vpop.f32.mrf.mxu1 }
 0x145   : > { %v1384_v2 = vadd.f32 %v4457_v13, %v4425_v58 }
 0x146   : > { %v1182_v53 = vpop.f32.mrf.mxu0  ;;  %v1388_v21 = vpop.f32.mrf.mxu1 }
 0x147   : > { %v1376_v56 = vadd.f32 %v1375_v12, %v1182_v53 }
 0x148   : > { %v4461_v7 = vpop.f32.mrf.mxu1 }
 0x14a   : > { %v1391_v22 = vpop.f32.mrf.mxu1 }
 0x14c   : > { %v4428_v61 = vpop.f32.mrf.mxu0 }
 0x14d   : > { %v1397_v50 = vadd.f32 %v4460_v46, %v4428_v61 }
 0x14e   : > { %v1195_v60 = vpop.f32.mrf.mxu0 }
 0x14f   : > { %v1389_v62 = vadd.f32 %v1388_v21, %v1195_v60 }
 0x150   : > { %v4429_v48 = vpop.f32.mrf.mxu0 }
 0x151   : > { %v1400_v30 = vadd.f32 %v4461_v7, %v4429_v48 }
 0x152   : > { %v1198_v23 = vpop.f32.mrf.mxu0 }
 0x153   : > { %v5995_v9 = vadd.f32 %v1391_v22, %v1198_v23 }
 0x154   : > { %v4464_v20 = vpop.f32.mrf.mxu1 }
 0x156   : > { %v1404_v33 = vpop.f32.mrf.mxu1 }
 0x158   : > { %v4465_v40 = vpop.f32.mrf.mxu1 }
 0x15a   : > { %v1407_v44 = vpop.f32.mrf.mxu1 }
 0x15c   : > { %v4432_v41 = vpop.f32.mrf.mxu0  ;;  %v4516_v16 = vpop.f32.mrf.mxu1 }
 0x15d   : > { %v1413_v15 = vadd.f32 %v4464_v20, %v4432_v41 }
 0x15e   : > { %v1211_v19 = vpop.f32.mrf.mxu0  ;;  %v1873_v1 = vpop.f32.mrf.mxu1 }
 0x15f   : > { %v1405_v8 = vadd.f32 %v1404_v33, %v1211_v19 }
 0x160   : > { %v4433_v31 = vpop.f32.mrf.mxu0  ;;  %v4517_v25 = vpop.f32.mrf.mxu1 }
 0x161   : > { %v1416_v5 = vadd.f32 %v4465_v40, %v4433_v31 }
 0x162   : > { %v1214_v34 = vpop.f32.mrf.mxu0  ;;  %v1876_v3 = vpop.f32.mrf.mxu1 }
 0x163   : > { %v1408_v42 = vadd.f32 %v1407_v44, %v1214_v34 }
 0x164   : > { %v4484_v63 = vpop.f32.mrf.mxu0  ;;  %v4520_v57 = vpop.f32.mrf.mxu1 }
 0x165   : > { %v1697_v26 = vadd.f32 %v4484_v63, %v1365_v27 }
 0x166   : > { %v1632_v6 = vpop.f32.mrf.mxu0  ;;  %v1889_v36 = vpop.f32.mrf.mxu1 }
 0x167   : > { %v5997_v37 = vadd.f32 %v4516_v16, %v1697_v26  ;;  %v1695_v52 = vadd.f32 %v1632_v6, %v1357_v35 }
 0x168   : > { %v4485_v59 = vpop.f32.mrf.mxu0  ;;  %v4521_v43 = vpop.f32.mrf.mxu1 }
 0x169   : > { %v5999_v17 = vadd.f32 %v1873_v1, %v1695_v52  ;;  %v1698_v32 = vadd.f32 %v4485_v59, %v1368_v29 }
 0x16a   : > { %v1635_v10 = vpop.f32.mrf.mxu0  ;;  %v1892_v11 = vpop.f32.mrf.mxu1 }
 0x16b   : > { %v6001_v24 = vadd.f32 %v4517_v25, %v1698_v32  ;;  %v1696_v0 = vadd.f32 %v1635_v10, %v1360_v45 }
 0x16c   : > { %v4488_v49 = vpop.f32.mrf.mxu0  ;;  %v4524_v28 = vpop.f32.mrf.mxu1 }
 0x16d   : > { %v6003_v18 = vadd.f32 %v1876_v3, %v1696_v0  ;;  %v1701_v27 = vadd.f32 %v4488_v49, %v1381_v54 }
 0x16e   : > { %v1648_v14 = vpop.f32.mrf.mxu0  ;;  %v1905_v47 = vpop.f32.mrf.mxu1 }
 0x16f   : > { %v6005_v51 = vadd.f32 %v4520_v57, %v1701_v27  ;;  %v1699_v35 = vadd.f32 %v1648_v14, %v1373_v39 }
 0x170   : > { %v4489_v4 = vpop.f32.mrf.mxu0  ;;  %v4525_v13 = vpop.f32.mrf.mxu1 }
 0x171   : > { %v6007_v38 = vadd.f32 %v1889_v36, %v1699_v35  ;;  %v1702_v29 = vadd.f32 %v4489_v4, %v1384_v2 }
 0x172   : > { %v1651_v12 = vpop.f32.mrf.mxu0  ;;  %v1908_v55 = vpop.f32.mrf.mxu1 }
 0x173   : > { %v6009_v58 = vadd.f32 %v4521_v43, %v1702_v29  ;;  %v1700_v45 = vadd.f32 %v1651_v12, %v1376_v56 }
 0x174   : > { %v4492_v46 = vpop.f32.mrf.mxu0  ;;  %v4528_v53 = vpop.f32.mrf.mxu1 }
 0x175   : > { %v6011_v21 = vadd.f32 %v1892_v11, %v1700_v45  ;;  %v1705_v54 = vadd.f32 %v4492_v46, %v1397_v50 }
 0x176   : > { %v1664_v61 = vpop.f32.mrf.mxu0  ;;  %v1921_v7 = vpop.f32.mrf.mxu1 }
 0x177   : > { %v6013_v60 = vadd.f32 %v4524_v28, %v1705_v54  ;;  %v1703_v39 = vadd.f32 %v1664_v61, %v1389_v62 }
 0x178   : > { %v4493_v48 = vpop.f32.mrf.mxu0  ;;  %v4529_v22 = vpop.f32.mrf.mxu1 }
 0x179   : > { %v6015_v23 = vadd.f32 %v1905_v47, %v1703_v39  ;;  %v1706_v2 = vadd.f32 %v4493_v48, %v1400_v30 }
 0x17a   : > { %v1667_v20 = vpop.f32.mrf.mxu0  ;;  %v1924_v33 = vpop.f32.mrf.mxu1 }
 0x17b   : > { %v6017_v40 = vadd.f32 %v4525_v13, %v1706_v2  ;;  %v1704_v56 = vadd.f32 %v1667_v20, %v5995_v9 }
 0x17c   : > { %v4496_v44 = vpop.f32.mrf.mxu0 }
 0x17d   : > { %v6020_v41 = vadd.f32 %v1908_v55, %v1704_v56  ;;  %v1709_v50 = vadd.f32 %v4496_v44, %v1413_v15 }
 0x17e   : > { %v1680_v16 = vpop.f32.mrf.mxu0  ;;  %v6022_v19 = vpop.f32.mrf.mxu1 }
 0x17f   : > { %v6024_v1 = vadd.f32 %v4528_v53, %v1709_v50  ;;  %v1707_v62 = vadd.f32 %v1680_v16, %v1405_v8 }
 0x180   : > { %v4497_v31 = vpop.f32.mrf.mxu0  ;;  %v6026_v25 = vpop.f32.mrf.mxu1 }
 0x181   : > { %v6028_v30 = vadd.f32 %v1921_v7, %v1707_v62  ;;  %v1710_v34 = vadd.f32 %v4497_v31, %v1416_v5 }
 0x182   : > { %v1683_v3 = vpop.f32.mrf.mxu0  ;;  %v6030_v63 = vpop.f32.mrf.mxu1 }
 0x183   : > { %v6032_v9 = vadd.f32 %v4529_v22, %v1710_v34  ;;  %v1708_v57 = vadd.f32 %v1683_v3, %v1408_v42 }
 0x184   : > { %v4548_v26 = vpop.f32.mrf.mxu0  ;;  %v6034_v15 = vpop.f32.mrf.mxu1 }
 0x185   : > { %v6036_v6 = vadd.f32 %v1924_v33, %v1708_v57 }
 0x186   : > { %v2298_v36 = vpop.f32.mrf.mxu0  ;;  %v6038_v52 = vpop.f32.mrf.mxu1 }
 0x187   : > { %6204 = vst [vmem:[#allocation3_spill] sm:$0xff] %v6036_v6 }
 0x188   : > { %v4549_v8 = vpop.f32.mrf.mxu0  ;;  %v6040_v59 = vpop.f32.mrf.mxu1 }
 0x18a   : > { %v2301_v43 = vpop.f32.mrf.mxu0  ;;  %v6042_v32 = vpop.f32.mrf.mxu1 }
 0x18c   : > { %v4552_v5 = vpop.f32.mrf.mxu0  ;;  %v6044_v10 = vpop.f32.mrf.mxu1 }
 0x18e   : > { %v2314_v11 = vpop.f32.mrf.mxu0  ;;  %v6046_v0 = vpop.f32.mrf.mxu1 }
 0x190   : > { %v4553_v42 = vpop.f32.mrf.mxu0  ;;  %v6048_v49 = vpop.f32.mrf.mxu1 }
 0x192   : > { %v2317_v28 = vpop.f32.mrf.mxu0  ;;  %v6050_v27 = vpop.f32.mrf.mxu1 }
 0x194   : > { %v4556_v14 = vpop.f32.mrf.mxu0  ;;  %v6052_v35 = vpop.f32.mrf.mxu1 }
 0x195   : > { %6205 = vst [vmem:[#allocation4_spill] sm:$0xff] %v6052_v35  ;;  %v2365_v35 = vadd.f32 %v2314_v11, %v6007_v38 }
 0x196   : > { %v2330_v47 = vpop.f32.mrf.mxu0 }
 0x198   : > { %v4557_v4 = vpop.f32.mrf.mxu0  ;;  %v6054_v29 = vpop.f32.mrf.mxu1 }
 0x199   : > { %6206 = vst [vmem:[#allocation5_spill] sm:$0xff] %v6054_v29 }
 0x19a   : > { %v2333_v13 = vpop.f32.mrf.mxu0  ;;  %v6056_v55 = vpop.f32.mrf.mxu1 }
 0x19b   : > { %6207 = vst [vmem:[#allocation6_spill] sm:$0xff] %v6056_v55 }
 0x19c   : > { %v4560_v12 = vpop.f32.mrf.mxu0  ;;  %v6058_v46 = vpop.f32.mrf.mxu1 }
 0x19d   : > { %6208 = vst [vmem:[#allocation7_spill] sm:$0xff] %v6058_v46 }
 0x19e   : > { %v2346_v45 = vpop.f32.mrf.mxu0  ;;  %v6060_v54 = vpop.f32.mrf.mxu1 }
 0x19f   : > { %6209 = vst [vmem:[#allocation8_spill] sm:$0xff] %v6060_v54 }
 0x1a0   : > { %v4561_v53 = vpop.f32.mrf.mxu0 }
 0x1a1   : > { %v6062_v39 = vpop.f32.mrf.mxu1 }
 0x1a2   : > { %v2349_v61 = vpop.f32.mrf.mxu0  ;;  %6210 = vst [vmem:[#allocation9_spill] sm:$0xff] %v6062_v39 }
 0x1a3   : > { %v6064_v22 = vpop.f32.mrf.mxu1 }
 0x1a4   : > { %v4612_v7 = vpop.f32.mrf.mxu0  ;;  %6211 = vst [vmem:[#allocation10_spill] sm:$0xff] %v6064_v22 }
 0x1a5   : > { %v6066_v20 = vpop.f32.mrf.mxu1 }
 0x1a6   : > { %v2837_v48 = vpop.f32.mrf.mxu0  ;;  %6212 = vst [vmem:[#allocation11_spill] sm:$0xff] %v6066_v20 }
 0x1a7   : > { %v6068_v56 = vpop.f32.mrf.mxu1 }
 0x1a8   : > { %v4613_v2 = vpop.f32.mrf.mxu0  ;;  %6213 = vst [vmem:[#allocation12_spill] sm:$0xff] %v6068_v56 }
 0x1a9   : > { %v6070_v50 = vpop.f32.mrf.mxu1 }
 0x1aa   : > { %v2840_v33 = vpop.f32.mrf.mxu0  ;;  %6214 = vst [vmem:[#allocation13_spill] sm:$0xff] %v6070_v50  ;;  %v2363_v50 = vadd.f32 %v4548_v26, %v5997_v37 }
 0x1ab   : > { %v6072_v62 = vpop.f32.mrf.mxu1 }
 0x1ac   : > { %v4616_v44 = vpop.f32.mrf.mxu0  ;;  %6215 = vst [vmem:[#allocation14_spill] sm:$0xff] %v6072_v62  ;;  %v2361_v62 = vadd.f32 %v2298_v36, %v5999_v17  ;;  %v2660_v37 = vadd.f32 %v6022_v19, %v2363_v50  ;;  %v2366_v17 = vadd.f32 %v2317_v28, %v6011_v21  ;;  %v2369_v36 = vadd.f32 %v2330_v47, %v6015_v23  ;;  %v6221_v28 = vld [vmem:[#allocation3_spill] sm:$0xff] }
 0x1ad   : > { %v6074_v34 = vpop.f32.mrf.mxu1  ;;  %v2375_v19 = vadd.f32 %v4560_v12, %v6024_v1  ;;  %v2373_v21 = vadd.f32 %v2346_v45, %v6028_v30  ;;  %v6225_v45 = vld [vmem:[#allocation9_spill] sm:$0xff] }
 0x1ae   : > { %v2853_v16 = vpop.f32.mrf.mxu0  ;;  %6216 = vst [vmem:[#allocation15_spill] sm:$0xff] %v6074_v34  ;;  %v2364_v34 = vadd.f32 %v4549_v8, %v6001_v24  ;;  %v2371_v24 = vadd.f32 %v4556_v14, %v6013_v60  ;;  %v2658_v26 = vadd.f32 %v6026_v25, %v2361_v62  ;;  %v2662_v25 = vadd.f32 %v6040_v59, %v2365_v35  ;;  %v6223_v35 = vld [vmem:[#allocation5_spill] sm:$0xff] }
 0x1af   : > { %v6078_v57 = vpop.f32.mrf.mxu1  ;;  %v2666_v1 = vadd.f32 %v6048_v49, %v2369_v36  ;;  %v2374_v59 = vadd.f32 %v2349_v61, %v6221_v28 }
 0x1b0   : > { %v4617_v31 = vpop.f32.mrf.mxu0  ;;  %6218 = vst [vmem:[#allocation17_spill] sm:$0xff] %v6078_v57  ;;  %v2362_v57 = vadd.f32 %v2301_v43, %v6003_v18  ;;  %v2661_v18 = vadd.f32 %v6030_v63, %v2364_v34  ;;  %v2902_v63 = vadd.f32 %v4612_v7, %v2660_v37  ;;  %v2900_v11 = vadd.f32 %v2837_v48, %v2658_v26  ;;  %v6228_v34 = vld [vmem:[#allocation7_spill] sm:$0xff]  ;;  %v6229_v37 = vld [vmem:[#allocation8_spill] sm:$0xff] }
 0x1b1   : > { %v2904_v49 = vadd.f32 %v2853_v16, %v2662_v25 }
 0x1b2   : > { %v6076_v3 = vpop.f32.mrf.mxu0  ;;  %v2659_v38 = vadd.f32 %v6034_v15, %v2362_v57  ;;  %v2668_v15 = vadd.f32 %v6046_v0, %v2371_v24  ;;  %v3327_v7 = vadd.f32 %v6225_v45, %v2902_v63 }
 0x1b3   : > { %6217 = vst [vmem:[#allocation16_spill] sm:$0xff] %v6076_v3 }
 0x1b4   : > { %v4620_v54 = vpop.f32.mrf.mxu0  ;;  %v6080_v22 = vpop.f32.mrf.mxu1  ;;  %v2901_v0 = vadd.f32 %v2840_v33, %v2659_v38  ;;  %v2671_v33 = vadd.f32 %v6229_v37, %v2374_v59  ;;  %v6231_v38 = vld [vmem:[#allocation13_spill] sm:$0xff] }
 0x1b5   : > { %6219 = vst [vmem:[#allocation18_spill] sm:$0xff] %v6080_v22  ;;  %v2367_v22 = vadd.f32 %v4552_v5, %v6005_v51  ;;  %v2372_v51 = vadd.f32 %v4557_v4, %v6017_v40  ;;  %v2663_v5 = vadd.f32 %v6044_v10, %v2366_v17  ;;  %v2672_v4 = vadd.f32 %v6223_v35, %v2375_v19  ;;  %v6224_v10 = vld [vmem:[#allocation6_spill] sm:$0xff] }
 0x1b6   : > { %v2869_v46 = vpop.f32.mrf.mxu0  ;;  %v6082_v39 = vpop.f32.mrf.mxu1  ;;  %v6232_v19 = vld [vmem:[#allocation14_spill] sm:$0xff] }
 0x1b7   : > { %6220 = vst [vmem:[#allocation19_spill] sm:$0xff] %v6082_v39  ;;  %v2368_v39 = vadd.f32 %v4553_v42, %v6009_v58  ;;  %v2370_v58 = vadd.f32 %v2333_v13, %v6020_v41  ;;  %v2664_v60 = vadd.f32 %v6038_v52, %v2367_v22  ;;  %v2903_v41 = vadd.f32 %v4613_v2, %v2661_v18  ;;  %v6226_v22 = vld [vmem:[#allocation10_spill] sm:$0xff]  ;;  %v6230_v18 = vld [vmem:[#allocation12_spill] sm:$0xff] }
 0x1b8   : > { %v4621_v20 = vpop.f32.mrf.mxu0  ;;  %v6085_v55 = vpop.f32.mrf.mxu1  ;;  %v2669_v30 = vadd.f32 %v6050_v27, %v2372_v51  ;;  %v2376_v52 = vadd.f32 %v4561_v53, %v6032_v9  ;;  %v2670_v13 = vadd.f32 %v6224_v10, %v2373_v21  ;;  %v3325_v9 = vadd.f32 %v6226_v22, %v2900_v11  ;;  %v6227_v53 = vld [vmem:[#allocation11_spill] sm:$0xff] }
 0x1b9   : > { %v2665_v23 = vadd.f32 %v6042_v32, %v2368_v39  ;;  %v6222_v32 = vld [vmem:[#allocation4_spill] sm:$0xff]  ;;  %v2906_v39 = vadd.f32 %v4616_v44, %v2664_v60  ;;  %v3328_v61 = vadd.f32 %v6227_v53, %v2903_v41  ;;  %v2910_v2 = vadd.f32 %v4620_v54, %v2668_v15  ;;  %v6233_v54 = vld [vmem:[#allocation15_spill] sm:$0xff] }
 0x1ba   : > { %v2872_v56 = vpop.f32.mrf.mxu0  ;;  %v6092_v3 = vpop.f32.mrf.mxu1  ;;  %v2667_v47 = vadd.f32 %v6222_v32, %v2370_v58  ;;  %v2908_v50 = vadd.f32 %v2869_v46, %v2666_v1  ;;  %v2673_v57 = vadd.f32 %v6228_v34, %v2376_v52  ;;  %v2911_v17 = vadd.f32 %v4621_v20, %v2669_v30  ;;  %v6234_v60 = vld [vmem:[#allocation16_spill] sm:$0xff] }
 0x1bb   : > { %v2907_v48 = vadd.f32 %v4617_v31, %v2665_v23  ;;  %v3326_v44 = vadd.f32 %v6230_v18, %v2901_v0  ;;  %v3331_v58 = vadd.f32 %v6231_v38, %v2906_v39  ;;  %v3329_v46 = vadd.f32 %v6232_v19, %v2904_v49 }
 0x1bc   : > { %v6089_v29 = vpop.f32.mrf.mxu0  ;;  %v2909_v24 = vadd.f32 %v2872_v56, %v2667_v47  ;;  %v2905_v25 = vadd.f32 %v6234_v60, %v2663_v5  ;;  %v6235_v63 = vld [vmem:[#allocation18_spill] sm:$0xff]  ;;  %v3336_v30 = vadd.f32 %v6085_v55, %v2911_v17 }
 0x1bd   : > { %v3332_v21 = vadd.f32 %v6233_v54, %v2907_v48  ;;  %v3335_v20 = vadd.f32 %v6235_v63, %v2910_v2  ;;  %v2914_v28 = vadd.f32 %v6089_v29, %v2672_v4 }
 0x1be   : > { %v6097_v6 = vpop.f32.mrf.mxu0  ;;  %v6112_v43 = vpop.f32.mrf.mxu1  ;;  %v6236_v56 = vld [vmem:[#allocation19_spill] sm:$0xff]  ;;  %v3334_v52 = vadd.f32 %v6092_v3, %v2909_v24 }
 0x1bf   : > { %v3333_v15 = vadd.f32 %v6236_v56, %v2908_v50  ;;  %v2912_v59 = vadd.f32 %v6097_v6, %v2670_v13  ;;  %v6237_v50 = vld [vmem:[#allocation17_spill] sm:$0xff] }
 0x1c0   : > { %v6106_v8 = vpop.f32.mrf.mxu0  ;;  %v6119_v42 = vpop.f32.mrf.mxu1  ;;  %v3330_v34 = vadd.f32 %v6237_v50, %v2905_v25 }
 0x1c1   : > { %v2915_v0 = vadd.f32 %v6106_v8, %v2673_v57 }
 0x1c2   : > { %v2888_v40 = vpop.f32.mrf.mxu0  ;;  %v6128_v12 = vpop.f32.mrf.mxu1 }
 0x1c3   : > { %v2913_v45 = vadd.f32 %v2888_v40, %v2671_v33 }
 0x1c4   : > { %v4676_v14 = vpop.f32.mrf.mxu0  ;;  %v6133_v62 = vpop.f32.mrf.mxu1 }
 0x1c5   : > { %v3624_v16 = vadd.f32 %v4676_v14, %v3327_v7 }
 0x1c6   : > { %v3559_v27 = vpop.f32.mrf.mxu0  ;;  %v4684_v31 = vpop.f32.mrf.mxu1 }
 0x1c7   : > { %v3622_v36 = vadd.f32 %v3559_v27, %v3325_v9  ;;  %v3632_v7 = vadd.f32 %v4684_v31, %v3335_v20  ;;  %v3741_v3 = vmul.f32 %v3624_v16, %v3624_v16 }
 0x1c8   : > { %v4677_v26 = vpop.f32.mrf.mxu0  ;;  %v3591_v11 = vpop.f32.mrf.mxu1 }
 0x1c9   : > { %v3625_v51 = vadd.f32 %v4677_v26, %v3328_v61  ;;  %v3739_v32 = vmul.f32 %v3622_v36, %v3622_v36  ;;  %v3630_v49 = vadd.f32 %v3591_v11, %v3333_v15 }
 0x1ca   : > { %v3562_v23 = vpop.f32.mrf.mxu0  ;;  %v4685_v5 = vpop.f32.mrf.mxu1 }
 0x1cb   : > { %v4219_v41 = vpack.c.bf16 %v3625_v51, %v3624_v16  ;;  %v3623_v1 = vadd.f32 %v3562_v23, %v3326_v44  ;;  %v6150_v39 = vadd.f32 %v4685_v5, %v3336_v30  ;;  %v3742_v48 = vmul.f32 %v3625_v51, %v3625_v51 }
 0x1cc   : > { %v4680_v14 = vpop.f32.mrf.mxu0  ;;  %v3594_v6 = vpop.f32.mrf.mxu1  ;;  %v3339_v44 = vadd.f32 %v6112_v43, %v2914_v28 }
 0x1cd   : > { %4251 = vst [vmem:[%s5003_s14 + $0x8] sm:$0xff] %v4219_v41   ;;  %v4214_v47 = vpack.c.bf16 %v3623_v1, %v3622_v36  ;;  %v3718_v35 = vadd.f32 %v3623_v1, %v3622_v36  ;;  %v3740_v10 = vmul.f32 %v3623_v1, %v3623_v1  ;;  %v4239_v27 = vpack.c.bf16 %v6150_v39, %v3632_v7 }
 0x1ce   : > { %v3575_v55 = vpop.f32.mrf.mxu0  ;;  %v3631_v22 = vadd.f32 %v3594_v6, %v3334_v52  ;;  %v3628_v8 = vadd.f32 %v4680_v14, %v3331_v58  ;;  %v4688_v40 = vpop.f32.mrf.mxu1  ;;  %v3337_v36 = vadd.f32 %v6119_v42, %v2912_v59  ;;  %v3747_v1 = vmul.f32 %v3630_v49, %v3630_v49 }
 0x1cf   : > { %4215 = vst [vmem:[%s5003_s14] sm:$0xff] %v4214_v47   ;;  %v3719_v29 = vadd.f32 %v3718_v35, %v3624_v16  ;;  %v3755_v4 = vadd.f32 %v3740_v10, %v3739_v32  ;;  %v3626_v13 = vadd.f32 %v3575_v55, %v3329_v46  ;;  %4255 = vst [vmem:[%s5003_s14 + $0x28] sm:$0xff] %v4239_v27  }
 0x1d0   : > { %v4681_v9 = vpop.f32.mrf.mxu0  ;;  %v4234_v57 = vpack.c.bf16 %v3631_v22, %v3630_v49  ;;  %v3607_v26 = vpop.f32.mrf.mxu1  ;;  %v3340_v16 = vadd.f32 %v6128_v12, %v2915_v0  ;;  %v3636_v19 = vadd.f32 %v4688_v40, %v3339_v44  ;;  %v3745_v20 = vmul.f32 %v3628_v8, %v3628_v8 }
 0x1d1   : > { %v3756_v53 = vadd.f32 %v3755_v4, %v3741_v3  ;;  %v3720_v61 = vadd.f32 %v3719_v29, %v3625_v51  ;;  %v3629_v2 = vadd.f32 %v4681_v9, %v3332_v21  ;;  %v3743_v17 = vmul.f32 %v3626_v13, %v3626_v13 }
 0x1d2   : > { %v3578_v37 = vpop.f32.mrf.mxu0  ;;  %4254 = vst [vmem:[%s5003_s14 + $0x20] sm:$0xff] %v4234_v57   ;;  %v3338_v51 = vadd.f32 %v6133_v62, %v2913_v45  ;;  %v4689_v58 = vpop.f32.mrf.mxu1  ;;  %v3634_v25 = vadd.f32 %v3607_v26, %v3337_v36  ;;  %v3748_v28 = vmul.f32 %v3631_v22, %v3631_v22  ;;  %v3749_v32 = vmul.f32 %v3632_v7, %v3632_v7 }
 0x1d3   : > { %v3721_v33 = vadd.f32 %v3720_v61, %v3626_v13  ;;  %v3757_v24 = vadd.f32 %v3756_v53, %v3742_v48  ;;  %v4229_v18 = vpack.c.bf16 %v3629_v2, %v3628_v8  ;;  %v3627_v31 = vadd.f32 %v3578_v37, %v3330_v34 }
 0x1d4   : > { %v3637_v46 = vadd.f32 %v4689_v58, %v3340_v16  ;;  %v3610_v43 = vpop.f32.mrf.mxu1  ;;  %v3746_v15 = vmul.f32 %v3629_v2, %v3629_v2  ;;  %v3750_v35 = vmul.f32 %v6150_v39, %v6150_v39  ;;  %v3751_v45 = vmul.f32 %v3634_v25, %v3634_v25 }
 0x1d5   : > { %v3758_v38 = vadd.f32 %v3757_v24, %v3743_v17  ;;  %4253 = vst [vmem:[%s5003_s14 + $0x18] sm:$0xff] %v4229_v18   ;;  %v4224_v54 = vpack.c.bf16 %v3627_v31, %v3626_v13  ;;  %v3722_v21 = vadd.f32 %v3721_v33, %v3627_v31  ;;  %v3744_v60 = vmul.f32 %v3627_v31, %v3627_v31 }
 0x1d6   : > { %v4249_v12 = vpack.c.bf16 %v3637_v46, %v3636_v19  ;;  %v3635_v63 = vadd.f32 %v3610_v43, %v3338_v51  ;;  %v3753_v13 = vmul.f32 %v3636_v19, %v3636_v19  ;;  %v3754_v27 = vmul.f32 %v3637_v46, %v3637_v46 }
 0x1d7   : > { %4252 = vst [vmem:[%s5003_s14 + $0x10] sm:$0xff] %v4224_v54   ;;  %v3723_v23 = vadd.f32 %v3722_v21, %v3628_v8  ;;  %v3759_v42 = vadd.f32 %v3758_v38, %v3744_v60 }
 0x1d8   : > { %4257 = vst [vmem:[%s5003_s14 + $0x38] sm:$0xff] %v4249_v12   ;;  %v4244_v56 = vpack.c.bf16 %v3635_v63, %v3634_v25  ;;  %v3752_v29 = vmul.f32 %v3635_v63, %v3635_v63 }
 0x1d9   : > { %v3724_v62 = vadd.f32 %v3723_v23, %v3629_v2  ;;  %v3760_v11 = vadd.f32 %v3759_v42, %v3745_v20 }
 0x1da   : > { %4256 = vst [vmem:[%s5003_s14 + $0x30] sm:$0xff] %v4244_v56  }
 0x1db   : > { %v3725_v41 = vadd.f32 %v3724_v62, %v3630_v49  ;;  %v3761_v30 = vadd.f32 %v3760_v11, %v3746_v15 }
 0x1dd   : > { %v3726_v52 = vadd.f32 %v3725_v41, %v3631_v22  ;;  %v3762_v59 = vadd.f32 %v3761_v30, %v3747_v1 }
 0x1df   : > { %v3727_v14 = vadd.f32 %v3726_v52, %v3632_v7  ;;  %v3763_v5 = vadd.f32 %v3762_v59, %v3748_v28 }
 0x1e1   : > { %v3728_v47 = vadd.f32 %v3727_v14, %v6150_v39  ;;  %v3764_v10 = vadd.f32 %v3763_v5, %v3749_v32 }
 0x1e3   : > { %v3729_v0 = vadd.f32 %v3728_v47, %v3634_v25  ;;  %v3765_v55 = vadd.f32 %v3764_v10, %v3750_v35 }
 0x1e5   : > { %v3730_v3 = vadd.f32 %v3729_v0, %v3635_v63  ;;  %v3766_v4 = vadd.f32 %v3765_v55, %v3751_v45 }
 0x1e7   : > { %v3731_v6 = vadd.f32 %v3730_v3, %v3636_v19  ;;  %v3767_v49 = vadd.f32 %v3766_v4, %v3752_v29 }
 0x1e9   : > { %v3732_v48 = vadd.f32 %v3731_v6, %v3637_v46  ;;  %v3768_v7 = vadd.f32 %v3767_v49, %v3753_v13 }
 0x1eb   : > { %v3733_v22 = vrot.slane %v3732_v48, 4  ;;  %v3769_v9 = vadd.f32 %v3768_v7, %v3754_v27 }
 0x1ed   : > { %v3734_v53 = vadd.f32 %v3733_v22, %v3732_v48  ;;  %v3770_v8 = vrot.slane %v3769_v9, 4 }
 0x1ef   : > { %v3735_v40 = vrot.slane %v3734_v53, 2  ;;  %v3771_v39 = vadd.f32 %v3770_v8, %v3769_v9 }
 0x1f1   : > { %v3736_v61 = vadd.f32 %v3735_v40, %v3734_v53  ;;  %v3772_v2 = vrot.slane %v3771_v39, 2 }
 0x1f3   : > { %v3737_v50 = vrot.slane %v3736_v61, 1  ;;  %v3773_v34 = vadd.f32 %v3772_v2, %v3771_v39 }
 0x1f5   : > { %v3774_v57 = vrot.slane %v3773_v34, 1  ;;  %v3738_v37 = vadd.f32 %v3737_v50, %v3736_v61 }
 0x1f7   : > { %v3775_v33 = vadd.f32 %v3774_v57, %v3773_v34 }
 0x1f9   : > { %v3777_v17 = vsel %vm435_vm0, %v3738_v37, %v3775_v33 }
 0x1fa   : > { %3778 = vst [vmem:[%s5096_s16] sm:$0x3] %v3777_v17 }
 0x1fb PF: > { %s16_s22 = sadd.s32 1, %s4881_s22   ;;  %s6238_s18 = smov %s4873_s20 }
 0x1fc   : > { %p13_p13 = scmp.ge.s32.totalorder %s16_s22, 6   ;;  %s6239_s19 = smov %s4877_s21 }
 0x1fd   : > { %s6240_s20 = smov %s6243_s23  ;;  %s6241_s21 = smov %s6247_s24 }
 0x1fe   :  { %15 = sbr.rel (!%p13_p13) target bundleno = 3 (0x3), region = 95 }

// kernel: double_conv.4
= control target key start
LH: loop header
LB: loop body
LE: loop exit
PB: predicated region body
PF: predicated region fallthrough
CT: control target
= control target key end

     0   :  { %s5221_s24 = smov 0   ;;  %s5223_s25 = smov 0   ;;  %s6560_s0 = inlined_call_operand.vmem [shape: bf16[2,16,16,128], index: 0, kind: input, shape index: {}, may-alias: {0,1,2}]   ;;  %s6561_s1 = inlined_call_operand.vmem [shape: bf16[2,16,16,128], index: 1, kind: input, shape index: {}, may-alias: {0,1,2}]   ;;  %s6562_s2 = inlined_call_operand.vmem [shape: bf16[2,16,16,128], index: 2, kind: input, shape index: {}, may-alias: {0,1,2}]   ;;  %s6563_s3 = inlined_call_operand.vmem [shape: f32[1,128], index: 3, kind: input, shape index: {}]   ;;  %s6564_s4 = inlined_call_operand.vmem [shape: f32[1,128], index: 4, kind: input, shape index: {}]   ;;  %s6565_s5 = inlined_call_operand.vmem [shape: bf16[1152,128], index: 5, kind: input, shape index: {}]   ;;  %s6566_s6 = inlined_call_operand.vmem [shape: bf16[2,16,16,128], index: 6, kind: output, shape index: {0}]   ;;  %s6567_s7 = inlined_call_operand.vmem [shape: f32[2,2,2,128], index: 7, kind: output, shape index: {1}]  }
   0x1   :  { %s5225_s26 = smov 0   ;;  %s5227_s27 = smov 0  }
   0x2   :  { %s5229_s28 = smov 0  }
   0x3 LB: > { %s27_s29 = sadd.s32 1, %s5170_s26  ;;  %s30_s30 = sadd.s32 1, %s5174_s27  ;;  %s5178_s28 = sphi %s5229_s28, %s18_s28   ;;  %s5174_s27 = sphi %s5227_s27, %s6618_s27   ;;  %s5170_s26 = sphi %s5225_s26, %s6617_s26   ;;  %s5166_s25 = sphi %s5223_s25, %s6616_s25   ;;  %s5162_s24 = sphi %s5221_s24, %s6615_s24  }
   0x4   : > { %p28_p0 = scmp.ge.s32.totalorder %s27_s29, 2  ;;  %p4185_p1 = scmp.ge.s32.totalorder %s5178_s28, 1 }
   0x5   : > { %p328_p2 = scmp.lt.s32.totalorder %s5178_s28, 5 }
   0x6   : > { %s6620_s29 = smov (%p28_p0, %s27_s29), 0  ;;  %s6622_s30 = smov (!%p28_p0, %s30_s30), %s5174_s27 }
   0x7   : > { %p329_p3 = pnand %p4185_p1, %p328_p2  ;;  %p32_p4 = scmp.ge.s32.totalorder %s6622_s30, 2 }
   0x9   : > { %s6624_s30 = smov (%p32_p4, %s6622_s30), 0  ;;  %332 = sbr.rel (%p329_p3) target bundleno = 517 (0x205), region = 44 }
   0xe   : > { %s5254_s8 = sshll.u32 %s5162_s24, 3  ;;  %p405_p5 = scmp.lt.s32.totalorder %s5166_s25, 1  ;;  %vm593_vm0 = vcmask 1040384   ;;  %vm594_vm1 = vsmask.f32 256  ;;  %v5180_v3 = vmov 0  }
   0xf   : > { %p407_p6 = scmp.lt.s32.totalorder %s5254_s8, 15  ;;  %s5258_s9 = sadd.s32 4294967295, %s5254_s8  ;;  %vm5264_vm2 = vmand %vm593_vm0, %vm594_vm1  ;;  %v596_v1 = vld [vmem:[#allocation2] sm:$0x1]  ;;  %v623_v2 = vld [vmem:[#allocation2 + $0x6c] sm:$0x1] }
  0x10   : > { %s6626_s25 = smov (!%p405_p5, %s5166_s25), 1  ;;  %659 = vst [vmem:[#allocation2 + $0x4] sm:$0xf] %v5180_v3  ;;  %663 = vst [vmem:[#allocation2 + $0x70] sm:$0xf] %v5180_v3  ;;  %v597_v4 = vsel %vm5264_vm2, 0, %v596_v1 }
  0x11   : > { %s408_s10 = scalar_select %p407_p6, %s5254_s8, 15  ;;  %v624_v5 = vsel %vm5264_vm2, 0, %v623_v2  ;;  %vm626_vm3 = vsmask.f32 7938  ;;  %598 = vst [vmem:[#allocation2] sm:$0x1] %v597_v4 }
  0x12   : > { %s5274_s11 = sshll.u32 %s6626_s25, 5  ;;  %p417_p7 = scmp.gt.s32.totalorder %s5258_s9, 0  ;;  %625 = vst [vmem:[#allocation2 + $0x6c] sm:$0x1] %v624_v5  ;;  %vm5279_vm4 = vmand %vm593_vm0, %vm626_vm3  ;;  %v628_v7 = vld [vmem:[#allocation2 + $0x8] sm:$0x1] }
  0x13   : > { %v655_v8 = vld [vmem:[#allocation2 + $0x74] sm:$0x1]  ;;  %s4187_s12 = sshll.u32 %s408_s10, 1  ;;  %p4192_p8 = scmp.lt.s32.totalorder %s5258_s9, 15  ;;  %v629_v9 = vsel %vm5279_vm4, 0, %v628_v7 }
  0x14   : > { %v656_v10 = vsel %vm5279_vm4, 0, %v655_v8  ;;  %v599_v11 = vld [vmem:[#allocation2 + $0xc] sm:$0x1]  ;;  %658 = vst [vmem:[#allocation2] sm:$0xf] %v5180_v3  ;;  %s411_s13 = sadd.s32 %s5274_s11, %s4187_s12  ;;  %s433_s14 = sadd.s32 8, %s5254_s8 }
  0x15   : > { %662 = vst [vmem:[#allocation2 + $0x6c] sm:$0xf] %v5180_v3  ;;  %630 = vst [vmem:[#allocation2 + $0x8] sm:$0x1] %v629_v9  ;;  %v600_v12 = vsel %vm5264_vm2, 0, %v599_v11  ;;  %s4189_s15 = sshll.u32 %s411_s13, 2 }
  0x16   : > { %657 = vst [vmem:[#allocation2 + $0x74] sm:$0x1] %v656_v10  ;;  %v602_v13 = vld [vmem:[#allocation2 + $0x18] sm:$0x1]  ;;  %v605_v14 = vld [vmem:[#allocation2 + $0x24] sm:$0x1]  ;;  %s5303_s19 = scalar_lea.vmem %s6560_s0, %s4189_s15  ;;  %s5308_s22 = scalar_lea.vmem %s6566_s6, %s4189_s15 }
  0x17   : > { %p5292_p9 = scmp.lt.s32.totalorder %s433_s14, 15  ;;  %601 = vst [vmem:[#allocation2 + $0xc] sm:$0x1] %v600_v12  ;;  %v603_v15 = vsel %vm5264_vm2, 0, %v602_v13  ;;  %v606_v16 = vsel %vm5264_vm2, 0, %v605_v14  ;;  %v4462_v21 = vld [vmem:[%s5303_s19] sm:$0xff]  }
  0x18   : > { %v608_v17 = vld [vmem:[#allocation2 + $0x30] sm:$0x1]  ;;  %660 = vst [vmem:[#allocation2 + $0x8] sm:$0x1] %v5180_v3  ;;  %664 = vst [vmem:[#allocation2 + $0x74] sm:$0x1] %v5180_v3  ;;  %v4463_v26 = vunpack.c.l.bf16 %v4462_v21  ;;  %v4464_v27 = vunpack.c.h.bf16 %v4462_v21 }
  0x19   : > { %604 = vst [vmem:[#allocation2 + $0x18] sm:$0x1] %v603_v15  ;;  %607 = vst [vmem:[#allocation2 + $0x24] sm:$0x1] %v606_v16  ;;  %v609_v18 = vsel %vm5264_vm2, 0, %v608_v17  ;;  %s418_s23 = scalar_select %p417_p7, %s5258_s9, 0 }
  0x1a   : > { %v611_v19 = vld [vmem:[#allocation2 + $0x3c] sm:$0x1]  ;;  %v614_v20 = vld [vmem:[#allocation2 + $0x48] sm:$0x1]  ;;  %v4542_v23 = vld [vmem:[%s5303_s19 + $0x10] sm:$0xff]   ;;  %s6628_s14 = smov (!%p5292_p9, %s433_s14), 15 }
  0x1b   : > { %v4541_v22 = vld [vmem:[%s5303_s19 + $0x8] sm:$0xff]   ;;  %610 = vst [vmem:[#allocation2 + $0x30] sm:$0x1] %v609_v18  ;;  %v612_v24 = vsel %vm5264_vm2, 0, %v611_v19  ;;  %v615_v25 = vsel %vm5264_vm2, 0, %v614_v20  ;;  %v4543_v30 = vld [vmem:[%s5303_s19 + $0x18] sm:$0xff]   ;;  %v4471_v34 = vunpack.c.l.bf16 %v4542_v23  ;;  %v4472_v35 = vunpack.c.h.bf16 %v4542_v23 }
  0x1c   : > { %v4467_v28 = vunpack.c.l.bf16 %v4541_v22  ;;  %v4468_v29 = vunpack.c.h.bf16 %v4541_v22  ;;  %v4544_v31 = vld [vmem:[%s5303_s19 + $0x20] sm:$0xff]   ;;  %v4545_v32 = vld [vmem:[%s5303_s19 + $0x28] sm:$0xff]   ;;  %613 = vst [vmem:[#allocation2 + $0x3c] sm:$0x1] %v612_v24  ;;  %616 = vst [vmem:[#allocation2 + $0x48] sm:$0x1] %v615_v25  ;;  %v4475_v36 = vunpack.c.l.bf16 %v4543_v30  ;;  %v4476_v37 = vunpack.c.h.bf16 %v4543_v30 }
  0x1d   : > { %s6630_s23 = smov (!%p4192_p8, %s418_s23), 15  ;;  %v5334_v33 = vld [vmem:[%s6563_s3] ss:$0 sm:$0xff]  ;;  %v4546_v38 = vld [vmem:[%s5303_s19 + $0x30] sm:$0xff]   ;;  %v4547_v39 = vld [vmem:[%s5303_s19 + $0x38] sm:$0xff]   ;;  %s6632_s14 = smov (!%p5292_p9, %s6628_s14), 15  ;;  %v4479_v40 = vunpack.c.l.bf16 %v4544_v31  ;;  %v4480_v41 = vunpack.c.h.bf16 %v4544_v31  ;;  %v4483_v42 = vunpack.c.l.bf16 %v4545_v32  ;;  %v4484_v43 = vunpack.c.h.bf16 %v4545_v32 }
  0x1e   : > { %s4197_s9 = sshll.u32 %s6630_s23, 1  ;;  %p462_p10 = scmp.lt.s32.totalorder %s5162_s24, 1  ;;  %v4487_v44 = vunpack.c.l.bf16 %v4546_v38  ;;  %v4488_v45 = vunpack.c.h.bf16 %v4546_v38  ;;  %v4491_v46 = vunpack.c.l.bf16 %v4547_v39  ;;  %v4492_v47 = vunpack.c.h.bf16 %v4547_v39  ;;  %v5353_v52 = vld [vmem:[%s6564_s4] ss:$0 sm:$0xff]  ;;  %v617_v23 = vld [vmem:[#allocation2 + $0x54] sm:$0x1] }
  0x1f   : > { %s5343_s12 = sadd.s32 %s4197_s9, %s5274_s11  ;;  %s4204_s13 = sshll.u32 %s6632_s14, 1  ;;  %v509_v48 = vmul.f32 %v4463_v26, %v5334_v33  ;;  %v510_v49 = vmul.f32 %v4464_v27, %v5334_v33  ;;  %v511_v50 = vmul.f32 %v4467_v28, %v5334_v33  ;;  %v512_v51 = vmul.f32 %v4468_v29, %v5334_v33  ;;  %v620_v24 = vld [vmem:[#allocation2 + $0x60] sm:$0x1]  ;;  %v631_v25 = vld [vmem:[#allocation2 + $0x14] sm:$0x1] }
  0x20   : > { %s442_s15 = sadd.s32 %s4204_s13, %s5274_s11  ;;  %v513_v53 = vmul.f32 %v4471_v34, %v5334_v33  ;;  %v514_v54 = vmul.f32 %v4472_v35, %v5334_v33  ;;  %v515_v55 = vmul.f32 %v4475_v36, %v5334_v33  ;;  %v516_v56 = vmul.f32 %v4476_v37, %v5334_v33  ;;  %s4199_s14 = sshll.u32 %s5343_s12, 2  ;;  %v634_v37 = vld [vmem:[#allocation2 + $0x20] sm:$0x1] }
  0x21   : > { %v517_v57 = vmul.f32 %v4479_v40, %v5334_v33  ;;  %v518_v58 = vmul.f32 %v4480_v41, %v5334_v33  ;;  %v519_v59 = vmul.f32 %v4483_v42, %v5334_v33  ;;  %v520_v60 = vmul.f32 %v4484_v43, %v5334_v33  ;;  %s5364_s11 = sshll.u32 %s442_s15, 2  ;;  %s4211_s18 = sshll.u32 %s6626_s25, 1  ;;  %v637_v42 = vld [vmem:[#allocation2 + $0x2c] sm:$0x1] }
  0x22   : > { %v521_v61 = vmul.f32 %v4487_v44, %v5334_v33  ;;  %v522_v62 = vmul.f32 %v4488_v45, %v5334_v33  ;;  %v523_v63 = vmul.f32 %v4491_v46, %v5334_v33  ;;  %v524_v1 = vmul.f32 %v4492_v47, %v5334_v33  ;;  %s463_s19 = scalar_select %p462_p10, %s5162_s24, 1  ;;  %v640_v47 = vld [vmem:[#allocation2 + $0x38] sm:$0x1] }
  0x23   : > { %v5375_v2 = vadd.f32 %v5353_v52, %v509_v48  ;;  %v5378_v3 = vadd.f32 %v5353_v52, %v510_v49  ;;  %v5381_v4 = vadd.f32 %v5353_v52, %v511_v50  ;;  %v5384_v5 = vadd.f32 %v5353_v52, %v512_v51  ;;  %s427_s21 = scalar_lea.vmem %s6561_s1, %s4199_s14  ;;  %s444_s10 = scalar_lea.vmem %s6562_s2, %s5364_s11  ;;  %v643_v48 = vld [vmem:[#allocation2 + $0x44] sm:$0x1]  ;;  %v646_v49 = vld [vmem:[#allocation2 + $0x50] sm:$0x1] }
  0x24   : > { %v5390_v7 = vadd.f32 %v5353_v52, %v513_v53  ;;  %v5393_v8 = vadd.f32 %v5353_v52, %v514_v54  ;;  %v5396_v9 = vadd.f32 %v5353_v52, %v515_v55  ;;  %v5399_v10 = vadd.f32 %v5353_v52, %v516_v56  ;;  %s465_s9 = sadd.s32 %s4211_s18, %s463_s19  ;;  %v4494_v30 = vld [vmem:[%s427_s21] sm:$0xff]   ;;  %p4215_p11 = scmp.le.s32.totalorder %s5162_s24, 0 }
  0x25   : > { %v5406_v11 = vadd.f32 %v5353_v52, %v517_v57  ;;  %v5409_v12 = vadd.f32 %v5353_v52, %v518_v58  ;;  %v5412_v13 = vadd.f32 %v5353_v52, %v519_v59  ;;  %v5415_v14 = vadd.f32 %v5353_v52, %v520_v60  ;;  %s4212_s12 = sshll.u32 %s465_s9, 1  ;;  %v4498_v31 = vld [vmem:[%s444_s10] sm:$0xff]   ;;  %v649_v59 = vld [vmem:[#allocation2 + $0x5c] sm:$0x1]  ;;  %v652_v60 = vld [vmem:[#allocation2 + $0x68] sm:$0x1] }
  0x26   : > { %v5418_v15 = vadd.f32 %v5353_v52, %v521_v61  ;;  %v5421_v16 = vadd.f32 %v5353_v52, %v522_v62  ;;  %v5424_v17 = vadd.f32 %v5353_v52, %v523_v63  ;;  %v5427_v18 = vadd.f32 %v5353_v52, %v524_v1  ;;  %s5432_s16 = scalar_lea.vmem %s6567_s7, %s4212_s12 }
  0x27   : > { %v547_v19 = vmax.f32 %v5375_v2, 0.0  ;;  %v548_v20 = vmax.f32 %v5378_v3, 0.0  ;;  %v549_v21 = vmax.f32 %v5381_v4, 0.0  ;;  %v550_v22 = vmax.f32 %v5384_v5, 0.0 }
  0x28   : > { %v551_v26 = vmax.f32 %v5390_v7, 0.0  ;;  %v552_v27 = vmax.f32 %v5393_v8, 0.0  ;;  %v553_v28 = vmax.f32 %v5396_v9, 0.0  ;;  %v554_v29 = vmax.f32 %v5399_v10, 0.0 }
  0x29   : > { %v555_v32 = vmax.f32 %v5406_v11, 0.0  ;;  %v556_v34 = vmax.f32 %v5409_v12, 0.0  ;;  %v557_v35 = vmax.f32 %v5412_v13, 0.0  ;;  %v558_v36 = vmax.f32 %v5415_v14, 0.0 }
  0x2a   : > { %v559_v38 = vmax.f32 %v5418_v15, 0.0  ;;  %v560_v39 = vmax.f32 %v5421_v16, 0.0  ;;  %v561_v40 = vmax.f32 %v5424_v17, 0.0  ;;  %v562_v41 = vmax.f32 %v5427_v18, 0.0 }
  0x2b   : > { %v4495_v43 = vunpack.c.l.bf16 %v4494_v30  ;;  %v4496_v44 = vunpack.c.h.bf16 %v4494_v30  ;;  %v4499_v45 = vunpack.c.l.bf16 %v4498_v31  ;;  %v4500_v46 = vunpack.c.h.bf16 %v4498_v31 }
  0x2c   : > { %v618_v50 = vsel %vm5264_vm2, 0, %v617_v23  ;;  %v621_v51 = vsel %vm5264_vm2, 0, %v620_v24  ;;  %v632_v53 = vsel %vm5279_vm4, 0, %v631_v25  ;;  %v635_v54 = vsel %vm5279_vm4, 0, %v634_v37 }
  0x2d   : > { %v575_v55 = vmul.f32 %v4495_v43, %v5334_v33  ;;  %v576_v56 = vmul.f32 %v4496_v44, %v5334_v33  ;;  %v586_v57 = vmul.f32 %v4499_v45, %v5334_v33  ;;  %v587_v58 = vmul.f32 %v4500_v46, %v5334_v33  ;;  %619 = vst [vmem:[#allocation2 + $0x54] sm:$0x1] %v618_v50 }
  0x2e   : > { %622 = vst [vmem:[#allocation2 + $0x60] sm:$0x1] %v621_v51  ;;  %633 = vst [vmem:[#allocation2 + $0x14] sm:$0x1] %v632_v53  ;;  %v638_v61 = vsel %vm5279_vm4, 0, %v637_v42  ;;  %v641_v62 = vsel %vm5279_vm4, 0, %v640_v47 }
  0x2f   : > { %636 = vst [vmem:[#allocation2 + $0x20] sm:$0x1] %v635_v54  ;;  %v644_v63 = vsel %vm5279_vm4, 0, %v643_v48  ;;  %v647_v1 = vsel %vm5279_vm4, 0, %v646_v49  ;;  %v577_v33 = vadd.f32 %v5353_v52, %v575_v55  ;;  %v578_v23 = vadd.f32 %v5353_v52, %v576_v56  ;;  %639 = vst [vmem:[#allocation2 + $0x2c] sm:$0x1] %v638_v61 }
  0x30   : > { %v588_v24 = vadd.f32 %v5353_v52, %v586_v57  ;;  %v589_v25 = vadd.f32 %v5353_v52, %v587_v58  ;;  %642 = vst [vmem:[#allocation2 + $0x38] sm:$0x1] %v641_v62  ;;  %645 = vst [vmem:[#allocation2 + $0x44] sm:$0x1] %v644_v63  ;;  %v650_v30 = vsel %vm5279_vm4, 0, %v649_v59  ;;  %v653_v31 = vsel %vm5279_vm4, 0, %v652_v60 }
  0x31   : > { %648 = vst [vmem:[#allocation2 + $0x50] sm:$0x1] %v647_v1  ;;  %v579_v37 = vmax.f32 %v577_v33, 0.0  ;;  %v580_v42 = vmax.f32 %v578_v23, 0.0  ;;  %651 = vst [vmem:[#allocation2 + $0x5c] sm:$0x1] %v650_v30 }
  0x32   : > { %v590_v43 = vmax.f32 %v588_v24, 0.0  ;;  %v591_v44 = vmax.f32 %v589_v25, 0.0  ;;  %654 = vst [vmem:[#allocation2 + $0x68] sm:$0x1] %v653_v31  ;;  %668 = sbr.rel (%p4215_p11) target bundleno = 66 (0x42), region = 48 }
  0x37   : > { %v4425_v52 = vpack.c.bf16 %v579_v37, %v579_v37  ;;  %v4426_v45 = vpack.c.bf16 %v580_v42, %v580_v42  ;;  %vm696_vm5 = vcmask 1043456   ;;  %vm674_vm6 = vsmask.f32 4368  ;;  %v698_v51 = vld [vmem:[#allocation2] sm:$0xf] }
  0x38   : > { %vm697_vm7 = vmand %vm696_vm5, %vm626_vm3  ;;  %v702_v53 = vld [vmem:[#allocation2 + $0x8] sm:$0x1] }
  0x39   : > { %v677_v46 = vshrl.u32 %v4425_v52, 16  ;;  %v680_v47 = vshll.u32 %v4425_v52, 16  ;;  %v685_v48 = vshrl.u32 %v4426_v45, 16  ;;  %v688_v49 = vshll.u32 %v4426_v45, 16  ;;  %vm675_vm8 = vmor %vm594_vm1, %vm674_vm6 }
  0x3b   : > { %v679_v50 = vrot.slane %v677_v46, 7  ;;  %v687_v6 = vrot.slane %v685_v48, 7 }
  0x3d   : > { %v682_v54 = vor.u32 %v680_v47, %v679_v50  ;;  %v683_v55 = vrot.slane %v679_v50, 4  ;;  %v690_v56 = vor.u32 %v688_v49, %v687_v6  ;;  %v692_v57 = vrot.slane %v687_v6, 4 }
  0x3f   : > { %v699_v58 = vsel %vm697_vm7, %v682_v54, %v698_v51  ;;  %v691_v59 = vsel %vm675_vm8, %v683_v55, %v690_v56  ;;  %v703_v60 = vsel %vm5264_vm2, %v692_v57, %v702_v53 }
  0x40   : > { %700 = vst [vmem:[#allocation2] sm:$0xf] %v699_v58  ;;  %701 = vst [vmem:[#allocation2 + $0x4] sm:$0xf] %v691_v59 }
  0x41   : > { %704 = vst [vmem:[#allocation2 + $0x8] sm:$0x1] %v703_v60 }
  0x42 PF: > { %p4218_p12 = scmp.ge.s32.totalorder %s5162_s24, 1 }
  0x44   : > { %708 = sbr.rel (%p4218_p12) target bundleno = 84 (0x54), region = 52 }
  0x49   : > { %v4427_v61 = vpack.c.bf16 %v590_v43, %v590_v43  ;;  %v4428_v62 = vpack.c.bf16 %v591_v44, %v591_v44  ;;  %vm736_vm9 = vcmask 1043456   ;;  %vm714_vm10 = vsmask.f32 4368  ;;  %v738_v30 = vld [vmem:[#allocation2 + $0x6c] sm:$0xf] }
  0x4a   : > { %vm737_vm11 = vmand %vm736_vm9, %vm626_vm3  ;;  %v742_v31 = vld [vmem:[#allocation2 + $0x74] sm:$0x1] }
  0x4b   : > { %v717_v63 = vshrl.u32 %v4427_v61, 16  ;;  %v720_v1 = vshll.u32 %v4427_v61, 16  ;;  %v725_v33 = vshrl.u32 %v4428_v62, 16  ;;  %v728_v23 = vshll.u32 %v4428_v62, 16  ;;  %vm715_vm12 = vmor %vm594_vm1, %vm714_vm10 }
  0x4d   : > { %v719_v24 = vrot.slane %v717_v63, 7  ;;  %v727_v25 = vrot.slane %v725_v33, 7 }
  0x4f   : > { %v722_v37 = vor.u32 %v720_v1, %v719_v24  ;;  %v723_v42 = vrot.slane %v719_v24, 4  ;;  %v730_v52 = vor.u32 %v728_v23, %v727_v25  ;;  %v732_v45 = vrot.slane %v727_v25, 4 }
  0x51   : > { %v739_v43 = vsel %vm737_vm11, %v722_v37, %v738_v30  ;;  %v731_v44 = vsel %vm715_vm12, %v723_v42, %v730_v52  ;;  %v743_v46 = vsel %vm5264_vm2, %v732_v45, %v742_v31 }
  0x52   : > { %740 = vst [vmem:[#allocation2 + $0x6c] sm:$0xf] %v739_v43  ;;  %741 = vst [vmem:[#allocation2 + $0x70] sm:$0xf] %v731_v44 }
  0x53   : > { %744 = vst [vmem:[#allocation2 + $0x74] sm:$0x1] %v743_v46 }
  0x54 PF: > { %v5044_v47 = vld [vmem:[%s6565_s5 + $0x78] sm:$0xff]   ;;  %v4429_v49 = vpack.c.bf16 %v547_v19, %v547_v19  ;;  %v5046_v50 = vld [vmem:[%s6565_s5 + $0x70] sm:$0xff]   ;;  %v4430_v6 = vpack.c.bf16 %v548_v20, %v548_v20  ;;  %v5048_v2 = vld [vmem:[%s6565_s5 + $0x68] sm:$0xff]   ;;  %v4431_v20 = vpack.c.bf16 %v549_v21, %v549_v21  ;;  %vm948_vm13 = vcmask 1043456  }
  0x55   : > { %v5045_v48 = vld [vmem:[%s6565_s5 + $0x38] sm:$0xff]   ;;  %4699 = vmatprep.subr.bf16.mxu0 %v5044_v47  ;;  %v5047_v51 = vld [vmem:[%s6565_s5 + $0x30] sm:$0xff]   ;;  %v5049_v19 = vld [vmem:[%s6565_s5 + $0x28] sm:$0xff]   ;;  %v5527_v60 = vpack.c.bf16 %v550_v22, %v550_v22  ;;  %v5544_v24 = vpack.c.bf16 %v551_v26, %v551_v26  ;;  %v5549_v25 = vpack.c.bf16 %v552_v27, %v552_v27  ;;  %vm1046_vm14 = vsmask.f32 3328 }
  0x56   : > { %4731 = vmatprep.subr.bf16.mxu1 %v5045_v48  ;;  %4700 = vmatpush3.bf16.msra.mxu0 %v5044_v47  ;;  %v788_v3 = vshrl.u32 %v4429_v49, 16  ;;  %v796_v53 = vshrl.u32 %v4430_v6, 16  ;;  %v5050_v54 = vld [vmem:[%s6565_s5 + $0x60] sm:$0xff]   ;;  %v791_v55 = vshll.u32 %v4429_v49, 16  ;;  %v805_v59 = vshrl.u32 %v4431_v20, 16  ;;  %v5052_v4 = vld [vmem:[%s6565_s5 + $0x58] sm:$0xff]   ;;  %vm5560_vm4 = vmand %vm948_vm13, %vm626_vm3 }
  0x57   : > { %4732 = vmatpush3.bf16.msra.mxu1 %v5045_v48  ;;  %4701 = vmatprep.subr.bf16.mxu0 %v5046_v50  ;;  %v5051_v56 = vld [vmem:[%s6565_s5 + $0x20] sm:$0xff]   ;;  %v799_v21 = vshll.u32 %v4430_v6, 16  ;;  %v808_v62 = vshll.u32 %v4431_v20, 16  ;;  %v5053_v63 = vld [vmem:[%s6565_s5 + $0x18] sm:$0xff]   ;;  %v5054_v33 = vld [vmem:[%s6565_s5 + $0x50] sm:$0xff]   ;;  %v813_v22 = vshrl.u32 %v5527_v60, 16  ;;  %v5650_v12 = vpack.c.bf16 %v558_v36, %v558_v36 }
  0x58   : > { %4733 = vmatprep.subr.bf16.mxu1 %v5047_v51  ;;  %v790_v57 = vrot.slane %v788_v3, 7  ;;  %v798_v58 = vrot.slane %v796_v53, 7  ;;  %v5529_v61 = vrot.slane %v805_v59, 7  ;;  %v5055_v5 = vld [vmem:[%s6565_s5 + $0x10] sm:$0xff]   ;;  %v1006_v30 = vld [vmem:[#allocation2] sm:$0xf]  ;;  %v5667_v15 = vpack.c.bf16 %v560_v39, %v560_v39 }
  0x59   : > { %v5551_v31 = vld [vmem:[#allocation2 + $0x4] sm:$0xf]  ;;  %v5553_v37 = vld [vmem:[#allocation2 + $0x8] sm:$0x1]  ;;  %vm1047_vm15 = vsmask.f32 7440 }
  0x5a   : > { %4702 = vmatpush3.bf16.msra.mxu0 %v5046_v50  ;;  %v794_v1 = vrot.slane %v790_v57, 4  ;;  %v803_v23 = vrot.slane %v798_v58, 4  ;;  %v793_v42 = vor.u32 %v791_v55, %v790_v57  ;;  %v801_v52 = vor.u32 %v799_v21, %v798_v58  ;;  %v5056_v27 = vld [vmem:[%s6565_s5 + $0x48] sm:$0xff]   ;;  %v5059_v11 = vld [vmem:[%s6565_s5] sm:$0xff]   ;;  %v5101_v53 = vld [vmem:[%s6565_s5 + $0x150] sm:$0xff]  }
  0x5b   : > { %4734 = vmatpush3.bf16.msra.mxu1 %v5047_v51  ;;  %4703 = vmatprep.subr.bf16.mxu0 %v5048_v2  ;;  %v5556_v45 = vor.u32 %v808_v62, %v5529_v61  ;;  %v1050_v7 = vshrl.u32 %v1006_v30, 16  ;;  %v1053_v8 = vshll.u32 %v1006_v30, 16  ;;  %v1059_v43 = vshll.u32 %v5551_v31, 16  ;;  %v950_v47 = vld [vmem:[#allocation2 + $0xc] sm:$0xf] }
  0x5c   : > { %4735 = vmatprep.subr.bf16.mxu1 %v5049_v19  ;;  %v1063_v44 = vshrl.u32 %v5551_v31, 16  ;;  %v1069_v46 = vshll.u32 %v5553_v37, 16  ;;  %v811_v48 = vrot.slane %v5529_v61, 4  ;;  %v4253_v6 = vcombine.low %v1006_v30, %v5551_v31  ;;  %v954_v51 = vld [vmem:[#allocation2 + $0x14] sm:$0x1] }
  0x5d   : > { %v1052_v49 = vrot.slane %v1050_v7, 4  ;;  %v1055_v50 = vrot.slane %v1053_v8, 5  ;;  %vm785_vm3 = vsmask.f32 4368  ;;  %v951_v20 = vsel %vm5560_vm4, %v793_v42, %v950_v47 }
  0x5e   : > { %4704 = vmatpush3.bf16.msra.mxu0 %v5048_v2  ;;  %v5057_v2 = vld [vmem:[%s6565_s5 + $0x8] sm:$0xff]   ;;  %v1065_v3 = vrot.slane %v1063_v44, 4  ;;  %vm5576_vm5 = vmor %vm594_vm1, %vm785_vm3  ;;  %4747 = vmatprep.mubr.bf16.mxu1 %v4253_v6  ;;  %952 = vst [vmem:[#allocation2 + $0xc] sm:$0xf] %v951_v20  ;;  %v955_v57 = vsel %vm5264_vm2, %v803_v23, %v954_v51  ;;  %v816_v21 = vshll.u32 %v5527_v60, 16  ;;  %v5596_v62 = vpack.c.bf16 %v553_v28, %v553_v28  ;;  %v5058_v60 = vld [vmem:[%s6565_s5 + $0x40] sm:$0xff]  }
  0x5f   : > { %4736 = vmatpush3.bf16.msra.mxu1 %v5049_v19  ;;  %4705 = vmatprep.subr.bf16.mxu0 %v5050_v54  ;;  %v1061_v19 = vrot.slane %v1059_v43, 5  ;;  %v1056_v55 = vor.u32 %v1055_v50, %v1052_v49  ;;  %vm5588_vm1 = vmor %vm1046_vm14, %vm1047_vm15  ;;  %956 = vst [vmem:[#allocation2 + $0x14] sm:$0x1] %v955_v57  ;;  %v957_v23 = vld [vmem:[#allocation2 + $0x18] sm:$0xf]  ;;  %v822_v10 = vshrl.u32 %v5544_v24, 16  ;;  %v5645_v50 = vpack.c.bf16 %v557_v35, %v557_v35 }
  0x60   : > { %4737 = vmatprep.subr.bf16.mxu1 %v5051_v56  ;;  %v830_v30 = vshrl.u32 %v5549_v25, 16  ;;  %v833_v44 = vshll.u32 %v5549_v25, 16  ;;  %vm1651_vm6 = vcmask 1042432   ;;  %vm1652_vm7 = vcmask 1046532  }
  0x61   : > { %v1066_v59 = vor.u32 %v1065_v3, %v1061_v19  ;;  %v1057_v61 = vrot.slane %v1056_v55, 4  ;;  %v824_v8 = vrot.slane %v822_v10, 7  ;;  %vm5861_vm8 = vmor %vm1651_vm6, %vm1652_vm7 }
  0x62   : > { %4706 = vmatpush3.bf16.msra.mxu0 %v5050_v54  ;;  %v815_v54 = vrot.slane %v813_v22, 7  ;;  %v825_v22 = vshll.u32 %v5544_v24, 16  ;;  %v832_v43 = vrot.slane %v830_v30, 7 }
  0x63   : > { %4738 = vmatpush3.bf16.msra.mxu1 %v5051_v56  ;;  %4707 = vmatprep.subr.bf16.mxu0 %v5052_v4  ;;  %v802_v56 = vsel %vm5576_vm5, %v794_v1, %v801_v52  ;;  %v5606_v1 = vpack.c.bf16 %v555_v32, %v555_v32  ;;  %v1067_v9 = vrot.slane %v1066_v59, 4  ;;  %v958_v32 = vsel %vm5560_vm4, %v5556_v45, %v957_v23  ;;  %v5627_v52 = vld [vmem:[%s6565_s5 + $0xb8] sm:$0xff]  }
  0x64   : > { %4739 = vmatprep.subr.bf16.mxu1 %v5053_v63  ;;  %953 = vst [vmem:[#allocation2 + $0x10] sm:$0xf] %v802_v56  ;;  %v820_v28 = vrot.slane %v815_v54, 4  ;;  %959 = vst [vmem:[#allocation2 + $0x18] sm:$0xf] %v958_v32  ;;  %v828_v49 = vrot.slane %v824_v8, 4  ;;  %v827_v35 = vor.u32 %v825_v22, %v824_v8 }
  0x65   : > { %v1008_v47 = vld [vmem:[#allocation2 + $0xc] sm:$0xf]  ;;  %v837_v39 = vrot.slane %v832_v43, 4 }
  0x66   : > { %4708 = vmatpush3.bf16.msra.mxu0 %v5052_v4  ;;  %v1071_v4 = vrot.slane %v1069_v46, 5  ;;  %v5637_v46 = vpack.c.bf16 %v556_v34, %v556_v34  ;;  %v5655_v34 = vpack.c.bf16 %v559_v38, %v559_v38  ;;  %v5659_v6 = vld [vmem:[#allocation2 + $0x14] sm:$0x1]  ;;  %v1074_v13 = vshrl.u32 %v1008_v47, 16  ;;  %v968_v56 = vld [vmem:[#allocation2 + $0x2c] sm:$0x1] }
  0x67   : > { %4740 = vmatpush3.bf16.msra.mxu1 %v5053_v63  ;;  %4709 = vmatprep.subr.bf16.mxu0 %v5054_v33  ;;  %v5601_v63 = vpack.c.bf16 %v554_v29, %v554_v29  ;;  %v1062_v29 = vsel %vm5588_vm1, %v1057_v61, %v1061_v19  ;;  %v1077_v51 = vshll.u32 %v1008_v47, 16  ;;  %v1093_v19 = vshll.u32 %v5659_v6, 16  ;;  %v2585_v26 = vld [vmem:[#allocation2 + $0xc] sm:$0xe] }
  0x68   : > { %4741 = vmatprep.subr.bf16.mxu1 %v5055_v5  ;;  %v1072_v42 = vsel %vm5588_vm1, %v1067_v9, %v1071_v4  ;;  %v1076_v38 = vrot.slane %v1074_v13, 4  ;;  %v842_v9 = vshll.u32 %v5596_v62, 16 }
  0x69   : > { %v4237_v24 = vcombine.low %v1062_v29, %v1072_v42  ;;  %v1079_v3 = vrot.slane %v1077_v51, 5  ;;  %v1095_v16 = vrot.slane %v1093_v19, 5  ;;  %v969_v29 = vsel %vm5264_vm2, %v837_v39, %v968_v56 }
  0x6a   : > { %4710 = vmatpush3.bf16.msra.mxu0 %v5054_v33  ;;  %v818_v33 = vor.u32 %v816_v21, %v815_v54  ;;  %v5065_v54 = vld [vmem:[%s6565_s5 + $0xf0] sm:$0xff]   ;;  %970 = vst [vmem:[#allocation2 + $0x2c] sm:$0x1] %v969_v29  ;;  %v847_v51 = vshrl.u32 %v5601_v63, 16  ;;  %v856_v19 = vshrl.u32 %v5606_v1, 16 }
  0x6b   : > { %4742 = vmatpush3.bf16.msra.mxu1 %v5055_v5  ;;  %4711 = vmatprep.subr.bf16.mxu0 %v5056_v27  ;;  %v961_v5 = vld [vmem:[#allocation2 + $0x20] sm:$0x1]  ;;  %v5657_v25 = vld [vmem:[#allocation2 + $0x10] sm:$0xf]  ;;  %v1080_v4 = vor.u32 %v1079_v3, %v1076_v38  ;;  %v1010_v21 = vld [vmem:[#allocation2 + $0x18] sm:$0xf] }
  0x6c   : > { %4743 = vmatprep.subr.bf16.mxu1 %v5057_v2  ;;  %v819_v7 = vsel %vm5576_vm5, %v811_v48, %v818_v33  ;;  %v962_v45 = vsel %vm5264_vm2, %v820_v28, %v961_v5  ;;  %v5063_v48 = vld [vmem:[%s6565_s5 + $0xf8] sm:$0xff]   ;;  %4715 = vmatprep.mubr.bf16.mxu0 %v4237_v24  ;;  %v1083_v14 = vshll.u32 %v5657_v25, 16  ;;  %v1087_v36 = vshrl.u32 %v5657_v25, 16 }
  0x6d   : > { %960 = vst [vmem:[#allocation2 + $0x1c] sm:$0xf] %v819_v7  ;;  %963 = vst [vmem:[#allocation2 + $0x20] sm:$0x1] %v962_v45  ;;  %v4254_v20 = vcombine.low %v1008_v47, %v5657_v25  ;;  %v1098_v10 = vshrl.u32 %v1010_v21, 16  ;;  %v1081_v32 = vrot.slane %v1080_v4, 4 }
  0x6e   : > { %4712 = vmatpush3.bf16.msra.mxu0 %v5056_v27  ;;  %v964_v27 = vld [vmem:[#allocation2 + $0x24] sm:$0xf]  ;;  %v1085_v57 = vrot.slane %v1083_v14, 5  ;;  %v1089_v59 = vrot.slane %v1087_v36, 4  ;;  %v5069_v47 = vld [vmem:[%s6565_s5 + $0xe8] sm:$0xff]   ;;  %v850_v36 = vshll.u32 %v5601_v63, 16 }
  0x6f   : > { %4744 = vmatpush3.bf16.msra.mxu1 %v5057_v2  ;;  %4713 = vmatprep.subr.bf16.mxu0 %v5058_v60  ;;  %v835_v2 = vor.u32 %v833_v44, %v832_v43  ;;  %v965_v61 = vsel %vm5560_vm4, %v827_v35, %v964_v27  ;;  %v1100_v42 = vrot.slane %v1098_v10, 4  ;;  %v849_v63 = vrot.slane %v847_v51, 7  ;;  %v975_v10 = vld [vmem:[#allocation2 + $0x38] sm:$0x1] }
  0x70   : > { %4745 = vmatprep.subr.bf16.mxu1 %v5059_v11  ;;  %v1090_v33 = vor.u32 %v1089_v59, %v1085_v57  ;;  %966 = vst [vmem:[#allocation2 + $0x24] sm:$0xf] %v965_v61  ;;  %v1086_v8 = vsel %vm5588_vm1, %v1081_v32, %v1085_v57  ;;  %v971_v57 = vld [vmem:[#allocation2 + $0x30] sm:$0xf]  ;;  %v5710_v4 = vrot.slane %v856_v19, 7  ;;  %v864_v51 = vshrl.u32 %v5637_v46, 16 }
  0x71   : > { %v836_v55 = vsel %vm5576_vm5, %v828_v49, %v835_v2  ;;  %v982_v19 = vld [vmem:[#allocation2 + $0x44] sm:$0x1] }
  0x72   : > { %4714 = vmatpush3.bf16.msra.mxu0 %v5058_v60  ;;  %967 = vst [vmem:[#allocation2 + $0x28] sm:$0xf] %v836_v55  ;;  %v839_v60 = vshrl.u32 %v5596_v62, 16  ;;  %v1091_v62 = vrot.slane %v1090_v33, 4  ;;  %v5071_v55 = vld [vmem:[%s6565_s5 + $0xe0] sm:$0xff]  }
  0x73   : > { %4746 = vmatpush3.bf16.msra.mxu1 %v5059_v11  ;;  %4763 = vmatprep.subr.bf16.mxu0 %v5627_v52  ;;  %v1101_v11 = vshll.u32 %v1010_v21, 16 }
  0x74   : > { %4795 = vmatprep.subr.bf16.mxu1 %v5063_v48  ;;  %v5680_v28 = vld [vmem:[#allocation2 + $0x1c] sm:$0xf]  ;;  %v5682_v23 = vld [vmem:[#allocation2 + $0x20] sm:$0x1]  ;;  %v1096_v49 = vsel %vm5588_vm1, %v1091_v62, %v1095_v16  ;;  %v841_v13 = vrot.slane %v839_v60, 7  ;;  %v852_v62 = vor.u32 %v850_v36, %v849_v63 }
  0x75   : > { %v1107_v5 = vshll.u32 %v5680_v28, 16  ;;  %v1111_v22 = vshrl.u32 %v5680_v28, 16  ;;  %v1117_v30 = vshll.u32 %v5682_v23, 16  ;;  %v1103_v7 = vrot.slane %v1101_v11, 5 }
  0x76   : > { %4748 = vmatmul.mubr.bf16.vlgmr.msra.gmra.mxu1 %v4254_v20  ;;  %v4255_v45 = vcombine.low %v1010_v21, %v5680_v28  ;;  %v4238_v35 = vcombine.low %v1086_v8, %v1096_v49  ;;  %v844_v56 = vor.u32 %v842_v9, %v841_v13  ;;  %v845_v39 = vrot.slane %v841_v13, 4  ;;  %v5715_v21 = vld [vmem:[#allocation2 + $0x2c] sm:$0x1]  ;;  %v5070_v13 = vld [vmem:[%s6565_s5 + $0xa0] sm:$0xff]  }
  0x77   : > { %4796 = vmatpush3.bf16.msra.mxu1 %v5063_v48  ;;  %v1109_v24 = vrot.slane %v1107_v5, 5  ;;  %v1113_v43 = vrot.slane %v1111_v22, 4  ;;  %v1119_v44 = vrot.slane %v1117_v30, 5  ;;  %v5064_v48 = vld [vmem:[%s6565_s5 + $0xb0] sm:$0xff]   ;;  %v1104_v27 = vor.u32 %v1103_v7, %v1100_v42  ;;  %v1012_v16 = vld [vmem:[#allocation2 + $0x24] sm:$0xf] }
  0x78   : > { %4797 = vmatprep.subr.bf16.mxu1 %v5065_v54  ;;  %4751 = vmatprep.mubr.bf16.mxu1 %v4255_v45  ;;  %v1122_v61 = vshrl.u32 %v1012_v16, 16  ;;  %v1125_v60 = vshll.u32 %v1012_v16, 16  ;;  %v5068_v9 = vld [vmem:[%s6565_s5 + $0xa8] sm:$0xff]   ;;  %v854_v45 = vrot.slane %v849_v63, 4  ;;  %v972_v8 = vsel %vm5560_vm4, %v844_v56, %v971_v57  ;;  %v5748_v57 = vld [vmem:[%s6565_s5 + $0x98] sm:$0xff]  }
  0x79   : > { %v1114_v2 = vor.u32 %v1113_v43, %v1109_v24  ;;  %v5701_v14 = vld [vmem:[#allocation2 + $0x28] sm:$0xf]  ;;  %v1105_v38 = vrot.slane %v1104_v27, 4  ;;  %4716 = vmatmul.mubr.bf16.vlgmr.msra.gmra.mxu0 %v4238_v35  ;;  %973 = vst [vmem:[#allocation2 + $0x30] sm:$0xf] %v972_v8  ;;  %v862_v49 = vrot.slane %v5710_v4, 4 }
  0x7a   : > { %v1131_v3 = vshll.u32 %v5701_v14, 16  ;;  %v1135_v20 = vshrl.u32 %v5701_v14, 16  ;;  %4764 = vmatpush3.bf16.msra.mxu0 %v5627_v52  ;;  %v1141_v52 = vshll.u32 %v5715_v21, 16  ;;  %v4256_v32 = vcombine.low %v1012_v16, %v5701_v14  ;;  %v985_v16 = vld [vmem:[#allocation2 + $0x48] sm:$0xf] }
  0x7b   : > { %4798 = vmatpush3.bf16.msra.mxu1 %v5065_v54  ;;  %v1115_v59 = vrot.slane %v1114_v2, 4  ;;  %v1110_v54 = vsel %vm5588_vm1, %v1105_v38, %v1109_v24  ;;  %4765 = vmatprep.subr.bf16.mxu0 %v5064_v48  ;;  %v1124_v22 = vrot.slane %v1122_v61, 4  ;;  %v1127_v30 = vrot.slane %v1125_v60, 5  ;;  %v5075_v24 = vld [vmem:[%s6565_s5 + $0xd8] sm:$0xff]  }
  0x7c   : > { %4799 = vmatprep.subr.bf16.mxu1 %v5069_v47  ;;  %v1133_v33 = vrot.slane %v1131_v3, 5  ;;  %v1137_v29 = vrot.slane %v1135_v20, 4  ;;  %v1143_v7 = vrot.slane %v1141_v52, 5  ;;  %v867_v35 = vshll.u32 %v5637_v46, 16  ;;  %v978_v2 = vld [vmem:[#allocation2 + $0x3c] sm:$0xf] }
  0x7d   : > { %v1120_v11 = vsel %vm5588_vm1, %v1115_v59, %v1119_v44  ;;  %v1128_v43 = vor.u32 %v1127_v30, %v1124_v22  ;;  %v853_v44 = vsel %vm5576_vm5, %v845_v39, %v852_v62  ;;  %v873_v38 = vshrl.u32 %v5645_v50, 16  ;;  %v5077_v46 = vld [vmem:[%s6565_s5 + $0xd0] sm:$0xff]  }
  0x7e   : > { %v4239_v5 = vcombine.low %v1110_v54, %v1120_v11  ;;  %v1138_v42 = vor.u32 %v1137_v29, %v1133_v33  ;;  %4752 = vmatmul.mubr.bf16.gmra.mxu1 %v4256_v32  ;;  %4766 = vmatpush3.bf16.msra.mxu0 %v5064_v48  ;;  %974 = vst [vmem:[#allocation2 + $0x34] sm:$0xf] %v853_v44  ;;  %v876_v3 = vshll.u32 %v5645_v50, 16  ;;  %v866_v56 = vrot.slane %v864_v51, 7  ;;  %v989_v11 = vld [vmem:[#allocation2 + $0x50] sm:$0x1] }
  0x7f   : > { %4800 = vmatpush3.bf16.msra.mxu1 %v5069_v47  ;;  %v859_v47 = vshll.u32 %v5606_v1, 16  ;;  %4767 = vmatprep.subr.bf16.mxu0 %v5068_v9  ;;  %v976_v48 = vsel %vm5264_vm2, %v854_v45, %v975_v10  ;;  %v1129_v36 = vrot.slane %v1128_v43, 4  ;;  %v884_v59 = vshll.u32 %v5650_v12, 16  ;;  %v5076_v22 = vld [vmem:[%s6565_s5 + $0x90] sm:$0xff]  }
  0x80   : > { %4801 = vmatprep.subr.bf16.mxu1 %v5071_v55  ;;  %4719 = vmatprep.mubr.bf16.mxu0 %v4239_v5  ;;  %v1139_v27 = vrot.slane %v1138_v42, 4  ;;  %977 = vst [vmem:[#allocation2 + $0x38] sm:$0x1] %v976_v48  ;;  %v875_v63 = vrot.slane %v873_v38, 7  ;;  %v869_v61 = vor.u32 %v867_v35, %v866_v56  ;;  %v871_v60 = vrot.slane %v866_v56, 4  ;;  %v5081_v42 = vld [vmem:[%s6565_s5 + $0xc8] sm:$0xff]  }
  0x81   : > { %v861_v1 = vor.u32 %v859_v47, %v5710_v4  ;;  %v1134_v50 = vsel %vm5588_vm1, %v1129_v36, %v1133_v33  ;;  %v890_v4 = vshrl.u32 %v5655_v34, 16  ;;  %v893_v33 = vshll.u32 %v5655_v34, 16  ;;  %v992_v43 = vld [vmem:[#allocation2 + $0x54] sm:$0xf]  ;;  %v5083_v38 = vld [vmem:[%s6565_s5 + $0xc0] sm:$0xff]  }
  0x82   : > { %v1144_v20 = vsel %vm5588_vm1, %v1139_v27, %v1143_v7  ;;  %4768 = vmatpush3.bf16.msra.mxu0 %v5068_v9  ;;  %v879_v29 = vrot.slane %v875_v63, 4  ;;  %v1014_v9 = vld [vmem:[#allocation2 + $0x30] sm:$0xf]  ;;  %v870_v32 = vsel %vm5576_vm5, %v862_v49, %v869_v61  ;;  %v983_v5 = vsel %vm5264_vm2, %v871_v60, %v982_v19 }
  0x83   : > { %4802 = vmatpush3.bf16.msra.mxu1 %v5071_v55  ;;  %v881_v55 = vshrl.u32 %v5650_v12, 16  ;;  %v979_v39 = vsel %vm5560_vm4, %v861_v1, %v978_v2  ;;  %v4240_v54 = vcombine.low %v1134_v50, %v1144_v20  ;;  %4769 = vmatprep.subr.bf16.mxu0 %v5070_v13  ;;  %v878_v12 = vor.u32 %v876_v3, %v875_v63  ;;  %v5080_v63 = vld [vmem:[%s6565_s5 + $0x88] sm:$0xff]  }
  0x84   : > { %4803 = vmatprep.subr.bf16.mxu1 %v5075_v24  ;;  %980 = vst [vmem:[#allocation2 + $0x3c] sm:$0xf] %v979_v39  ;;  %v5760_v52 = vrot.slane %v890_v4, 7  ;;  %v1146_v7 = vshrl.u32 %v1014_v9, 16  ;;  %v1149_v45 = vshll.u32 %v1014_v9, 16  ;;  %v898_v19 = vshrl.u32 %v5667_v15, 16 }
  0x85   : > { %v883_v10 = vrot.slane %v881_v55, 7  ;;  %4720 = vmatmul.mubr.bf16.gmra.mxu0 %v4240_v54  ;;  %v5773_v34 = vld [vmem:[#allocation2 + $0x34] sm:$0xf]  ;;  %981 = vst [vmem:[#allocation2 + $0x40] sm:$0xf] %v870_v32  ;;  %v986_v8 = vsel %vm5560_vm4, %v878_v12, %v985_v16  ;;  %v5818_v32 = vld [vmem:[%s6565_s5 + $0x178] sm:$0xff]  }
  0x86   : > { %4770 = vmatpush3.bf16.msra.mxu0 %v5070_v13  ;;  %984 = vst [vmem:[#allocation2 + $0x44] sm:$0x1] %v983_v5  ;;  %v1155_v47 = vshll.u32 %v5773_v34, 16  ;;  %v1159_v49 = vshrl.u32 %v5773_v34, 16  ;;  %v4257_v27 = vcombine.low %v1014_v9, %v5773_v34  ;;  %987 = vst [vmem:[#allocation2 + $0x48] sm:$0xf] %v986_v8 }
  0x87   : > { %4804 = vmatpush3.bf16.msra.mxu1 %v5075_v24  ;;  %v886_v30 = vor.u32 %v884_v59, %v883_v10  ;;  %v888_v62 = vrot.slane %v883_v10, 4  ;;  %v895_v24 = vor.u32 %v893_v33, %v5760_v52  ;;  %v5778_v44 = vld [vmem:[#allocation2 + $0x38] sm:$0x1]  ;;  %4771 = vmatprep.subr.bf16.mxu0 %v5748_v57  ;;  %v1148_v48 = vrot.slane %v1146_v7, 4 }
  0x88   : > { %4805 = vmatprep.subr.bf16.mxu1 %v5077_v46  ;;  %v1151_v51 = vrot.slane %v1149_v45, 5  ;;  %v1165_v35 = vshll.u32 %v5778_v44, 16  ;;  %v1157_v36 = vrot.slane %v1155_v47, 5  ;;  %v1161_v1 = vrot.slane %v1159_v49, 4  ;;  %4755 = vmatprep.mubr.bf16.mxu1 %v4257_v27 }
  0x89   : > { %v887_v13 = vsel %vm5576_vm5, %v879_v29, %v886_v30  ;;  %v990_v2 = vsel %vm5264_vm2, %v888_v62, %v989_v11  ;;  %v993_v55 = vsel %vm5560_vm4, %v895_v24, %v992_v43  ;;  %v5797_v39 = vrot.slane %v898_v19, 7  ;;  %v5082_v11 = vld [vmem:[%s6565_s5 + $0x80] sm:$0xff]  }
  0x8a   : > { %988 = vst [vmem:[#allocation2 + $0x4c] sm:$0xf] %v887_v13  ;;  %991 = vst [vmem:[#allocation2 + $0x50] sm:$0x1] %v990_v2  ;;  %v1152_v3 = vor.u32 %v1151_v51, %v1148_v48  ;;  %v1167_v20 = vrot.slane %v1165_v35, 5  ;;  %4772 = vmatpush3.bf16.msra.mxu0 %v5748_v57  ;;  %v1162_v59 = vor.u32 %v1161_v1, %v1157_v36  ;;  %v896_v54 = vrot.slane %v5760_v52, 4 }
  0x8b   : > { %4806 = vmatpush3.bf16.msra.mxu1 %v5077_v46  ;;  %v1016_v56 = vld [vmem:[#allocation2 + $0x3c] sm:$0xf]  ;;  %v901_v46 = vshll.u32 %v5667_v15, 16  ;;  %4773 = vmatprep.subr.bf16.mxu0 %v5076_v22  ;;  %994 = vst [vmem:[#allocation2 + $0x54] sm:$0xf] %v993_v55 }
  0x8c   : > { %4807 = vmatprep.subr.bf16.mxu1 %v5081_v42  ;;  %v1170_v16 = vshrl.u32 %v1016_v56, 16  ;;  %v1173_v50 = vshll.u32 %v1016_v56, 16  ;;  %v1153_v4 = vrot.slane %v1152_v3, 4  ;;  %v1163_v57 = vrot.slane %v1162_v59, 4  ;;  %v5803_v15 = vld [vmem:[#allocation2 + $0x40] sm:$0xf] }
  0x8d   : > { %v5805_v61 = vld [vmem:[#allocation2 + $0x44] sm:$0x1]  ;;  %v903_v10 = vor.u32 %v901_v46, %v5797_v39  ;;  %v1179_v52 = vshll.u32 %v5803_v15, 16  ;;  %v1183_v33 = vshrl.u32 %v5803_v15, 16  ;;  %v1018_v9 = vld [vmem:[#allocation2 + $0x48] sm:$0xf]  ;;  %v4258_v62 = vcombine.low %v1016_v56, %v5803_v15 }
  0x8e   : > { %v1172_v60 = vrot.slane %v1170_v16, 4  ;;  %v1158_v12 = vsel %vm5588_vm1, %v1153_v4, %v1157_v36  ;;  %v1175_v29 = vrot.slane %v1173_v50, 5  ;;  %4774 = vmatpush3.bf16.msra.mxu0 %v5076_v22  ;;  %v1168_v5 = vsel %vm5588_vm1, %v1163_v57, %v1167_v20  ;;  %v5835_v1 = vld [vmem:[%s6565_s5 + $0x138] sm:$0xff]  }
  0x8f   : > { %4808 = vmatpush3.bf16.msra.mxu1 %v5081_v42  ;;  %v1189_v30 = vshll.u32 %v5805_v61, 16  ;;  %v1194_v7 = vshrl.u32 %v1018_v9, 16  ;;  %4775 = vmatprep.subr.bf16.mxu0 %v5080_v63  ;;  %v4241_v45 = vcombine.low %v1158_v12, %v1168_v5  ;;  %v1181_v22 = vrot.slane %v1179_v52, 5  ;;  %v996_v59 = vld [vmem:[#allocation2 + $0x5c] sm:$0x1] }
  0x90   : > { %4809 = vmatprep.subr.bf16.mxu1 %v5083_v38  ;;  %v1176_v8 = vor.u32 %v1175_v29, %v1172_v60  ;;  %v1185_v24 = vrot.slane %v1183_v33, 4  ;;  %4756 = vmatmul.mubr.bf16.gmra.mxu1 %v4258_v62  ;;  %v1197_v27 = vshll.u32 %v1018_v9, 16  ;;  %v904_v20 = vsel %vm5576_vm5, %v896_v54, %v903_v10  ;;  %v5084_v62 = vld [vmem:[#allocation2 + $0xc] sm:$0xff]  }
  0x91   : > { %v5824_v42 = vld [vmem:[#allocation2 + $0x4c] sm:$0xf]  ;;  %v5826_v43 = vld [vmem:[#allocation2 + $0x50] sm:$0x1]  ;;  %v1191_v47 = vrot.slane %v1189_v30, 5  ;;  %v1196_v49 = vrot.slane %v1194_v7, 4  ;;  %4723 = vmatprep.mubr.bf16.mxu0 %v4241_v45 }
  0x92   : > { %v1203_v13 = vshll.u32 %v5824_v42, 16  ;;  %v1177_v48 = vrot.slane %v1176_v8, 4  ;;  %v1186_v51 = vor.u32 %v1185_v24, %v1181_v22  ;;  %v1207_v35 = vshrl.u32 %v5824_v42, 16  ;;  %v1020_v36 = vld [vmem:[#allocation2 + $0x54] sm:$0xf]  ;;  %4776 = vmatpush3.bf16.msra.mxu0 %v5080_v63 }
  0x93   : > { %4810 = vmatpush3.bf16.msra.mxu1 %v5083_v38  ;;  %v1213_v2 = vshll.u32 %v5826_v43, 16  ;;  %v1199_v19 = vrot.slane %v1197_v27, 5  ;;  %v4259_v3 = vcombine.low %v1018_v9, %v5824_v42  ;;  %4777 = vmatprep.subr.bf16.mxu0 %v5082_v11  ;;  %995 = vst [vmem:[#allocation2 + $0x58] sm:$0xf] %v904_v20  ;;  %v905_v50 = vrot.slane %v5797_v39, 4 }
  0x94   : > { %4859 = vmatprep.subr.bf16.mxu1 %v5818_v32  ;;  %v1205_v38 = vrot.slane %v1203_v13, 5  ;;  %v1182_v56 = vsel %vm5588_vm1, %v1177_v48, %v1181_v22  ;;  %v1187_v46 = vrot.slane %v1186_v51, 4  ;;  %v1209_v55 = vrot.slane %v1207_v35, 4  ;;  %v1627_v9 = vld [vmem:[#allocation2] sm:$0xe] }
  0x95   : > { %v1200_v16 = vor.u32 %v1199_v19, %v1196_v49  ;;  %4759 = vmatprep.mubr.bf16.mxu1 %v4259_v3  ;;  %v1218_v63 = vshrl.u32 %v1020_v36, 16  ;;  %v1221_v4 = vshll.u32 %v1020_v36, 16  ;;  %v1659_v57 = vrot.slane %v5553_v37, 5  ;;  %v1628_v7 = vld [vmem:[#allocation2 + $0xc] sm:$0xe] }
  0x96   : > { %v1192_v60 = vsel %vm5588_vm1, %v1187_v46, %v1191_v47  ;;  %v1210_v54 = vor.u32 %v1209_v55, %v1205_v38  ;;  %v1215_v10 = vrot.slane %v1213_v2, 5  ;;  %4778 = vmatpush3.bf16.msra.mxu0 %v5082_v11  ;;  %v997_v52 = vsel %vm5264_vm2, %v905_v50, %v996_v59  ;;  %v1629_v22 = vld [vmem:[#allocation2 + $0x18] sm:$0xe]  ;;  %v1630_v35 = vld [vmem:[#allocation2 + $0x24] sm:$0xe] }
  0x97   : > { %v4242_v12 = vcombine.low %v1182_v56, %v1192_v60  ;;  %v1201_v29 = vrot.slane %v1200_v16, 4  ;;  %v1220_v33 = vrot.slane %v1218_v63, 4  ;;  %4827 = vmatprep.subr.bf16.mxu0 %v5835_v1  ;;  %v1666_v39 = vrot.slane %v5659_v6, 5  ;;  %998 = vst [vmem:[#allocation2 + $0x5c] sm:$0x1] %v997_v52  ;;  %v5085_v50 = vld [vmem:[#allocation2 + $0x18] sm:$0xff]  }
  0x98   : > { %v1211_v5 = vrot.slane %v1210_v54, 4  ;;  %v1223_v37 = vrot.slane %v1221_v4, 5  ;;  %v1656_v30 = vrot.slane %v5551_v31, 5  ;;  %v4269_v47 = vrot.slane %v1627_v9, 9  ;;  %v1631_v63 = vld [vmem:[#allocation2 + $0x30] sm:$0xe] }
  0x99   : > { %4724 = vmatmul.mubr.bf16.gmra.mxu0 %v4242_v12  ;;  %v1206_v11 = vsel %vm5588_vm1, %v1201_v29, %v1205_v38  ;;  %v1663_v49 = vrot.slane %v5657_v25, 5  ;;  %v4270_v2 = vrot.slane %v1628_v7, 9  ;;  %v1670_v19 = vrot.slane %v5680_v28, 5  ;;  %v1632_v9 = vld [vmem:[#allocation2 + $0x3c] sm:$0xe] }
  0x9a   : > { %v1216_v45 = vsel %vm5588_vm1, %v1211_v5, %v1215_v10  ;;  %v1224_v8 = vor.u32 %v1223_v37, %v1220_v33  ;;  %v5855_v6 = vld [vmem:[#allocation2 + $0x58] sm:$0xf]  ;;  %v1658_v51 = vrot.slane %v1656_v30, 4  ;;  %v1677_v25 = vrot.slane %v5701_v14, 5  ;;  %v5089_v33 = vld [vmem:[%s6565_s5 + $0x170] sm:$0xff]   ;;  %v5090_v37 = vld [vmem:[#allocation2 + $0x24] sm:$0xff]  }
  0x9b   : > { %v4243_v24 = vcombine.low %v1206_v11, %v1216_v45  ;;  %v1227_v31 = vshll.u32 %v5855_v6, 16  ;;  %v1231_v27 = vshrl.u32 %v5855_v6, 16  ;;  %v4260_v13 = vcombine.low %v1020_v36, %v5855_v6 }
  0x9c   : > { %v1225_v38 = vrot.slane %v1224_v8, 4  ;;  %v1657_v36 = vsel %vm5861_vm8, %v4269_v47, %v1656_v30  ;;  %v1665_v46 = vrot.slane %v1663_v49, 4  ;;  %v4271_v55 = vrot.slane %v1629_v22, 9 }
  0x9d   : > { %4727 = vmatprep.mubr.bf16.mxu0 %v4243_v24  ;;  %v1229_v3 = vrot.slane %v1227_v31, 5  ;;  %v1233_v20 = vrot.slane %v1231_v27, 4  ;;  %4760 = vmatmul.mubr.bf16.gmra.mxu1 %v4260_v13  ;;  %v1660_v28 = vsel %vm5861_vm8, %v1658_v51, %v1659_v57  ;;  %v1684_v4 = vrot.slane %v5773_v34, 5  ;;  %v1634_v51 = vld [vmem:[#allocation2 + $0x54] sm:$0xe] }
  0x9e   : > { %v5867_v56 = vld [vmem:[#allocation2 + $0x5c] sm:$0x1]  ;;  %4811 = vmatprep.mubr.bf16.mxu1 %v5084_v62  ;;  %v1672_v60 = vrot.slane %v1670_v19, 4  ;;  %v1673_v14 = vrot.slane %v5682_v23, 5  ;;  %v4272_v54 = vrot.slane %v1630_v35, 9  ;;  %v1680_v10 = vrot.slane %v5715_v21, 5 }
  0x9f   : > { %v1234_v59 = vor.u32 %v1233_v20, %v1229_v3  ;;  %v1237_v16 = vshll.u32 %v5867_v56, 16  ;;  %v1230_v12 = vsel %vm5588_vm1, %v1225_v38, %v1229_v3  ;;  %v1679_v57 = vrot.slane %v1677_v25, 4  ;;  %v5088_v20 = vld [vmem:[%s6565_s5 + $0x130] sm:$0xff]  }
  0xa0   : > { %v4277_v5 = vcombine.low %v1657_v36, %v1660_v28  ;;  %v1664_v34 = vsel %vm5861_vm8, %v4270_v2, %v1663_v49  ;;  %v4273_v23 = vrot.slane %v1631_v63, 9  ;;  %v1691_v30 = vrot.slane %v5803_v15, 5  ;;  %v1633_v49 = vld [vmem:[#allocation2 + $0x48] sm:$0xe] }
  0xa1   : > { %v1235_v29 = vrot.slane %v1234_v59, 4  ;;  %v1239_v52 = vrot.slane %v1237_v16, 5  ;;  %v1667_v11 = vsel %vm5861_vm8, %v1665_v46, %v1666_v39  ;;  %v1686_v62 = vrot.slane %v1684_v4, 4  ;;  %v5095_v16 = vld [vmem:[%s6565_s5 + $0x160] sm:$0xff]  }
  0xa2   : > { %v1687_v7 = vrot.slane %v5778_v44, 5  ;;  %v4443_v8 = vpack.c.bf16 %v561_v40, %v561_v40  ;;  %v1671_v22 = vsel %vm5861_vm8, %v4271_v55, %v1670_v19  ;;  %v4274_v24 = vrot.slane %v1632_v9, 9  ;;  %v999_v55 = vld [vmem:[#allocation2 + $0x60] sm:$0xf] }
  0xa3   : > { %v1240_v21 = vsel %vm5588_vm1, %v1235_v29, %v1239_v52  ;;  %v1698_v15 = vrot.slane %v5824_v42, 5  ;;  %v4444_v47 = vpack.c.bf16 %v562_v41, %v562_v41  ;;  %v4278_v39 = vcombine.low %v1664_v34, %v1667_v11  ;;  %v5093_v41 = vld [vmem:[%s6565_s5 + $0x168] sm:$0xff]  }
  0xa4   : > { %v4244_v45 = vcombine.low %v1230_v12, %v1240_v21  ;;  %v1674_v17 = vsel %vm5861_vm8, %v1672_v60, %v1673_v14  ;;  %v1693_v44 = vrot.slane %v1691_v30, 4  ;;  %v1694_v40 = vrot.slane %v5805_v61, 5  ;;  %v5091_v61 = vld [vmem:[#allocation2 + $0x30] sm:$0xff]   ;;  %v5096_v14 = vld [vmem:[#allocation2 + $0x3c] sm:$0xff]   ;;  %v5958_v52 = vld [vmem:[%s6565_s5 + $0x128] sm:$0xff]  }
  0xa5   : > { %4812 = vmatmul.mubr.bf16.vlgmr.msra.gmra.mxu1 %v5085_v50  ;;  %v5905_v42 = vsel %vm5861_vm8, %v4272_v54, %v1677_v25  ;;  %v5909_v18 = vsel %vm5861_vm8, %v1679_v57, %v1680_v10  ;;  %v5920_v31 = vsel %vm5861_vm8, %v1686_v62, %v1687_v7  ;;  %v4275_v27 = vrot.slane %v1633_v49, 9  ;;  %v2160_v34 = vld [vmem:[#allocation2 + $0xc] sm:$0xf] }
  0xa6   : > { %4728 = vmatmul.mubr.bf16.gmra.mxu0 %v4244_v45  ;;  %4860 = vmatpush3.bf16.msra.mxu1 %v5818_v32  ;;  %v5916_v32 = vsel %vm5861_vm8, %v4273_v23, %v1684_v4  ;;  %v1701_v13 = vrot.slane %v5826_v43, 5  ;;  %v907_v35 = vshrl.u32 %v4443_v8, 16  ;;  %v1700_v2 = vrot.slane %v1698_v15, 4  ;;  %v2162_v23 = vld [vmem:[#allocation2 + $0x14] sm:$0x1]  ;;  %v5097_v7 = vld [vmem:[#allocation2 + $0x48] sm:$0xff]  }
  0xa7   : > { %4779 = vmatprep.mubr.bf16.mxu0 %v4277_v5  ;;  %4861 = vmatprep.subr.bf16.mxu1 %v5089_v33  ;;  %v4276_v19 = vrot.slane %v1634_v51, 9  ;;  %v1705_v38 = vrot.slane %v5855_v6, 5  ;;  %v910_v3 = vshll.u32 %v4443_v8, 16  ;;  %v5929_v25 = vsel %vm5861_vm8, %v4274_v24, %v1691_v30 }
  0xa8   : > { %4815 = vmatprep.mubr.bf16.mxu1 %v5090_v37  ;;  %v5933_v36 = vsel %vm5861_vm8, %v1693_v44, %v1694_v40  ;;  %v909_v43 = vrot.slane %v907_v35, 7  ;;  %v915_v46 = vshrl.u32 %v4444_v47, 16  ;;  %v4279_v59 = vcombine.low %v1671_v22, %v1674_v17  ;;  %v2161_v37 = vld [vmem:[#allocation2 + $0x10] sm:$0xf]  ;;  %v2163_v17 = vld [vmem:[#allocation2 + $0x18] sm:$0xf] }
  0xa9   : > { %v4280_v6 = vcombine.low %v5905_v42, %v5909_v18  ;;  %v918_v28 = vshll.u32 %v4444_v47, 16  ;;  %v4281_v50 = vcombine.low %v5916_v32, %v5920_v31  ;;  %v4282_v54 = vcombine.low %v5929_v25, %v5933_v36  ;;  %v5094_v44 = vld [vmem:[%s6565_s5 + $0x120] sm:$0xff]   ;;  %v5105_v42 = vld [vmem:[%s6565_s5 + $0x148] sm:$0xff]  }
  0xaa   : > { %4862 = vmatpush3.bf16.msra.mxu1 %v5089_v33  ;;  %v912_v63 = vor.u32 %v910_v3, %v909_v43  ;;  %v913_v4 = vrot.slane %v909_v43, 4  ;;  %v5942_v60 = vrot.slane %v915_v46, 7  ;;  %v5948_v10 = vsel %vm5861_vm8, %v4275_v27, %v1698_v15  ;;  %v5099_v33 = vld [vmem:[%s6565_s5 + $0x158] sm:$0xff]   ;;  %v2165_v35 = vld [vmem:[#allocation2 + $0x20] sm:$0x1] }
  0xab   : > { %4863 = vmatprep.subr.bf16.mxu1 %v5093_v41  ;;  %v5952_v12 = vsel %vm5861_vm8, %v1700_v2, %v1701_v13  ;;  %v1708_v29 = vrot.slane %v5867_v56, 5  ;;  %v5965_v57 = vsel %vm5861_vm8, %v4276_v19, %v1705_v38  ;;  %v1707_v9 = vrot.slane %v1705_v38, 4  ;;  %v2586_v38 = vld [vmem:[#allocation2 + $0x18] sm:$0xe] }
  0xac   : > { %v920_v5 = vor.u32 %v918_v28, %v5942_v60  ;;  %v1000_v56 = vsel %vm5560_vm4, %v912_v63, %v999_v55  ;;  %v2185_v30 = vshrl.u32 %v2160_v34, 16  ;;  %v2188_v21 = vshll.u32 %v2160_v34, 16 }
  0xad   : > { %4816 = vmatmul.mubr.bf16.gmra.mxu1 %v5091_v61  ;;  %1001 = vst [vmem:[#allocation2 + $0x60] sm:$0xf] %v1000_v56  ;;  %v2194_v11 = vshll.u32 %v2161_v37, 16  ;;  %v2198_v62 = vshrl.u32 %v2161_v37, 16  ;;  %v2204_v8 = vshll.u32 %v2162_v23, 16  ;;  %v2619_v22 = vrot.slane %v2161_v37, 5 }
  0xae   : > { %4780 = vmatmul.mubr.bf16.vlgmr.msra.gmra.mxu0 %v4278_v39  ;;  %4864 = vmatpush3.bf16.msra.mxu1 %v5093_v41  ;;  %v921_v45 = vsel %vm5576_vm5, %v913_v4, %v920_v5  ;;  %v2622_v24 = vrot.slane %v2162_v23, 5  ;;  %v2190_v15 = vrot.slane %v2188_v21, 5  ;;  %v4325_v49 = vrot.slane %v2585_v26, 9  ;;  %v2164_v61 = vld [vmem:[#allocation2 + $0x1c] sm:$0xf] }
  0xaf   : > { %4828 = vmatpush3.bf16.msra.mxu0 %v5835_v1  ;;  %4783 = vmatprep.mubr.bf16.mxu0 %v4279_v59  ;;  %1002 = vst [vmem:[#allocation2 + $0x64] sm:$0xf] %v921_v45  ;;  %v2187_v1 = vrot.slane %v2185_v30, 4  ;;  %v2196_v47 = vrot.slane %v2194_v11, 5  ;;  %v2200_v39 = vrot.slane %v2198_v62, 4  ;;  %v2206_v40 = vrot.slane %v2204_v8, 5 }
  0xb0   : > { %4829 = vmatprep.subr.bf16.mxu0 %v5088_v20  ;;  %4865 = vmatprep.subr.bf16.mxu1 %v5095_v16  ;;  %v2621_v41 = vrot.slane %v2619_v22, 4  ;;  %v2209_v27 = vshrl.u32 %v2163_v17, 16  ;;  %v2212_v2 = vshll.u32 %v2163_v17, 16  ;;  %v2218_v19 = vshll.u32 %v2164_v61, 16  ;;  %v5098_v4 = vld [vmem:[%s6565_s5 + $0x118] sm:$0xff]   ;;  %v5100_v11 = vld [vmem:[%s6565_s5 + $0x110] sm:$0xff]  }
  0xb1   : > { %4819 = vmatprep.mubr.bf16.mxu1 %v5096_v14  ;;  %v2191_v13 = vor.u32 %v2190_v15, %v2187_v1  ;;  %v2201_v51 = vor.u32 %v2200_v39, %v2196_v47  ;;  %v5982_v3 = vsel %vm5861_vm8, %v1707_v9, %v1708_v29  ;;  %v5986_v43 = vsel %vm5861_vm8, %v4325_v49, %v2619_v22  ;;  %v2166_v8 = vld [vmem:[#allocation2 + $0x24] sm:$0xf]  ;;  %v2168_v1 = vld [vmem:[#allocation2 + $0x2c] sm:$0x1]  ;;  %v2169_v49 = vld [vmem:[#allocation2 + $0x30] sm:$0xf] }
  0xb2   : > { %4866 = vmatpush3.bf16.msra.mxu1 %v5095_v16  ;;  %v2211_v46 = vrot.slane %v2209_v27, 4  ;;  %v2222_v55 = vshrl.u32 %v2164_v61, 16  ;;  %v5990_v28 = vsel %vm5861_vm8, %v2621_v41, %v2622_v24  ;;  %v2214_v63 = vrot.slane %v2212_v2, 5  ;;  %v2167_v24 = vld [vmem:[#allocation2 + $0x28] sm:$0xf] }
  0xb3   : > { %4830 = vmatpush3.bf16.msra.mxu0 %v5088_v20  ;;  %4867 = vmatprep.subr.bf16.mxu1 %v5099_v33  ;;  %v5102_v20 = vld [vmem:[#allocation2 + $0x54] sm:$0xff]   ;;  %v2192_v59 = vrot.slane %v2191_v13, 4  ;;  %v2202_v16 = vrot.slane %v2201_v51, 4  ;;  %v2220_v14 = vrot.slane %v2218_v19, 5  ;;  %v2228_v9 = vshll.u32 %v2165_v35, 16 }
  0xb4   : > { %4831 = vmatprep.subr.bf16.mxu0 %v5958_v52  ;;  %v2224_v29 = vrot.slane %v2222_v55, 4  ;;  %v4326_v5 = vrot.slane %v2586_v38, 9  ;;  %v2626_v56 = vrot.slane %v2164_v61, 5  ;;  %v2629_v31 = vrot.slane %v2165_v35, 5  ;;  %v6040_v51 = vld [vmem:[#allocation2 + $0x34] sm:$0xf] }
  0xb5   : > { %4820 = vmatmul.mubr.bf16.gmra.mxu1 %v5097_v7  ;;  %v2197_v18 = vsel %vm5588_vm1, %v2192_v59, %v2196_v47  ;;  %v2230_v32 = vrot.slane %v2228_v9, 5  ;;  %v4284_v62 = vcombine.low %v5965_v57, %v5982_v3  ;;  %v5107_v7 = vld [vmem:[%s6565_s5 + $0x140] sm:$0xff]   ;;  %v2233_v15 = vshrl.u32 %v2166_v8, 16  ;;  %v5104_v35 = vld [vmem:[%s6565_s5 + $0x108] sm:$0xff]   ;;  %v5109_v55 = vld [vmem:[%s6565_s5 + $0x1f8] sm:$0xff]  }
  0xb6   : > { %4784 = vmatmul.mubr.bf16.gmra.mxu0 %v4280_v6  ;;  %4868 = vmatpush3.bf16.msra.mxu1 %v5099_v33  ;;  %v2207_v6 = vsel %vm5588_vm1, %v2202_v16, %v2206_v40  ;;  %v2215_v33 = vor.u32 %v2214_v63, %v2211_v46  ;;  %v5103_v34 = vld [vmem:[#allocation2 + $0x60] sm:$0xff]   ;;  %v2225_v37 = vor.u32 %v2224_v29, %v2220_v14  ;;  %v2628_v21 = vrot.slane %v2626_v56, 4  ;;  %v6048_v46 = vld [vmem:[#allocation2 + $0x38] sm:$0x1]  ;;  %v2588_v59 = vld [vmem:[#allocation2 + $0x30] sm:$0xe] }
  0xb7   : > { %4832 = vmatpush3.bf16.msra.mxu0 %v5958_v52  ;;  %4787 = vmatprep.mubr.bf16.mxu0 %v4281_v50  ;;  %v922_v52 = vrot.slane %v5942_v60, 4  ;;  %v4283_v50 = vcombine.low %v5948_v10, %v5952_v12  ;;  %v6014_v30 = vsel %vm5861_vm8, %v4326_v5, %v2626_v56  ;;  %v6024_v10 = vcombine.low %v2197_v18, %v2207_v6  ;;  %v2587_v40 = vld [vmem:[#allocation2 + $0x24] sm:$0xe]  ;;  %v5111_v18 = vld [vmem:[%s6565_s5 + $0x1f0] sm:$0xff]   ;;  %v5113_v57 = vld [vmem:[%s6565_s5 + $0x1e8] sm:$0xff]  }
  0xb8   : > { %4833 = vmatprep.subr.bf16.mxu0 %v5094_v44  ;;  %4869 = vmatprep.subr.bf16.mxu1 %v5101_v53  ;;  %v2216_v23 = vrot.slane %v2215_v33, 4  ;;  %v4333_v12 = vcombine.low %v5986_v43, %v5990_v28  ;;  %v2226_v45 = vrot.slane %v2225_v37, 4  ;;  %v6032_v22 = vsel %vm5861_vm8, %v2628_v21, %v2629_v31 }
  0xb9   : > { %4823 = vmatprep.mubr.bf16.mxu1 %v5102_v20  ;;  %v2236_v47 = vshll.u32 %v2166_v8, 16  ;;  %v4334_v17 = vcombine.low %v6014_v30, %v6032_v22  ;;  %v2235_v61 = vrot.slane %v2233_v15, 4  ;;  %v2252_v13 = vshll.u32 %v2168_v1, 16  ;;  %v2173_v22 = vld [vmem:[#allocation2 + $0x40] sm:$0xf] }
  0xba   : > { %4870 = vmatpush3.bf16.msra.mxu1 %v5101_v53  ;;  %v2221_v26 = vsel %vm5588_vm1, %v2216_v23, %v2220_v14  ;;  %v2231_v39 = vsel %vm5588_vm1, %v2226_v45, %v2230_v32  ;;  %v2246_v53 = vshrl.u32 %v2167_v24, 16  ;;  %v4327_v38 = vrot.slane %v2587_v40, 9  ;;  %v5108_v40 = vld [vmem:[%s6565_s5 + $0x1b8] sm:$0xff]  }
  0xbb   : > { %4834 = vmatpush3.bf16.msra.mxu0 %v5094_v44  ;;  %4871 = vmatprep.subr.bf16.mxu1 %v5105_v42  ;;  %v2242_v44 = vshll.u32 %v2167_v24, 16  ;;  %v6038_v41 = vcombine.low %v2221_v26, %v2231_v39  ;;  %v2238_v27 = vrot.slane %v2236_v47, 5  ;;  %v2633_v43 = vrot.slane %v2167_v24, 5  ;;  %v2172_v26 = vld [vmem:[#allocation2 + $0x3c] sm:$0xf] }
  0xbc   : > { %4835 = vmatprep.subr.bf16.mxu0 %v5098_v4  ;;  %v2248_v19 = vrot.slane %v2246_v53, 4  ;;  %v2254_v25 = vrot.slane %v2252_v13, 5  ;;  %v2636_v36 = vrot.slane %v2168_v1, 5  ;;  %v2260_v14 = vshll.u32 %v2169_v49, 16  ;;  %v6077_v1 = vld [vmem:[#allocation2 + $0x44] sm:$0x1] }
  0xbd   : > { %4824 = vmatmul.mubr.bf16.gmra.mxu1 %v5103_v34  ;;  %v2244_v2 = vrot.slane %v2242_v44, 5  ;;  %v2239_v20 = vor.u32 %v2238_v27, %v2235_v61  ;;  %v2634_v28 = vsel %vm5861_vm8, %v4327_v38, %v2633_v43  ;;  %v2635_v63 = vrot.slane %v2633_v43, 4  ;;  %v6095_v38 = vld [vmem:[#allocation2 + $0x4c] sm:$0xf]  ;;  %v5110_v43 = vld [vmem:[%s6565_s5 + $0x1b0] sm:$0xff]  }
  0xbe   : > { %4788 = vmatmul.mubr.bf16.gmra.mxu0 %v4282_v54  ;;  %4872 = vmatpush3.bf16.msra.mxu1 %v5105_v42  ;;  %v2257_v54 = vshrl.u32 %v2169_v49, 16  ;;  %v2266_v9 = vshll.u32 %v6040_v51, 16  ;;  %v2270_v5 = vshrl.u32 %v6040_v51, 16  ;;  %v5106_v42 = vld [vmem:[%s6565_s5 + $0x100] sm:$0xff]   ;;  %v2262_v56 = vrot.slane %v2260_v14, 5 }
  0xbf   : > { %4836 = vmatpush3.bf16.msra.mxu0 %v5098_v4  ;;  %4791 = vmatprep.mubr.bf16.mxu0 %v4283_v50  ;;  %v2249_v16 = vor.u32 %v2248_v19, %v2244_v2  ;;  %v2240_v4 = vrot.slane %v2239_v20, 4  ;;  %v2637_v33 = vsel %vm5861_vm8, %v2635_v63, %v2636_v36  ;;  %v2276_v34 = vshll.u32 %v6048_v46, 16  ;;  %v2175_v19 = vld [vmem:[#allocation2 + $0x48] sm:$0xf]  ;;  %v6102_v36 = vld [vmem:[#allocation2 + $0x50] sm:$0x1] }
  0xc0   : > { %4837 = vmatprep.subr.bf16.mxu0 %v5100_v11  ;;  %4873 = vmatprep.subr.bf16.mxu1 %v5107_v7  ;;  %v2259_v29 = vrot.slane %v2257_v54, 4  ;;  %v4335_v32 = vcombine.low %v2634_v28, %v2637_v33  ;;  %v2268_v31 = vrot.slane %v2266_v9, 5  ;;  %v2272_v50 = vrot.slane %v2270_v5, 4  ;;  %v5115_v54 = vld [vmem:[%s6565_s5 + $0x1e0] sm:$0xff]   ;;  %v2590_v14 = vld [vmem:[#allocation2 + $0x48] sm:$0xe] }
  0xc1   : > { %4875 = vmatprep.mubr.bf16.mxu1 %v4333_v12  ;;  %v2250_v6 = vrot.slane %v2249_v16, 4  ;;  %v2245_v37 = vsel %vm5588_vm1, %v2240_v4, %v2244_v2  ;;  %v2278_v21 = vrot.slane %v2276_v34, 5  ;;  %v2643_v8 = vrot.slane %v6048_v46, 5 }
  0xc2   : > { %4874 = vmatpush3.bf16.msra.mxu1 %v5107_v7  ;;  %v2263_v30 = vor.u32 %v2262_v56, %v2259_v29  ;;  %v4328_v7 = vrot.slane %v2588_v59, 9  ;;  %v2273_v45 = vor.u32 %v2272_v50, %v2268_v31  ;;  %v2281_v15 = vshrl.u32 %v2172_v26, 16 }
  0xc3   : > { %4838 = vmatpush3.bf16.msra.mxu0 %v5100_v11  ;;  %4923 = vmatprep.subr.bf16.mxu1 %v5109_v55  ;;  %v2255_v23 = vsel %vm5588_vm1, %v2250_v6, %v2254_v25  ;;  %v2640_v11 = vrot.slane %v6040_v51, 5  ;;  %v2284_v47 = vshll.u32 %v2172_v26, 16  ;;  %v2290_v39 = vshll.u32 %v2173_v22, 16 }
  0xc4   : > { %4839 = vmatprep.subr.bf16.mxu0 %v5104_v35  ;;  %v6070_v12 = vcombine.low %v2245_v37, %v2255_v23  ;;  %v2264_v24 = vrot.slane %v2263_v30, 4  ;;  %v2294_v3 = vshrl.u32 %v2173_v22, 16  ;;  %v2283_v49 = vrot.slane %v2281_v15, 4  ;;  %v2179_v15 = vld [vmem:[#allocation2 + $0x58] sm:$0xf] }
  0xc5   : > { %4876 = vmatmul.mubr.bf16.vlgmr.msra.gmra.mxu1 %v4334_v17  ;;  %v2274_v17 = vrot.slane %v2273_v45, 4  ;;  %v2641_v44 = vsel %vm5861_vm8, %v4328_v7, %v2640_v11  ;;  %v2642_v53 = vrot.slane %v2640_v11, 4  ;;  %v2286_v61 = vrot.slane %v2284_v47, 5 }
  0xc6   : > { %4792 = vmatmul.mubr.bf16.gmra.mxu0 %v4284_v62  ;;  %4924 = vmatpush3.bf16.msra.mxu1 %v5109_v55  ;;  %v2589_v62 = vld [vmem:[#allocation2 + $0x3c] sm:$0xe]  ;;  %v2292_v27 = vrot.slane %v2290_v39, 5  ;;  %v2300_v2 = vshll.u32 %v6077_v1, 16  ;;  %v2647_v28 = vrot.slane %v2173_v22, 5  ;;  %v2650_v63 = vrot.slane %v6077_v1, 5 }
  0xc7   : > { %4840 = vmatpush3.bf16.msra.mxu0 %v5104_v35  ;;  %4843 = vmatprep.mubr.bf16.mxu0 %v6024_v10  ;;  %v2269_v10 = vsel %vm5588_vm1, %v2264_v24, %v2268_v31  ;;  %v2279_v13 = vsel %vm5588_vm1, %v2274_v17, %v2278_v21  ;;  %v2644_v51 = vsel %vm5861_vm8, %v2642_v53, %v2643_v8  ;;  %v2296_v35 = vrot.slane %v2294_v3, 4  ;;  %v5117_v31 = vld [vmem:[%s6565_s5 + $0x1d8] sm:$0xff]   ;;  %v5112_v21 = vld [vmem:[%s6565_s5 + $0x1a8] sm:$0xff]  }
  0xc8   : > { %4841 = vmatprep.subr.bf16.mxu0 %v5106_v42  ;;  %4925 = vmatprep.subr.bf16.mxu1 %v5111_v18  ;;  %v6100_v46 = vcombine.low %v2269_v10, %v2279_v13  ;;  %v4336_v55 = vcombine.low %v2641_v44, %v2644_v51  ;;  %v2287_v20 = vor.u32 %v2286_v61, %v2283_v49  ;;  %v4329_v25 = vrot.slane %v2589_v62, 9  ;;  %v2180_v39 = vld [vmem:[#allocation2 + $0x5c] sm:$0x1]  ;;  %v2591_v49 = vld [vmem:[#allocation2 + $0x54] sm:$0xe] }
  0xc9   : > { %4879 = vmatprep.mubr.bf16.mxu1 %v4335_v32  ;;  %v2297_v59 = vor.u32 %v2296_v35, %v2292_v27  ;;  %v2302_v16 = vrot.slane %v2300_v2, 5  ;;  %v2305_v29 = vshrl.u32 %v2175_v19, 16  ;;  %v2308_v9 = vshll.u32 %v2175_v19, 16  ;;  %v1003_v2 = vld [vmem:[#allocation2 + $0x68] sm:$0x1] }
  0xca   : > { %4926 = vmatpush3.bf16.msra.mxu1 %v5111_v18  ;;  %v2288_v4 = vrot.slane %v2287_v20, 4  ;;  %v2314_v5 = vshll.u32 %v6095_v38, 16  ;;  %v2649_v6 = vrot.slane %v2647_v28, 4  ;;  %v2318_v33 = vshrl.u32 %v6095_v38, 16  ;;  %v2181_v20 = vld [vmem:[#allocation2 + $0x60] sm:$0xf] }
  0xcb   : > { %4842 = vmatpush3.bf16.msra.mxu0 %v5106_v42  ;;  %4927 = vmatprep.subr.bf16.mxu1 %v5113_v57  ;;  %v2298_v18 = vrot.slane %v2297_v59, 4  ;;  %v2648_v42 = vsel %vm5861_vm8, %v4329_v25, %v2647_v28  ;;  %v2307_v34 = vrot.slane %v2305_v29, 4  ;;  %v2310_v37 = vrot.slane %v2308_v9, 5  ;;  %v6143_v25 = vld [vmem:[#allocation2 + $0x64] sm:$0xf]  ;;  %v5121_v9 = vld [vmem:[%s6565_s5 + $0x1c8] sm:$0xff]  }
  0xcc   : > { %4891 = vmatprep.subr.bf16.mxu0 %v5108_v40  ;;  %v2293_v56 = vsel %vm5588_vm1, %v2288_v4, %v2292_v27  ;;  %v2316_v32 = vrot.slane %v2314_v5, 5  ;;  %v2320_v23 = vrot.slane %v2318_v33, 4  ;;  %v2324_v30 = vshll.u32 %v6102_v36, 16  ;;  %v5119_v27 = vld [vmem:[%s6565_s5 + $0x1d0] sm:$0xff]   ;;  %v2592_v28 = vld [vmem:[#allocation2 + $0x60] sm:$0xe] }
  0xcd   : > { %4880 = vmatmul.mubr.bf16.gmra.mxu1 %v4336_v55  ;;  %v2303_v50 = vsel %vm5588_vm1, %v2298_v18, %v2302_v16  ;;  %v2311_v11 = vor.u32 %v2310_v37, %v2307_v34  ;;  %v4330_v8 = vrot.slane %v2590_v14, 9  ;;  %v2654_v24 = vrot.slane %v6095_v38, 5 }
  0xce   : > { %4844 = vmatmul.mubr.bf16.vlgmr.msra.gmra.mxu0 %v6038_v41  ;;  %4928 = vmatpush3.bf16.msra.mxu1 %v5113_v57  ;;  %v2651_v41 = vsel %vm5861_vm8, %v2649_v6, %v2650_v63  ;;  %v4313_v7 = vcombine.low %v2293_v56, %v2303_v50  ;;  %v2321_v26 = vor.u32 %v2320_v23, %v2316_v32  ;;  %v2326_v22 = vrot.slane %v2324_v30, 5  ;;  %v5114_v57 = vld [vmem:[%s6565_s5 + $0x1a0] sm:$0xff]   ;;  %v5118_v30 = vld [vmem:[%s6565_s5 + $0x190] sm:$0xff]  }
  0xcf   : > { %4892 = vmatpush3.bf16.msra.mxu0 %v5108_v40  ;;  %4847 = vmatprep.mubr.bf16.mxu0 %v6070_v12  ;;  %v4337_v45 = vcombine.low %v2648_v42, %v2651_v41  ;;  %v2178_v12 = vld [vmem:[#allocation2 + $0x54] sm:$0xf]  ;;  %v2657_v1 = vrot.slane %v6102_v36, 5  ;;  %v2312_v47 = vrot.slane %v2311_v11, 4  ;;  %v2338_v53 = vshll.u32 %v2179_v15, 16 }
  0xd0   : > { %4893 = vmatprep.subr.bf16.mxu0 %v5110_v43  ;;  %4929 = vmatprep.subr.bf16.mxu1 %v5115_v54  ;;  %v2329_v17 = vshrl.u32 %v2178_v12, 16  ;;  %v2332_v44 = vshll.u32 %v2178_v12, 16  ;;  %v2322_v3 = vrot.slane %v2321_v26, 4  ;;  %v2655_v62 = vsel %vm5861_vm8, %v4330_v8, %v2654_v24  ;;  %v5123_v12 = vld [vmem:[%s6565_s5 + $0x1c0] sm:$0xff]   ;;  %v3124_v26 = vld [vmem:[#allocation2 + $0x18] sm:$0xf] }
  0xd1   : > { %4883 = vmatprep.mubr.bf16.mxu1 %v4337_v45  ;;  %v2656_v40 = vrot.slane %v2654_v24, 4  ;;  %v2342_v10 = vshrl.u32 %v2179_v15, 16  ;;  %v2317_v61 = vsel %vm5588_vm1, %v2312_v47, %v2316_v32  ;;  %v2340_v35 = vrot.slane %v2338_v53, 5 }
  0xd2   : > { %4930 = vmatpush3.bf16.msra.mxu1 %v5115_v54  ;;  %v2331_v13 = vrot.slane %v2329_v17, 4  ;;  %v2334_v51 = vrot.slane %v2332_v44, 5  ;;  %v2327_v19 = vsel %vm5588_vm1, %v2322_v3, %v2326_v22  ;;  %v2348_v55 = vshll.u32 %v2180_v39, 16  ;;  %v5120_v17 = vld [vmem:[%s6565_s5 + $0x188] sm:$0xff]  }
  0xd3   : > { %4894 = vmatpush3.bf16.msra.mxu0 %v5110_v43  ;;  %4931 = vmatprep.subr.bf16.mxu1 %v5117_v31  ;;  %v2658_v38 = vsel %vm5861_vm8, %v2656_v40, %v2657_v1  ;;  %v2344_v43 = vrot.slane %v2342_v10, 4  ;;  %v4314_v36 = vcombine.low %v2317_v61, %v2327_v19  ;;  %v4331_v16 = vrot.slane %v2591_v49, 9  ;;  %v6176_v1 = vld [vmem:[#allocation2 + $0x1c] sm:$0xf] }
  0xd4   : > { %4895 = vmatprep.subr.bf16.mxu0 %v5112_v21  ;;  %v4338_v54 = vcombine.low %v2655_v62, %v2658_v38  ;;  %v2335_v59 = vor.u32 %v2334_v51, %v2331_v13  ;;  %v2350_v14 = vrot.slane %v2348_v55, 5  ;;  %v2661_v4 = vrot.slane %v2179_v15, 5  ;;  %v6178_v15 = vld [vmem:[#allocation2 + $0x20] sm:$0x1]  ;;  %v6190_v49 = vld [vmem:[%s6565_s5 + $0x238] sm:$0xff]  }
  0xd5   : > { %v2345_v63 = vor.u32 %v2344_v43, %v2340_v35  ;;  %v2664_v29 = vrot.slane %v2180_v39, 5  ;;  %v1004_v18 = vsel %vm5264_vm2, %v922_v52, %v1003_v2  ;;  %v2353_v42 = vshrl.u32 %v2181_v20, 16  ;;  %v5122_v2 = vld [vmem:[%s6565_s5 + $0x180] sm:$0xff]   ;;  %v6199_v55 = vld [vmem:[#allocation2 + $0x28] sm:$0xf] }
  0xd6   : > { %4848 = vmatmul.mubr.bf16.gmra.mxu0 %v6100_v46  ;;  %4932 = vmatpush3.bf16.msra.mxu1 %v5117_v31  ;;  %v5116_v46 = vld [vmem:[%s6565_s5 + $0x198] sm:$0xff]   ;;  %v2336_v5 = vrot.slane %v2335_v59, 4  ;;  %v2356_v6 = vshll.u32 %v2181_v20, 16  ;;  %v2662_v56 = vsel %vm5861_vm8, %v4331_v16, %v2661_v4  ;;  %v2663_v34 = vrot.slane %v2661_v4, 4  ;;  %1005 = vst [vmem:[#allocation2 + $0x68] sm:$0x1] %v1004_v18 }
  0xd7   : > { %4896 = vmatpush3.bf16.msra.mxu0 %v5112_v21  ;;  %4851 = vmatprep.mubr.bf16.mxu0 %v4313_v7  ;;  %v2346_v33 = vrot.slane %v2345_v63, 4  ;;  %v2362_v37 = vshll.u32 %v6143_v25, 16  ;;  %v2355_v31 = vrot.slane %v2353_v42, 4  ;;  %v2366_v0 = vshrl.u32 %v6143_v25, 16  ;;  %v3127_v43 = vld [vmem:[#allocation2 + $0x24] sm:$0xf] }
  0xd8   : > { %4897 = vmatprep.subr.bf16.mxu0 %v5114_v57  ;;  %4884 = vmatmul.mubr.bf16.gmra.mxu1 %v4338_v54  ;;  %v2341_v32 = vsel %vm5588_vm1, %v2336_v5, %v2340_v35  ;;  %v2358_v60 = vrot.slane %v2356_v6, 5  ;;  %v2665_v50 = vsel %vm5861_vm8, %v2663_v34, %v2664_v29  ;;  %v4332_v23 = vrot.slane %v2592_v28, 9  ;;  %v6203_v54 = vld [vmem:[#allocation2 + $0x2c] sm:$0x1]  ;;  %v5124_v29 = vld [vmem:[#allocation2 + $0x18] sm:$0xff]  }
  0xd9   : > { %4933 = vmatprep.subr.bf16.mxu1 %v5119_v27  ;;  %v2351_v52 = vsel %vm5588_vm1, %v2346_v33, %v2350_v14  ;;  %v6166_v41 = vrot.slane %v2362_v37, 5  ;;  %v4339_v7 = vcombine.low %v2662_v56, %v2665_v50  ;;  %v2368_v11 = vrot.slane %v2366_v0, 4  ;;  %v6217_v50 = vld [vmem:[#allocation2 + $0x38] sm:$0x1] }
  0xda   : > { %4934 = vmatpush3.bf16.msra.mxu1 %v5119_v27  ;;  %v4315_v21 = vcombine.low %v2341_v32, %v2351_v52  ;;  %v2359_v45 = vor.u32 %v2358_v60, %v2355_v31  ;;  %v2668_v8 = vrot.slane %v6143_v25, 5  ;;  %v3149_v47 = vshrl.u32 %v3124_v26, 16  ;;  %v3130_v32 = vld [vmem:[#allocation2 + $0x30] sm:$0xf]  ;;  %v6215_v52 = vld [vmem:[#allocation2 + $0x34] sm:$0xf] }
  0xdb   : > { %4898 = vmatpush3.bf16.msra.mxu0 %v5114_v57  ;;  %4935 = vmatprep.subr.bf16.mxu1 %v5121_v9  ;;  %v2369_v24 = vor.u32 %v2368_v11, %v6166_v41  ;;  %v3152_v44 = vshll.u32 %v3124_v26, 16  ;;  %v3158_v53 = vshll.u32 %v6176_v1, 16  ;;  %v3162_v10 = vshrl.u32 %v6176_v1, 16  ;;  %v5125_v26 = vld [vmem:[#allocation2 + $0x24] sm:$0xff]  }
  0xdc   : > { %4899 = vmatprep.subr.bf16.mxu0 %v5116_v46  ;;  %4887 = vmatprep.mubr.bf16.mxu1 %v4339_v7  ;;  %v2360_v22 = vrot.slane %v2359_v45, 4  ;;  %v2670_v39 = vrot.slane %v2668_v8, 4  ;;  %v2669_v62 = vsel %vm5861_vm8, %v4332_v23, %v2668_v8  ;;  %v3151_v40 = vrot.slane %v3149_v47, 4 }
  0xdd   : > { %v2183_v57 = vld [vmem:[#allocation2 + $0x68] sm:$0x1]  ;;  %v2370_v3 = vrot.slane %v2369_v24, 4  ;;  %v3154_v13 = vrot.slane %v3152_v44, 5  ;;  %v3160_v51 = vrot.slane %v3158_v53, 5  ;;  %v3164_v19 = vrot.slane %v3162_v10, 4 }
  0xde   : > { %4852 = vmatmul.mubr.bf16.gmra.mxu0 %v4314_v36  ;;  %4936 = vmatpush3.bf16.msra.mxu1 %v5121_v9  ;;  %v2372_v61 = vshll.u32 %v2183_v57, 16  ;;  %v2671_v27 = vrot.slane %v2183_v57, 5  ;;  %v2365_v35 = vsel %vm5588_vm1, %v2360_v22, %v6166_v41  ;;  %v3168_v38 = vshll.u32 %v6178_v15, 16  ;;  %v6225_v57 = vld [vmem:[#allocation2 + $0x40] sm:$0xf] }
  0xdf   : > { %4900 = vmatpush3.bf16.msra.mxu0 %v5116_v46  ;;  %4855 = vmatprep.mubr.bf16.mxu0 %v4315_v21  ;;  %v3155_v36 = vor.u32 %v3154_v13, %v3151_v40  ;;  %v3173_v59 = vshrl.u32 %v3127_v43, 16  ;;  %v3165_v28 = vor.u32 %v3164_v19, %v3160_v51  ;;  %v3176_v14 = vshll.u32 %v3127_v43, 16 }
  0xe0   : > { %4901 = vmatprep.subr.bf16.mxu0 %v5118_v30  ;;  %4937 = vmatprep.subr.bf16.mxu1 %v5123_v12  ;;  %v2374_v20 = vrot.slane %v2372_v61, 5  ;;  %v2672_v25 = vsel %vm5861_vm8, %v2670_v39, %v2671_v27  ;;  %v3170_v63 = vrot.slane %v3168_v38, 5  ;;  %v3182_v5 = vshll.u32 %v6199_v55, 16  ;;  %v3133_v39 = vld [vmem:[#allocation2 + $0x3c] sm:$0xf]  ;;  %v5128_v38 = vld [vmem:[#allocation2 + $0x30] sm:$0xff]  }
  0xe1   : > { %v4340_v16 = vcombine.low %v2669_v62, %v2672_v25  ;;  %v3156_v9 = vrot.slane %v3155_v36, 4  ;;  %v3175_v46 = vrot.slane %v3173_v59, 4  ;;  %v3166_v42 = vrot.slane %v3165_v28, 4  ;;  %v5127_v62 = vld [vmem:[%s6565_s5 + $0x230] sm:$0xff]  }
  0xe2   : > { %4938 = vmatpush3.bf16.msra.mxu1 %v5123_v12  ;;  %v2375_v4 = vsel %vm5588_vm1, %v2370_v3, %v2374_v20  ;;  %v3178_v6 = vrot.slane %v3176_v14, 5  ;;  %v3186_v33 = vshrl.u32 %v6199_v55, 16  ;;  %v3184_v34 = vrot.slane %v3182_v5, 5  ;;  %v6227_v3 = vld [vmem:[#allocation2 + $0x44] sm:$0x1] }
  0xe3   : > { %4902 = vmatpush3.bf16.msra.mxu0 %v5118_v30  ;;  %4987 = vmatprep.subr.bf16.mxu1 %v6190_v49  ;;  %v4316_v18 = vcombine.low %v2365_v35, %v2375_v4  ;;  %v3161_v56 = vsel %vm5588_vm1, %v3156_v9, %v3160_v51  ;;  %v3192_v37 = vshll.u32 %v6203_v54, 16  ;;  %v3171_v31 = vsel %vm5588_vm1, %v3166_v42, %v3170_v63  ;;  %v5130_v63 = vld [vmem:[%s6565_s5 + $0x228] sm:$0xff]   ;;  %v6248_v42 = vld [vmem:[#allocation2 + $0x50] sm:$0x1] }
  0xe4   : > { %4903 = vmatprep.subr.bf16.mxu0 %v5120_v17  ;;  %4888 = vmatmul.mubr.bf16.gmra.mxu1 %v4340_v16  ;;  %v3179_v60 = vor.u32 %v3178_v6, %v3175_v46  ;;  %v3188_v0 = vrot.slane %v3186_v33, 4  ;;  %v3197_v41 = vshrl.u32 %v3130_v32, 16  ;;  %v4365_v23 = vcombine.low %v3161_v56, %v3171_v31  ;;  %v6243_v9 = vld [vmem:[#allocation2 + $0x4c] sm:$0xf]  ;;  %v5129_v56 = vld [vmem:[#allocation2 + $0x3c] sm:$0xff]  }
  0xe5   : > { %v3194_v30 = vrot.slane %v3192_v37, 5  ;;  %v3200_v21 = vshll.u32 %v3130_v32, 16  ;;  %v3206_v7 = vshll.u32 %v6215_v52, 16  ;;  %v3210_v12 = vshrl.u32 %v6215_v52, 16 }
  0xe6   : > { %4856 = vmatmul.mubr.bf16.gmra.mxu0 %v4316_v18  ;;  %v3180_v45 = vrot.slane %v3179_v60, 4  ;;  %v3189_v11 = vor.u32 %v3188_v0, %v3184_v34  ;;  %v3199_v8 = vrot.slane %v3197_v41, 4  ;;  %4939 = vmatprep.mubr.bf16.mxu1 %v4365_v23  ;;  %v3216_v47 = vshll.u32 %v6217_v50, 16  ;;  %v3139_v23 = vld [vmem:[#allocation2 + $0x54] sm:$0xf] }
  0xe7   : > { %4904 = vmatpush3.bf16.msra.mxu0 %v5120_v17  ;;  %4907 = vmatprep.mubr.bf16.mxu0 %v5124_v29  ;;  %v3202_v22 = vrot.slane %v3200_v21, 5  ;;  %v3208_v24 = vrot.slane %v3206_v7, 5  ;;  %v3212_v53 = vrot.slane %v3210_v12, 4  ;;  %v3221_v61 = vshrl.u32 %v3133_v39, 16  ;;  %v3136_v29 = vld [vmem:[#allocation2 + $0x48] sm:$0xf] }
  0xe8   : > { %4905 = vmatprep.subr.bf16.mxu0 %v5122_v2  ;;  %v3185_v17 = vsel %vm5588_vm1, %v3180_v45, %v3184_v34  ;;  %v3190_v44 = vrot.slane %v3189_v11, 4  ;;  %v3218_v10 = vrot.slane %v3216_v47, 5  ;;  %v3224_v27 = vshll.u32 %v3133_v39, 16  ;;  %v6258_v45 = vld [vmem:[#allocation2 + $0x58] sm:$0xf]  ;;  %v5132_v12 = vld [vmem:[#allocation2 + $0x48] sm:$0xff]  }
  0xe9   : > { %v3203_v40 = vor.u32 %v3202_v22, %v3199_v8  ;;  %v3213_v51 = vor.u32 %v3212_v53, %v3208_v24  ;;  %v3230_v35 = vshll.u32 %v6225_v57, 16  ;;  %v3223_v20 = vrot.slane %v3221_v61, 4  ;;  %v6260_v11 = vld [vmem:[#allocation2 + $0x5c] sm:$0x1] }
  0xea   : > { %v3195_v13 = vsel %vm5588_vm1, %v3190_v44, %v3194_v30  ;;  %v3226_v25 = vrot.slane %v3224_v27, 5  ;;  %v3240_v28 = vshll.u32 %v6227_v3, 16  ;;  %v3245_v6 = vshrl.u32 %v3136_v29, 16  ;;  %v5134_v61 = vld [vmem:[%s6565_s5 + $0x218] sm:$0xff]  }
  0xeb   : > { %4906 = vmatpush3.bf16.msra.mxu0 %v5122_v2  ;;  %v3234_v2 = vshrl.u32 %v6225_v57, 16  ;;  %v4366_v19 = vcombine.low %v3185_v17, %v3195_v13  ;;  %v3204_v43 = vrot.slane %v3203_v40, 4  ;;  %v3214_v36 = vrot.slane %v3213_v51, 4 }
  0xec   : > { %4955 = vmatprep.subr.bf16.mxu0 %v6190_v49  ;;  %v3232_v59 = vrot.slane %v3230_v35, 5  ;;  %v3227_v4 = vor.u32 %v3226_v25, %v3223_v20  ;;  %v3242_v18 = vrot.slane %v3240_v28, 5  ;;  %v3248_v37 = vshll.u32 %v3136_v29, 16  ;;  %v6278_v28 = vld [vmem:[#allocation2 + $0x64] sm:$0xf]  ;;  %v5135_v29 = vld [vmem:[%s6565_s5 + $0x210] sm:$0xff]  }
  0xed   : > { %v3236_v16 = vrot.slane %v3234_v2, 4  ;;  %4940 = vmatmul.mubr.bf16.vlgmr.msra.gmra.mxu1 %v4366_v19  ;;  %v3209_v14 = vsel %vm5588_vm1, %v3204_v43, %v3208_v24  ;;  %v3219_v46 = vsel %vm5588_vm1, %v3214_v36, %v3218_v10  ;;  %v3254_v32 = vshll.u32 %v6243_v9, 16  ;;  %v5133_v19 = vld [vmem:[#allocation2 + $0x54] sm:$0xff]  }
  0xee   : > { %4908 = vmatmul.mubr.bf16.vlgmr.msra.gmra.mxu0 %v5125_v26  ;;  %4995 = vmatpush3.bf16.msra.mxu1 %v6190_v49  ;;  %v4367_v33 = vcombine.low %v3209_v14, %v3219_v46  ;;  %v3228_v34 = vrot.slane %v3227_v4, 4  ;;  %v3247_v60 = vrot.slane %v3245_v6, 4  ;;  %v3258_v0 = vshrl.u32 %v6243_v9, 16  ;;  %v6286_v46 = vld [vmem:[#allocation2 + $0x68] sm:$0x1] }
  0xef   : > { %4956 = vmatpush3.bf16.msra.mxu0 %v6190_v49  ;;  %v3237_v5 = vor.u32 %v3236_v16, %v3232_v59  ;;  %4988 = vmatprep.subr.bf16.mxu1 %v5127_v62  ;;  %v5131_v49 = vld [vmem:[%s6565_s5 + $0x220] sm:$0xff]   ;;  %v3264_v41 = vshll.u32 %v6248_v42, 16  ;;  %v3250_v21 = vrot.slane %v3248_v37, 5  ;;  %v3256_v7 = vrot.slane %v3254_v32, 5 }
  0xf0   : > { %4957 = vmatprep.subr.bf16.mxu0 %v5127_v62  ;;  %4911 = vmatprep.mubr.bf16.mxu0 %v5128_v38  ;;  %v3233_v30 = vsel %vm5588_vm1, %v3228_v34, %v3232_v59  ;;  %v3260_v26 = vrot.slane %v3258_v0, 4  ;;  %v3269_v24 = vshrl.u32 %v3139_v23, 16  ;;  %v3272_v17 = vshll.u32 %v3139_v23, 16  ;;  %v3142_v16 = vld [vmem:[#allocation2 + $0x60] sm:$0xf] }
  0xf1   : > { %v3238_v31 = vrot.slane %v3237_v5, 4  ;;  %4943 = vmatprep.mubr.bf16.mxu1 %v4367_v33  ;;  %v3266_v22 = vrot.slane %v3264_v41, 5  ;;  %v3251_v39 = vor.u32 %v3250_v21, %v3247_v60  ;;  %v3278_v44 = vshll.u32 %v6258_v45, 16  ;;  %v3145_v41 = vld [vmem:[#allocation2 + $0x6c] sm:$0xf] }
  0xf2   : > { %4996 = vmatpush3.bf16.msra.mxu1 %v5127_v62  ;;  %v3261_v53 = vor.u32 %v3260_v26, %v3256_v7  ;;  %v3271_v40 = vrot.slane %v3269_v24, 4  ;;  %v3282_v10 = vshrl.u32 %v6258_v45, 16  ;;  %v3274_v13 = vrot.slane %v3272_v17, 5  ;;  %v5138_v24 = vld [vmem:[%s6565_s5 + $0x208] sm:$0xff]  }
  0xf3   : > { %4958 = vmatpush3.bf16.msra.mxu0 %v5127_v62  ;;  %v3243_v8 = vsel %vm5588_vm1, %v3238_v31, %v3242_v18  ;;  %4989 = vmatprep.subr.bf16.mxu1 %v5130_v63  ;;  %v3288_v62 = vshll.u32 %v6260_v11, 16  ;;  %v3252_v27 = vrot.slane %v3251_v39, 4  ;;  %v3280_v51 = vrot.slane %v3278_v44, 5 }
  0xf4   : > { %4959 = vmatprep.subr.bf16.mxu0 %v5130_v63  ;;  %v4368_v47 = vcombine.low %v3233_v30, %v3243_v8  ;;  %v3618_v35 = vrot.slane %v6258_v45, 5  ;;  %v3262_v2 = vrot.slane %v3261_v53, 4  ;;  %v3284_v38 = vrot.slane %v3282_v10, 4  ;;  %v6295_v8 = vld [vmem:[#allocation2 + $0x74] sm:$0x1] }
  0xf5   : > { %v3290_v43 = vrot.slane %v3288_v62, 5  ;;  %v3621_v20 = vrot.slane %v6260_v11, 5  ;;  %v3257_v25 = vsel %vm5588_vm1, %v3252_v27, %v3256_v7  ;;  %v3275_v36 = vor.u32 %v3274_v13, %v3271_v40  ;;  %v6293_v7 = vld [vmem:[#allocation2 + $0x70] sm:$0xf]  ;;  %v3549_v27 = vld [vmem:[#allocation2 + $0x18] sm:$0xe] }
  0xf6   : > { %4912 = vmatmul.mubr.bf16.gmra.mxu0 %v5129_v56  ;;  %4944 = vmatmul.mubr.bf16.gmra.mxu1 %v4368_v47  ;;  %v6276_v59 = vrot.slane %v3618_v35, 4  ;;  %v3267_v14 = vsel %vm5588_vm1, %v3262_v2, %v3266_v22  ;;  %v3285_v4 = vor.u32 %v3284_v38, %v3280_v51  ;;  %v3293_v5 = vshrl.u32 %v3142_v16, 16  ;;  %v5136_v56 = vld [vmem:[#allocation2 + $0x60] sm:$0xff]   ;;  %v3553_v38 = vld [vmem:[#allocation2 + $0x48] sm:$0xe] }
  0xf7   : > { %4960 = vmatpush3.bf16.msra.mxu0 %v5130_v63  ;;  %4997 = vmatpush3.bf16.msra.mxu1 %v5130_v63  ;;  %v3583_v63 = vrot.slane %v6176_v1, 5  ;;  %v3296_v18 = vshll.u32 %v3142_v16, 16  ;;  %v4369_v6 = vcombine.low %v3257_v25, %v3267_v14  ;;  %v3276_v33 = vrot.slane %v3275_v36, 4  ;;  %v5137_v25 = vld [vmem:[#allocation2 + $0x6c] sm:$0xff]   ;;  %v3550_v14 = vld [vmem:[#allocation2 + $0x24] sm:$0xe] }
  0xf8   : > { %4961 = vmatprep.subr.bf16.mxu0 %v5131_v49  ;;  %4990 = vmatprep.subr.bf16.mxu1 %v5131_v49  ;;  %v3302_v34 = vshll.u32 %v6278_v28, 16  ;;  %v3306_v37 = vshrl.u32 %v6278_v28, 16  ;;  %v3286_v32 = vrot.slane %v3285_v4, 4  ;;  %v3295_v31 = vrot.slane %v3293_v5, 4 }
  0xf9   : > { %4915 = vmatprep.mubr.bf16.mxu0 %v5132_v12  ;;  %v3298_v60 = vrot.slane %v3296_v18, 5  ;;  %v3312_v0 = vshll.u32 %v6286_v46, 16  ;;  %4947 = vmatprep.mubr.bf16.mxu1 %v4369_v6  ;;  %v3281_v23 = vsel %vm5588_vm1, %v3276_v33, %v3280_v51  ;;  %v3317_v22 = vshrl.u32 %v3145_v41, 16 }
  0xfa   : > { %v3304_v30 = vrot.slane %v3302_v34, 5  ;;  %v3308_v21 = vrot.slane %v3306_v37, 4  ;;  %v3320_v17 = vshll.u32 %v3145_v41, 16  ;;  %v3326_v44 = vshll.u32 %v6293_v7, 16  ;;  %v5139_v34 = vld [vmem:[%s6565_s5 + $0x200] sm:$0xff]  }
  0xfb   : > { %4962 = vmatpush3.bf16.msra.mxu0 %v5131_v49  ;;  %4998 = vmatpush3.bf16.msra.mxu1 %v5131_v49  ;;  %v3291_v49 = vsel %vm5588_vm1, %v3286_v32, %v3290_v43  ;;  %v3299_v12 = vor.u32 %v3298_v60, %v3295_v31  ;;  %v3314_v26 = vrot.slane %v3312_v0, 5  ;;  %v3319_v40 = vrot.slane %v3317_v22, 4  ;;  %v3554_v31 = vld [vmem:[#allocation2 + $0x54] sm:$0xe] }
  0xfc   : > { %4963 = vmatprep.subr.bf16.mxu0 %v5134_v61  ;;  %4991 = vmatprep.subr.bf16.mxu1 %v5134_v61  ;;  %v4370_v47 = vcombine.low %v3281_v23, %v3291_v49  ;;  %v3309_v39 = vor.u32 %v3308_v21, %v3304_v30  ;;  %v3330_v10 = vshrl.u32 %v6293_v7, 16  ;;  %v3336_v62 = vshll.u32 %v6295_v8, 16 }
  0xfd   : > { %v3300_v53 = vrot.slane %v3299_v12, 4  ;;  %v3322_v51 = vrot.slane %v3320_v17, 5  ;;  %v3328_v2 = vrot.slane %v3326_v44, 5  ;;  %v3585_v16 = vrot.slane %v3583_v63, 4 }
  0xfe   : > { %4916 = vmatmul.mubr.bf16.gmra.mxu0 %v5133_v19  ;;  %4948 = vmatmul.mubr.bf16.gmra.mxu1 %v4370_v47  ;;  %v3310_v13 = vrot.slane %v3309_v39, 4  ;;  %v4381_v19 = vrot.slane %v3549_v27, 9  ;;  %v3338_v36 = vrot.slane %v3336_v62, 5  ;;  %v3586_v6 = vrot.slane %v6178_v15, 5  ;;  %v3555_v39 = vld [vmem:[#allocation2 + $0x60] sm:$0xe] }
  0xff   : > { %4964 = vmatpush3.bf16.msra.mxu0 %v5134_v61  ;;  %4919 = vmatprep.mubr.bf16.mxu0 %v5136_v56  ;;  %v3305_v43 = vsel %vm5588_vm1, %v3300_v53, %v3304_v30  ;;  %v3323_v5 = vor.u32 %v3322_v51, %v3319_v40  ;;  %v4385_v37 = vrot.slane %v3553_v38, 9  ;;  %v3611_v32 = vrot.slane %v6243_v9, 5  ;;  %v3552_v53 = vld [vmem:[#allocation2 + $0x3c] sm:$0xe] }
 0x100   : > { %4999 = vmatpush3.bf16.msra.mxu1 %v5134_v61  ;;  %4965 = vmatprep.subr.bf16.mxu0 %v5135_v29  ;;  %v3332_v61 = vrot.slane %v3330_v10, 4  ;;  %v3315_v4 = vsel %vm5588_vm1, %v3310_v13, %v3314_v26  ;;  %v3584_v18 = vsel %vm5861_vm8, %v4381_v19, %v3583_v63  ;;  %v3587_v1 = vsel %vm5861_vm8, %v3585_v16, %v3586_v6 }
 0x101   : > { %4992 = vmatprep.subr.bf16.mxu1 %v5135_v29  ;;  %v4371_v33 = vcombine.low %v3305_v43, %v3315_v4  ;;  %v3324_v60 = vrot.slane %v3323_v5, 4  ;;  %v3614_v63 = vrot.slane %v6248_v42, 5  ;;  %v4382_v15 = vrot.slane %v3550_v14, 9 }
 0x102   : > { %v3333_v56 = vor.u32 %v3332_v61, %v3328_v2  ;;  %v4389_v41 = vcombine.low %v3584_v18, %v3587_v1  ;;  %v3612_v23 = vsel %vm5861_vm8, %v4385_v37, %v3611_v32  ;;  %v3613_v30 = vrot.slane %v3611_v32, 4 }
 0x103   : > { %4966 = vmatpush3.bf16.msra.mxu0 %v5135_v29  ;;  %4951 = vmatprep.mubr.bf16.mxu1 %v4371_v33  ;;  %v3329_v9 = vsel %vm5588_vm1, %v3324_v60, %v3328_v2  ;;  %v3590_v21 = vrot.slane %v6199_v55, 5  ;;  %v3593_v49 = vrot.slane %v6203_v54, 5  ;;  %v4386_v12 = vrot.slane %v3554_v31, 9 }
 0x104   : > { %5000 = vmatpush3.bf16.msra.mxu1 %v5135_v29  ;;  %4967 = vmatprep.subr.bf16.mxu0 %v5138_v24  ;;  %v3551_v29 = vld [vmem:[#allocation2 + $0x30] sm:$0xe]  ;;  %v3334_v0 = vrot.slane %v3333_v56, 4  ;;  %v3615_v26 = vsel %vm5861_vm8, %v3613_v30, %v3614_v63  ;;  %v3597_v47 = vrot.slane %v6215_v52, 5  ;;  %v3622_v58 = vsel %vm5861_vm8, %v6276_v59, %v3621_v20 }
 0x105   : > { %4993 = vmatprep.subr.bf16.mxu1 %v5138_v24  ;;  %v4383_v22 = vrot.slane %v3551_v29, 9  ;;  %v4393_v44 = vcombine.low %v3612_v23, %v3615_v26  ;;  %v3591_v55 = vsel %vm5861_vm8, %v4382_v15, %v3590_v21  ;;  %v3592_v54 = vrot.slane %v3590_v21, 4 }
 0x106   : > { %4920 = vmatmul.mubr.bf16.gmra.mxu0 %v5137_v25  ;;  %v3339_v42 = vsel %vm5588_vm1, %v3334_v0, %v3338_v36  ;;  %v3599_v52 = vrot.slane %v3597_v47, 4  ;;  %v3600_v40 = vrot.slane %v6217_v50, 5  ;;  %v3619_v11 = vsel %vm5861_vm8, %v4386_v12, %v3618_v35  ;;  %v3556_v35 = vld [vmem:[#allocation2 + $0x6c] sm:$0xe] }
 0x107   : > { %4968 = vmatpush3.bf16.msra.mxu0 %v5138_v24  ;;  %v4372_v17 = vcombine.low %v3329_v9, %v3339_v42  ;;  %4971 = vmatprep.mubr.bf16.mxu0 %v4389_v41  ;;  %v3594_v10 = vsel %vm5861_vm8, %v3592_v54, %v3593_v49  ;;  %v4387_v62 = vrot.slane %v3555_v39, 9  ;;  %v3625_v27 = vrot.slane %v6278_v28, 5 }
 0x108   : > { %5001 = vmatpush3.bf16.msra.mxu1 %v5138_v24  ;;  %4969 = vmatprep.subr.bf16.mxu0 %v5139_v34  ;;  %v3598_v24 = vsel %vm5861_vm8, %v4383_v22, %v3597_v47  ;;  %v4390_v20 = vcombine.low %v3591_v55, %v3594_v10  ;;  %v3601_v59 = vsel %vm5861_vm8, %v3599_v52, %v3600_v40  ;;  %v3628_v50 = vrot.slane %v6286_v46, 5 }
 0x109   : > { %4994 = vmatprep.subr.bf16.mxu1 %v5139_v34  ;;  %4952 = vmatmul.mubr.bf16.gmra.mxu1 %v4372_v17  ;;  %v4384_v13 = vrot.slane %v3552_v53, 9  ;;  %v4391_v51 = vcombine.low %v3598_v24, %v3601_v59  ;;  %v3626_v2 = vsel %vm5861_vm8, %v4387_v62, %v3625_v27  ;;  %v3627_v45 = vrot.slane %v3625_v27, 4 }
 0x10a   : > { %4979 = vmatprep.mubr.bf16.mxu1 %v4393_v44  ;;  %v3604_v19 = vrot.slane %v6225_v57, 5  ;;  %v3607_v28 = vrot.slane %v6227_v3, 5  ;;  %v3632_v38 = vrot.slane %v6293_v7, 5  ;;  %v4394_v43 = vcombine.low %v3619_v11, %v3622_v58 }
 0x10b   : > { %4970 = vmatpush3.bf16.msra.mxu0 %v5139_v34  ;;  %v3629_v25 = vsel %vm5861_vm8, %v3627_v45, %v3628_v50  ;;  %v4388_v16 = vrot.slane %v3556_v35, 9  ;;  %v3635_v57 = vrot.slane %v6295_v8, 5 }
 0x10c   : > { %5002 = vmatpush3.bf16.msra.mxu1 %v5139_v34  ;;  %v3605_v46 = vsel %vm5861_vm8, %v4384_v13, %v3604_v19  ;;  %v3606_v61 = vrot.slane %v3604_v19, 4  ;;  %v4395_v36 = vcombine.low %v3626_v2, %v3629_v25  ;;  %v3634_v14 = vrot.slane %v3632_v38, 4 }
 0x10d   : > { %v3633_v7 = vsel %vm5861_vm8, %v4388_v16, %v3632_v38 }
 0x10e   : > { %4972 = vmatmul.mubr.bf16.vlgmr.msra.gmra.mxu0 %v4390_v20  ;;  %v3608_v4 = vsel %vm5861_vm8, %v3606_v61, %v3607_v28  ;;  %v3636_v5 = vsel %vm5861_vm8, %v3634_v14, %v3635_v57 }
 0x10f   : > { %4975 = vmatprep.mubr.bf16.mxu0 %v4391_v51  ;;  %v4392_v3 = vcombine.low %v3605_v46, %v3608_v4  ;;  %v4396_v18 = vcombine.low %v3633_v7, %v3636_v5 }
 0x111   : > { %4980 = vmatmul.mubr.bf16.vlgmr.msra.gmra.mxu1 %v4394_v43 }
 0x112   : > { %4983 = vmatprep.mubr.bf16.mxu1 %v4395_v36 }
 0x116   : > { %4976 = vmatmul.mubr.bf16.gmra.mxu0 %v4392_v3 }
 0x119   : > { %4984 = vmatmul.mubr.bf16.gmra.mxu1 %v4396_v18 }
 0x136   : > { %v4749_v6 = vpop.f32.mrf.mxu1 }
 0x138   : > { %v1564_v33 = vpop.f32.mrf.mxu1 }
 0x139   : > { %v4717_v34 = vpop.f32.mrf.mxu0 }
 0x13a   : > { %v4750_v56 = vpop.f32.mrf.mxu1  ;;  %v1573_v37 = vadd.f32 %v4749_v6, %v4717_v34 }
 0x13b   : > { %v1371_v32 = vpop.f32.mrf.mxu0 }
 0x13c   : > { %v1567_v8 = vpop.f32.mrf.mxu1  ;;  %v1565_v31 = vadd.f32 %v1564_v33, %v1371_v32 }
 0x13d   : > { %v4718_v60 = vpop.f32.mrf.mxu0 }
 0x13e   : > { %v4753_v1 = vpop.f32.mrf.mxu1  ;;  %v1576_v63 = vadd.f32 %v4750_v56, %v4718_v60 }
 0x13f   : > { %v1374_v15 = vpop.f32.mrf.mxu0 }
 0x140   : > { %v1568_v29 = vadd.f32 %v1567_v8, %v1374_v15  ;;  %v1580_v0 = vpop.f32.mrf.mxu1 }
 0x142   : > { %v4754_v48 = vpop.f32.mrf.mxu1 }
 0x144   : > { %v1583_v49 = vpop.f32.mrf.mxu1 }
 0x145   : > { %v4721_v41 = vpop.f32.mrf.mxu0 }
 0x146   : > { %v1589_v23 = vadd.f32 %v4753_v1, %v4721_v41 }
 0x147   : > { %v1387_v30 = vpop.f32.mrf.mxu0 }
 0x148   : > { %v1581_v9 = vadd.f32 %v1580_v0, %v1387_v30 }
 0x149   : > { %v4722_v21 = vpop.f32.mrf.mxu0 }
 0x14a   : > { %v1592_v12 = vadd.f32 %v4754_v48, %v4722_v21 }
 0x14b   : > { %v1390_v42 = vpop.f32.mrf.mxu0 }
 0x14c   : > { %v1584_v26 = vadd.f32 %v1583_v49, %v1390_v42 }
 0x150   : > { %v4757_v22 = vpop.f32.mrf.mxu1 }
 0x152   : > { %v1596_v47 = vpop.f32.mrf.mxu1 }
 0x154   : > { %v4758_v39 = vpop.f32.mrf.mxu1 }
 0x156   : > { %v1599_v55 = vpop.f32.mrf.mxu1 }
 0x159   : > { %v4725_v17 = vpop.f32.mrf.mxu0 }
 0x15a   : > { %v1605_v44 = vadd.f32 %v4757_v22, %v4725_v17 }
 0x15b   : > { %v1403_v54 = vpop.f32.mrf.mxu0 }
 0x15c   : > { %v1597_v53 = vadd.f32 %v1596_v47, %v1403_v54 }
 0x15d   : > { %v4726_v58 = vpop.f32.mrf.mxu0  ;;  %v4761_v52 = vpop.f32.mrf.mxu1 }
 0x15e   : > { %v1608_v24 = vadd.f32 %v4758_v39, %v4726_v58 }
 0x15f   : > { %v1406_v40 = vpop.f32.mrf.mxu0  ;;  %v1612_v11 = vpop.f32.mrf.mxu1 }
 0x160   : > { %v1600_v10 = vadd.f32 %v1599_v55, %v1406_v40 }
 0x161   : > { %v4762_v62 = vpop.f32.mrf.mxu1 }
 0x163   : > { %v1615_v27 = vpop.f32.mrf.mxu1 }
 0x165   : > { %v4813_v20 = vpop.f32.mrf.mxu1 }
 0x166   : > { %v4729_v59 = vpop.f32.mrf.mxu0 }
 0x167   : > { %v1621_v50 = vadd.f32 %v4761_v52, %v4729_v59  ;;  %v2081_v13 = vpop.f32.mrf.mxu1 }
 0x168   : > { %v1419_v51 = vpop.f32.mrf.mxu0 }
 0x169   : > { %v1613_v2 = vadd.f32 %v1612_v11, %v1419_v51  ;;  %v4814_v45 = vpop.f32.mrf.mxu1 }
 0x16a   : > { %v4730_v19 = vpop.f32.mrf.mxu0 }
 0x16b   : > { %v1624_v35 = vadd.f32 %v4762_v62, %v4730_v19  ;;  %v2084_v28 = vpop.f32.mrf.mxu1 }
 0x16c   : > { %v1422_v38 = vpop.f32.mrf.mxu0 }
 0x16d   : > { %v6370_v43 = vadd.f32 %v1615_v27, %v1422_v38  ;;  %v4817_v25 = vpop.f32.mrf.mxu1 }
 0x16e   : > { %v4781_v46 = vpop.f32.mrf.mxu0 }
 0x16f   : > { %v1905_v61 = vadd.f32 %v4781_v46, %v1573_v37  ;;  %v2097_v36 = vpop.f32.mrf.mxu1 }
 0x170   : > { %v1840_v16 = vpop.f32.mrf.mxu0 }
 0x171   : > { %v6372_v14 = vadd.f32 %v4813_v20, %v1905_v61  ;;  %v1903_v57 = vadd.f32 %v1840_v16, %v1565_v31  ;;  %v4818_v4 = vpop.f32.mrf.mxu1 }
 0x172   : > { %v4782_v3 = vpop.f32.mrf.mxu0 }
 0x173   : > { %v6374_v7 = vadd.f32 %v2081_v13, %v1903_v57  ;;  %v1906_v5 = vadd.f32 %v4782_v3, %v1576_v63  ;;  %v2100_v18 = vpop.f32.mrf.mxu1 }
 0x174   : > { %v1843_v6 = vpop.f32.mrf.mxu0 }
 0x175   : > { %v6376_v33 = vadd.f32 %v4814_v45, %v1906_v5  ;;  %v1904_v56 = vadd.f32 %v1843_v6, %v1568_v29  ;;  %v4821_v34 = vpop.f32.mrf.mxu1 }
 0x176   : > { %v4785_v8 = vpop.f32.mrf.mxu0 }
 0x177   : > { %v6378_v32 = vadd.f32 %v2084_v28, %v1904_v56  ;;  %v1909_v37 = vadd.f32 %v4785_v8, %v1589_v23  ;;  %v2113_v60 = vpop.f32.mrf.mxu1 }
 0x178   : > { %v1856_v1 = vpop.f32.mrf.mxu0 }
 0x179   : > { %v6380_v15 = vadd.f32 %v4817_v25, %v1909_v37  ;;  %v1907_v31 = vadd.f32 %v1856_v1, %v1581_v9  ;;  %v4822_v0 = vpop.f32.mrf.mxu1 }
 0x17a   : > { %v4786_v41 = vpop.f32.mrf.mxu0 }
 0x17b   : > { %v6382_v48 = vadd.f32 %v2097_v36, %v1907_v31  ;;  %v1910_v63 = vadd.f32 %v4786_v41, %v1592_v12  ;;  %v2116_v30 = vpop.f32.mrf.mxu1 }
 0x17c   : > { %v1859_v21 = vpop.f32.mrf.mxu0 }
 0x17d   : > { %v6384_v49 = vadd.f32 %v4818_v4, %v1910_v63  ;;  %v1908_v29 = vadd.f32 %v1859_v21, %v1584_v26  ;;  %v4825_v42 = vpop.f32.mrf.mxu1 }
 0x17e   : > { %v4789_v22 = vpop.f32.mrf.mxu0 }
 0x17f   : > { %v6386_v47 = vadd.f32 %v2100_v18, %v1908_v29  ;;  %v1913_v23 = vadd.f32 %v4789_v22, %v1605_v44  ;;  %v2129_v39 = vpop.f32.mrf.mxu1 }
 0x180   : > { %v1872_v17 = vpop.f32.mrf.mxu0 }
 0x181   : > { %v6388_v55 = vadd.f32 %v4821_v34, %v1913_v23  ;;  %v1911_v9 = vadd.f32 %v1872_v17, %v1597_v53  ;;  %v4826_v54 = vpop.f32.mrf.mxu1 }
 0x182   : > { %v4790_v58 = vpop.f32.mrf.mxu0 }
 0x183   : > { %v6390_v52 = vadd.f32 %v2113_v60, %v1911_v9  ;;  %v1914_v12 = vadd.f32 %v4790_v58, %v1608_v24  ;;  %v2132_v40 = vpop.f32.mrf.mxu1 }
 0x184   : > { %v1875_v11 = vpop.f32.mrf.mxu0 }
 0x185   : > { %v6392_v62 = vadd.f32 %v4822_v0, %v1914_v12  ;;  %v1912_v26 = vadd.f32 %v1875_v11, %v1600_v10  ;;  %v6394_v27 = vpop.f32.mrf.mxu1 }
 0x186   : > { %v4793_v20 = vpop.f32.mrf.mxu0 }
 0x187   : > { %v6396_v59 = vadd.f32 %v2116_v30, %v1912_v26  ;;  %v1917_v44 = vadd.f32 %v4793_v20, %v1621_v50  ;;  %v6398_v13 = vpop.f32.mrf.mxu1 }
 0x188   : > { %v1888_v51 = vpop.f32.mrf.mxu0 }
 0x189   : > { %v6400_v53 = vadd.f32 %v4825_v42, %v1917_v44  ;;  %v1915_v45 = vadd.f32 %v1888_v51, %v1613_v2  ;;  %v6402_v19 = vpop.f32.mrf.mxu1 }
 0x18a   : > { %v4794_v24 = vpop.f32.mrf.mxu0 }
 0x18b   : > { %v6404_v28 = vadd.f32 %v2129_v39, %v1915_v45  ;;  %v1918_v38 = vadd.f32 %v4794_v24, %v1624_v35  ;;  %v6406_v25 = vpop.f32.mrf.mxu1 }
 0x18c   : > { %v1891_v10 = vpop.f32.mrf.mxu0 }
 0x18d   : > { %v6408_v46 = vadd.f32 %v4826_v54, %v1918_v38  ;;  %v1916_v61 = vadd.f32 %v1891_v10, %v6370_v43  ;;  %v6411_v50 = vpop.f32.mrf.mxu1 }
 0x18e   : > { %v4845_v36 = vpop.f32.mrf.mxu0 }
 0x18f   : > { %v6413_v16 = vadd.f32 %v2132_v40, %v1916_v61  ;;  %v6415_v57 = vpop.f32.mrf.mxu1 }
 0x190   : > { %v2506_v2 = vpop.f32.mrf.mxu0 }
 0x191   : > { %6581 = vst [vmem:[#allocation3_spill] sm:$0xff] %v6413_v16  ;;  %v6417_v4 = vpop.f32.mrf.mxu1 }
 0x192   : > { %v4846_v3 = vpop.f32.mrf.mxu0 }
 0x193   : > { %v6419_v35 = vpop.f32.mrf.mxu1 }
 0x194   : > { %v2509_v5 = vpop.f32.mrf.mxu0 }
 0x196   : > { %v4849_v18 = vpop.f32.mrf.mxu0 }
 0x198   : > { %v2522_v6 = vpop.f32.mrf.mxu0  ;;  %v6421_v56 = vpop.f32.mrf.mxu1 }
 0x19a   : > { %v4850_v34 = vpop.f32.mrf.mxu0  ;;  %v6423_v43 = vpop.f32.mrf.mxu1 }
 0x19c   : > { %v2525_v8 = vpop.f32.mrf.mxu0  ;;  %v6425_v60 = vpop.f32.mrf.mxu1 }
 0x19e   : > { %v4853_v37 = vpop.f32.mrf.mxu0  ;;  %v6427_v0 = vpop.f32.mrf.mxu1 }
 0x19f   : > { %6582 = vst [vmem:[#allocation4_spill] sm:$0xff] %v6427_v0  ;;  %v2573_v0 = vadd.f32 %v2522_v6, %v6382_v48 }
 0x1a0   : > { %v2538_v1 = vpop.f32.mrf.mxu0 }
 0x1a2   : > { %v4854_v31 = vpop.f32.mrf.mxu0 }
 0x1a4   : > { %v2541_v41 = vpop.f32.mrf.mxu0  ;;  %v6429_v63 = vpop.f32.mrf.mxu1 }
 0x1a5   : > { %6583 = vst [vmem:[#allocation5_spill] sm:$0xff] %v6429_v63 }
 0x1a6   : > { %v4857_v30 = vpop.f32.mrf.mxu0  ;;  %v6431_v21 = vpop.f32.mrf.mxu1 }
 0x1a7   : > { %6584 = vst [vmem:[#allocation6_spill] sm:$0xff] %v6431_v21 }
 0x1a8   : > { %v2554_v29 = vpop.f32.mrf.mxu0  ;;  %v6433_v42 = vpop.f32.mrf.mxu1 }
 0x1a9   : > { %6585 = vst [vmem:[#allocation7_spill] sm:$0xff] %v6433_v42 }
 0x1aa   : > { %v4858_v22 = vpop.f32.mrf.mxu0  ;;  %v6435_v23 = vpop.f32.mrf.mxu1 }
 0x1ab   : > { %6586 = vst [vmem:[#allocation8_spill] sm:$0xff] %v6435_v23 }
 0x1ac   : > { %v2557_v39 = vpop.f32.mrf.mxu0 }
 0x1ad   : > { %v6437_v9 = vpop.f32.mrf.mxu1 }
 0x1ae   : > { %v4909_v17 = vpop.f32.mrf.mxu0  ;;  %6587 = vst [vmem:[#allocation9_spill] sm:$0xff] %v6437_v9 }
 0x1af   : > { %v6439_v58 = vpop.f32.mrf.mxu1 }
 0x1b0   : > { %v3045_v54 = vpop.f32.mrf.mxu0  ;;  %6588 = vst [vmem:[#allocation10_spill] sm:$0xff] %v6439_v58 }
 0x1b1   : > { %v6441_v40 = vpop.f32.mrf.mxu1 }
 0x1b2   : > { %v4910_v12 = vpop.f32.mrf.mxu0  ;;  %6589 = vst [vmem:[#allocation11_spill] sm:$0xff] %v6441_v40 }
 0x1b3   : > { %v6443_v26 = vpop.f32.mrf.mxu1 }
 0x1b4   : > { %v3048_v11 = vpop.f32.mrf.mxu0  ;;  %6590 = vst [vmem:[#allocation12_spill] sm:$0xff] %v6443_v26 }
 0x1b6   : > { %v4913_v20 = vpop.f32.mrf.mxu0  ;;  %v6445_v44 = vpop.f32.mrf.mxu1 }
 0x1b7   : > { %6591 = vst [vmem:[#allocation13_spill] sm:$0xff] %v6445_v44  ;;  %v2571_v44 = vadd.f32 %v4845_v36, %v6372_v14 }
 0x1b8   : > { %v3061_v51 = vpop.f32.mrf.mxu0  ;;  %v6447_v45 = vpop.f32.mrf.mxu1 }
 0x1b9   : > { %6592 = vst [vmem:[#allocation14_spill] sm:$0xff] %v6447_v45  ;;  %v2569_v45 = vadd.f32 %v2506_v2, %v6374_v7  ;;  %v2868_v14 = vadd.f32 %v6394_v27, %v2571_v44  ;;  %v2574_v7 = vadd.f32 %v2525_v8, %v6386_v47  ;;  %v2577_v2 = vadd.f32 %v2538_v1, %v6390_v52  ;;  %v6598_v8 = vld [vmem:[#allocation3_spill] sm:$0xff] }
 0x1ba   : > { %v4914_v24 = vpop.f32.mrf.mxu0  ;;  %v6449_v38 = vpop.f32.mrf.mxu1  ;;  %v2583_v27 = vadd.f32 %v4857_v30, %v6400_v53  ;;  %v2581_v47 = vadd.f32 %v2554_v29, %v6404_v28  ;;  %v6602_v29 = vld [vmem:[#allocation9_spill] sm:$0xff] }
 0x1bb   : > { %6593 = vst [vmem:[#allocation15_spill] sm:$0xff] %v6449_v38  ;;  %v2572_v38 = vadd.f32 %v4846_v3, %v6376_v33  ;;  %v2579_v33 = vadd.f32 %v4853_v37, %v6388_v55  ;;  %v2866_v36 = vadd.f32 %v6398_v13, %v2569_v45  ;;  %v2870_v13 = vadd.f32 %v6415_v57, %v2573_v0 }
 0x1bc   : > { %v6451_v10 = vpop.f32.mrf.mxu0  ;;  %v6453_v61 = vpop.f32.mrf.mxu1  ;;  %v2874_v53 = vadd.f32 %v6423_v43, %v2577_v2  ;;  %v2582_v57 = vadd.f32 %v2557_v39, %v6598_v8 }
 0x1bd   : > { %6594 = vst [vmem:[#allocation16_spill] sm:$0xff] %v6451_v10  ;;  %6595 = vst [vmem:[#allocation17_spill] sm:$0xff] %v6453_v61  ;;  %v2570_v61 = vadd.f32 %v2509_v5, %v6378_v32  ;;  %v2869_v32 = vadd.f32 %v6402_v19, %v2572_v38  ;;  %v3110_v19 = vadd.f32 %v4909_v17, %v2868_v14  ;;  %v6605_v38 = vld [vmem:[#allocation7_spill] sm:$0xff]  ;;  %v6606_v14 = vld [vmem:[#allocation8_spill] sm:$0xff] }
 0x1be   : > { %v4917_v23 = vpop.f32.mrf.mxu0  ;;  %v6455_v58 = vpop.f32.mrf.mxu1  ;;  %v3108_v6 = vadd.f32 %v3045_v54, %v2866_v36  ;;  %v3112_v43 = vadd.f32 %v3061_v51, %v2870_v13 }
 0x1bf   : > { %6596 = vst [vmem:[#allocation18_spill] sm:$0xff] %v6455_v58  ;;  %v2575_v58 = vadd.f32 %v4849_v18, %v6380_v15  ;;  %v2580_v15 = vadd.f32 %v4854_v31, %v6392_v62  ;;  %v2867_v48 = vadd.f32 %v6406_v25, %v2570_v61  ;;  %v2871_v18 = vadd.f32 %v6419_v35, %v2574_v7  ;;  %v6600_v31 = vld [vmem:[#allocation5_spill] sm:$0xff]  ;;  %v6601_v35 = vld [vmem:[#allocation6_spill] sm:$0xff] }
 0x1c0   : > { %v3077_v42 = vpop.f32.mrf.mxu0  ;;  %v6457_v9 = vpop.f32.mrf.mxu1  ;;  %v2876_v25 = vadd.f32 %v6421_v56, %v2579_v33  ;;  %v2880_v0 = vadd.f32 %v6600_v31, %v2583_v27  ;;  %v3535_v17 = vadd.f32 %v6602_v29, %v3110_v19  ;;  %v6609_v27 = vld [vmem:[#allocation14_spill] sm:$0xff] }
 0x1c1   : > { %6597 = vst [vmem:[#allocation19_spill] sm:$0xff] %v6457_v9  ;;  %v2576_v9 = vadd.f32 %v4850_v34, %v6384_v49  ;;  %v2578_v49 = vadd.f32 %v2541_v41, %v6396_v59  ;;  %v2872_v55 = vadd.f32 %v6411_v50, %v2575_v58  ;;  %v3111_v59 = vadd.f32 %v4910_v12, %v2869_v32  ;;  %v6603_v58 = vld [vmem:[#allocation10_spill] sm:$0xff]  ;;  %v6607_v32 = vld [vmem:[#allocation12_spill] sm:$0xff] }
 0x1c2   : > { %v4918_v40 = vpop.f32.mrf.mxu0  ;;  %v6460_v21 = vpop.f32.mrf.mxu1  ;;  %v2877_v28 = vadd.f32 %v6425_v60, %v2580_v15  ;;  %v2584_v50 = vadd.f32 %v4858_v22, %v6408_v46  ;;  %v2878_v41 = vadd.f32 %v6601_v35, %v2581_v47  ;;  %v3109_v56 = vadd.f32 %v3048_v11, %v2867_v48  ;;  %v6604_v22 = vld [vmem:[#allocation11_spill] sm:$0xff]  ;;  %v6608_v48 = vld [vmem:[#allocation13_spill] sm:$0xff] }
 0x1c3   : > { %v2873_v52 = vadd.f32 %v6417_v4, %v2576_v9  ;;  %v6599_v4 = vld [vmem:[#allocation4_spill] sm:$0xff]  ;;  %v3114_v9 = vadd.f32 %v4913_v20, %v2872_v55  ;;  %v3533_v46 = vadd.f32 %v6603_v58, %v3108_v6  ;;  %v3536_v39 = vadd.f32 %v6604_v22, %v3111_v59 }
 0x1c4   : > { %v3080_v26 = vpop.f32.mrf.mxu0  ;;  %v6467_v10 = vpop.f32.mrf.mxu1  ;;  %v2875_v1 = vadd.f32 %v6599_v4, %v2578_v49  ;;  %v3118_v12 = vadd.f32 %v4917_v23, %v2876_v25  ;;  %v3116_v44 = vadd.f32 %v3077_v42, %v2874_v53  ;;  %v2881_v61 = vadd.f32 %v6605_v38, %v2584_v50  ;;  %v6610_v23 = vld [vmem:[#allocation15_spill] sm:$0xff]  ;;  %v6611_v55 = vld [vmem:[#allocation16_spill] sm:$0xff] }
 0x1c5   : > { %v3115_v54 = vadd.f32 %v4914_v24, %v2873_v52  ;;  %v2879_v11 = vadd.f32 %v6606_v14, %v2582_v57  ;;  %v3119_v7 = vadd.f32 %v4918_v40, %v2877_v28  ;;  %v3534_v20 = vadd.f32 %v6607_v32, %v3109_v56 }
 0x1c6   : > { %v6464_v63 = vpop.f32.mrf.mxu0  ;;  %v3117_v33 = vadd.f32 %v3080_v26, %v2875_v1  ;;  %v3539_v49 = vadd.f32 %v6608_v48, %v3114_v9  ;;  %v3537_v42 = vadd.f32 %v6609_v27, %v3112_v43  ;;  %v3113_v13 = vadd.f32 %v6611_v55, %v2871_v18  ;;  %v6612_v19 = vld [vmem:[#allocation18_spill] sm:$0xff] }
 0x1c7   : > { %v3540_v47 = vadd.f32 %v6610_v23, %v3115_v54  ;;  %v3543_v40 = vadd.f32 %v6612_v19, %v3118_v12  ;;  %v3544_v28 = vadd.f32 %v6460_v21, %v3119_v7  ;;  %v3122_v8 = vadd.f32 %v6464_v63, %v2880_v0 }
 0x1c8   : > { %v6472_v16 = vpop.f32.mrf.mxu0  ;;  %v6613_v26 = vld [vmem:[#allocation19_spill] sm:$0xff]  ;;  %v3542_v50 = vadd.f32 %v6467_v10, %v3117_v33 }
 0x1c9   : > { %v6487_v5 = vpop.f32.mrf.mxu1  ;;  %v3541_v25 = vadd.f32 %v6613_v26, %v3116_v44  ;;  %v3120_v57 = vadd.f32 %v6472_v16, %v2878_v41  ;;  %v6614_v44 = vld [vmem:[#allocation17_spill] sm:$0xff] }
 0x1ca   : > { %v6481_v3 = vpop.f32.mrf.mxu0  ;;  %v3538_v38 = vadd.f32 %v6614_v44, %v3113_v13 }
 0x1cb   : > { %v6494_v34 = vpop.f32.mrf.mxu1  ;;  %v3123_v56 = vadd.f32 %v6481_v3, %v2881_v61 }
 0x1cc   : > { %v3096_v62 = vpop.f32.mrf.mxu0 }
 0x1cd   : > { %v6503_v30 = vpop.f32.mrf.mxu1  ;;  %v3121_v29 = vadd.f32 %v3096_v62, %v2879_v11 }
 0x1ce   : > { %v4973_v37 = vpop.f32.mrf.mxu0 }
 0x1cf   : > { %v6508_v45 = vpop.f32.mrf.mxu1  ;;  %v3832_v51 = vadd.f32 %v4973_v37, %v3535_v17 }
 0x1d0   : > { %v3767_v60 = vpop.f32.mrf.mxu0 }
 0x1d1   : > { %v4981_v24 = vpop.f32.mrf.mxu1  ;;  %v3830_v2 = vadd.f32 %v3767_v60, %v3533_v46  ;;  %v3949_v10 = vmul.f32 %v3832_v51, %v3832_v51 }
 0x1d2   : > { %v4974_v36 = vpop.f32.mrf.mxu0  ;;  %v3840_v17 = vadd.f32 %v4981_v24, %v3543_v40 }
 0x1d3   : > { %v3833_v15 = vadd.f32 %v4974_v36, %v3536_v39  ;;  %v3799_v6 = vpop.f32.mrf.mxu1  ;;  %v3947_v4 = vmul.f32 %v3830_v2, %v3830_v2 }
 0x1d4   : > { %v3770_v52 = vpop.f32.mrf.mxu0  ;;  %v3838_v43 = vadd.f32 %v3799_v6, %v3541_v25 }
 0x1d5   : > { %v4509_v59 = vpack.c.bf16 %v3833_v15, %v3832_v51  ;;  %v3831_v53 = vadd.f32 %v3770_v52, %v3534_v20  ;;  %v4982_v18 = vpop.f32.mrf.mxu1  ;;  %v3950_v54 = vmul.f32 %v3833_v15, %v3833_v15  ;;  %v3547_v20 = vadd.f32 %v6487_v5, %v3122_v8 }
 0x1d6   : > { %v4977_v37 = vpop.f32.mrf.mxu0  ;;  %v6525_v9 = vadd.f32 %v4982_v18, %v3544_v28 }
 0x1d7   : > { %4548 = vst [vmem:[%s5308_s22 + $0x8] sm:$0xff] %v4509_v59   ;;  %v4504_v1 = vpack.c.bf16 %v3831_v53, %v3830_v2  ;;  %v3926_v31 = vadd.f32 %v3831_v53, %v3830_v2  ;;  %v3948_v35 = vmul.f32 %v3831_v53, %v3831_v53  ;;  %v3802_v16 = vpop.f32.mrf.mxu1  ;;  %v3836_v3 = vadd.f32 %v4977_v37, %v3539_v49 }
 0x1d8   : > { %v3783_v21 = vpop.f32.mrf.mxu0  ;;  %v4529_v60 = vpack.c.bf16 %v6525_v9, %v3840_v17  ;;  %v3839_v58 = vadd.f32 %v3802_v16, %v3542_v50  ;;  %v3545_v2 = vadd.f32 %v6494_v34, %v3120_v57  ;;  %v3955_v53 = vmul.f32 %v3838_v43, %v3838_v43 }
 0x1d9   : > { %4505 = vst [vmem:[%s5308_s22] sm:$0xff] %v4504_v1   ;;  %v3927_v63 = vadd.f32 %v3926_v31, %v3832_v51  ;;  %v3963_v0 = vadd.f32 %v3948_v35, %v3947_v4  ;;  %v3834_v41 = vadd.f32 %v3783_v21, %v3537_v42  ;;  %v4985_v62 = vpop.f32.mrf.mxu1  ;;  %v3548_v51 = vadd.f32 %v6503_v30, %v3123_v56 }
 0x1da   : > { %v4978_v46 = vpop.f32.mrf.mxu0  ;;  %4552 = vst [vmem:[%s5308_s22 + $0x28] sm:$0xff] %v4529_v60   ;;  %v4524_v61 = vpack.c.bf16 %v3839_v58, %v3838_v43  ;;  %v3844_v27 = vadd.f32 %v4985_v62, %v3547_v20  ;;  %v3953_v40 = vmul.f32 %v3836_v3, %v3836_v3  ;;  %v3956_v8 = vmul.f32 %v3839_v58, %v3839_v58 }
 0x1db   : > { %v3964_v22 = vadd.f32 %v3963_v0, %v3949_v10  ;;  %v3928_v39 = vadd.f32 %v3927_v63, %v3833_v15  ;;  %v3837_v12 = vadd.f32 %v4978_v46, %v3540_v47  ;;  %v3951_v7 = vmul.f32 %v3834_v41, %v3834_v41  ;;  %v3815_v36 = vpop.f32.mrf.mxu1 }
 0x1dc   : > { %v3786_v14 = vpop.f32.mrf.mxu0  ;;  %4551 = vst [vmem:[%s5308_s22 + $0x20] sm:$0xff] %v4524_v61   ;;  %v3546_v15 = vadd.f32 %v6508_v45, %v3121_v29  ;;  %v3842_v13 = vadd.f32 %v3815_v36, %v3545_v2  ;;  %v3957_v4 = vmul.f32 %v3840_v17, %v3840_v17  ;;  %v3958_v31 = vmul.f32 %v6525_v9, %v6525_v9 }
 0x1dd   : > { %v3929_v11 = vadd.f32 %v3928_v39, %v3834_v41  ;;  %v3965_v33 = vadd.f32 %v3964_v22, %v3950_v54  ;;  %v4519_v32 = vpack.c.bf16 %v3837_v12, %v3836_v3  ;;  %v3835_v24 = vadd.f32 %v3786_v14, %v3538_v38  ;;  %v4986_v49 = vpop.f32.mrf.mxu1 }
 0x1de   : > { %v3845_v42 = vadd.f32 %v4986_v49, %v3548_v51  ;;  %v3954_v25 = vmul.f32 %v3837_v12, %v3837_v12  ;;  %v3959_v29 = vmul.f32 %v3842_v13, %v3842_v13 }
 0x1df   : > { %v3966_v48 = vadd.f32 %v3965_v33, %v3951_v7  ;;  %4550 = vst [vmem:[%s5308_s22 + $0x18] sm:$0xff] %v4519_v32   ;;  %v4514_v23 = vpack.c.bf16 %v3835_v24, %v3834_v41  ;;  %v3930_v47 = vadd.f32 %v3929_v11, %v3835_v24  ;;  %v3952_v55 = vmul.f32 %v3835_v24, %v3835_v24  ;;  %v3818_v5 = vpop.f32.mrf.mxu1 }
 0x1e0   : > { %v4539_v30 = vpack.c.bf16 %v3845_v42, %v3844_v27  ;;  %v3843_v19 = vadd.f32 %v3818_v5, %v3546_v15  ;;  %v3961_v41 = vmul.f32 %v3844_v27, %v3844_v27  ;;  %v3962_v60 = vmul.f32 %v3845_v42, %v3845_v42 }
 0x1e1   : > { %4549 = vst [vmem:[%s5308_s22 + $0x10] sm:$0xff] %v4514_v23   ;;  %v3931_v52 = vadd.f32 %v3930_v47, %v3836_v3  ;;  %v3967_v34 = vadd.f32 %v3966_v48, %v3952_v55 }
 0x1e2   : > { %4554 = vst [vmem:[%s5308_s22 + $0x38] sm:$0xff] %v4539_v30   ;;  %v4534_v26 = vpack.c.bf16 %v3843_v19, %v3842_v13  ;;  %v3960_v63 = vmul.f32 %v3843_v19, %v3843_v19 }
 0x1e3   : > { %v3932_v45 = vadd.f32 %v3931_v52, %v3837_v12  ;;  %v3968_v6 = vadd.f32 %v3967_v34, %v3953_v40 }
 0x1e4   : > { %4553 = vst [vmem:[%s5308_s22 + $0x30] sm:$0xff] %v4534_v26  }
 0x1e5   : > { %v3933_v59 = vadd.f32 %v3932_v45, %v3838_v43  ;;  %v3969_v28 = vadd.f32 %v3968_v6, %v3954_v25 }
 0x1e7   : > { %v3934_v50 = vadd.f32 %v3933_v59, %v3839_v58  ;;  %v3970_v57 = vadd.f32 %v3969_v28, %v3955_v53 }
 0x1e9   : > { %v3935_v37 = vadd.f32 %v3934_v50, %v3840_v17  ;;  %v3971_v18 = vadd.f32 %v3970_v57, %v3956_v8 }
 0x1eb   : > { %v3936_v1 = vadd.f32 %v3935_v37, %v6525_v9  ;;  %v3972_v35 = vadd.f32 %v3971_v18, %v3957_v4 }
 0x1ed   : > { %v3937_v56 = vadd.f32 %v3936_v1, %v3842_v13  ;;  %v3973_v21 = vadd.f32 %v3972_v35, %v3958_v31 }
 0x1ef   : > { %v3938_v10 = vadd.f32 %v3937_v56, %v3843_v19  ;;  %v3974_v0 = vadd.f32 %v3973_v21, %v3959_v29 }
 0x1f1   : > { %v3939_v16 = vadd.f32 %v3938_v10, %v3844_v27  ;;  %v3975_v43 = vadd.f32 %v3974_v0, %v3960_v63 }
 0x1f3   : > { %v3940_v54 = vadd.f32 %v3939_v16, %v3845_v42  ;;  %v3976_v17 = vadd.f32 %v3975_v43, %v3961_v41 }
 0x1f5   : > { %v3941_v58 = vrot.slane %v3940_v54, 4  ;;  %v3977_v46 = vadd.f32 %v3976_v17, %v3962_v60 }
 0x1f7   : > { %v3942_v22 = vadd.f32 %v3941_v58, %v3940_v54  ;;  %v3978_v3 = vrot.slane %v3977_v46, 4 }
 0x1f9   : > { %v3943_v62 = vrot.slane %v3942_v22, 2  ;;  %v3979_v9 = vadd.f32 %v3978_v3, %v3977_v46 }
 0x1fb   : > { %v3944_v39 = vadd.f32 %v3943_v62, %v3942_v22  ;;  %v3980_v12 = vrot.slane %v3979_v9, 2 }
 0x1fd   : > { %v3945_v44 = vrot.slane %v3944_v39, 1  ;;  %v3981_v38 = vadd.f32 %v3980_v12, %v3979_v9 }
 0x1ff   : > { %v3982_v61 = vrot.slane %v3981_v38, 1  ;;  %v3946_v14 = vadd.f32 %v3945_v44, %v3944_v39 }
 0x201   : > { %v3983_v11 = vadd.f32 %v3982_v61, %v3981_v38 }
 0x203   : > { %v3985_v7 = vsel %vm593_vm0, %v3946_v14, %v3983_v11 }
 0x204   : > { %3986 = vst [vmem:[%s5432_s16] sm:$0x3] %v3985_v7 }
 0x205 PF: > { %s18_s28 = sadd.s32 1, %s5178_s28   ;;  %s6615_s24 = smov %s5170_s26 }
 0x206   : > { %p15_p13 = scmp.ge.s32.totalorder %s18_s28, 6   ;;  %s6616_s25 = smov %s5174_s27 }
 0x207   : > { %s6617_s26 = smov %s6620_s29  ;;  %s6618_s27 = smov %s6624_s30 }
 0x208   :  { %17 = sbr.rel (!%p15_p13) target bundleno = 3 (0x3), region = 103 }

</bundles_post_ra>
